<compile_context>
chip_gen: v7x
topology: tpu7x:2x2x1
jax: 0.10.0
libtpu: 0.0.40
codegen_flags: <defaults>
</compile_context>

<pallas_src>
import functools

import jax
import jax.numpy as jnp
from jax.experimental import pallas as pl
from jax.experimental.pallas import tpu as pltpu

LANE = 128      # last-dim vreg width
SUBLANE = 8     # second-to-last-dim vreg height

_VMEM = pl.BlockSpec(memory_space=pltpu.MemorySpace.VMEM)


def _round_up(n, m):
    return ((n + m - 1) // m) * m


# ----------------------------------------------------------------------------
# In-kernel helpers.
# ----------------------------------------------------------------------------
def _lstm_cell(x_parts_t, h, c, w, b, hp):
    """One LSTM step.

    x_parts_t: tuple of (B, F_i) bf16 tiles (concatenated feature-wise with h).
    h, c     : (B, hp) f32 state.
    w        : (sum(F_i) + hp, 4*hp) bf16, PyTorch gate order (i, f, g, o) laid
               out in hp-wide lane-aligned slabs.
    b        : (1, 4*hp) f32 (= b_ih + b_hh).
    """
    xh = jnp.concatenate(list(x_parts_t) + [h.astype(x_parts_t[0].dtype)], axis=-1)
    gates = jnp.dot(xh, w, preferred_element_type=jnp.float32) + b
    i_g = jax.nn.sigmoid(gates[:, 0 * hp:1 * hp])
    f_g = jax.nn.sigmoid(gates[:, 1 * hp:2 * hp])
    g_g = jnp.tanh(gates[:, 2 * hp:3 * hp])
    o_g = jax.nn.sigmoid(gates[:, 3 * hp:4 * hp])
    c_new = f_g * c + i_g * g_g
    h_new = o_g * jnp.tanh(c_new)
    return h_new, c_new


def _time_loop(seq_len, body, carry):
    """Fully unroll small T (gives the scheduler the whole recurrence); fori otherwise."""
    if seq_len <= 32:
        for t in range(seq_len):
            carry = body(t, carry)
        return carry
    return jax.lax.fori_loop(0, seq_len, body, carry)


# ----------------------------------------------------------------------------
# Fused bidirectional LSTM layer kernel (whole sequence resident in VMEM).
# ----------------------------------------------------------------------------
def _bidir_lstm_layer_kernel(*refs, seq_len, hidden, num_x):
    x_refs = refs[:num_x]
    wf_ref, bf_ref, wb_ref, bb_ref = refs[num_x:num_x + 4]
    outf_ref, outb_ref = refs[num_x + 4:num_x + 6]

    bsz = x_refs[0].shape[1]
    wf = wf_ref[...]
    wb = wb_ref[...]
    bf = bf_ref[...]
    bb = bb_ref[...]

    def read_x(t):
        return tuple(r[t] for r in x_refs)

    def body(t, carry):
        h_f, c_f, h_b, c_b = carry
        rt = seq_len - 1 - t
        h_f, c_f = _lstm_cell(read_x(t), h_f, c_f, wf, bf, hidden)
        h_b, c_b = _lstm_cell(read_x(rt), h_b, c_b, wb, bb, hidden)
        outf_ref[t] = h_f.astype(outf_ref.dtype)
        outb_ref[rt] = h_b.astype(outb_ref.dtype)
        return h_f, c_f, h_b, c_b

    z = jnp.zeros((bsz, hidden), jnp.float32)
    _time_loop(seq_len, body, (z, z, z, z))


def bidir_lstm_layer(x_parts, fwd_params, bwd_params):
    """x_parts: tuple of time-major (T, Bp, F_i) bf16 arrays.

    Returns (out_fwd, out_bwd), each (T, Bp, Hp) bf16 (lane-dense halves; no
    HBM concat — the next kernel concatenates per-step tiles in VMEM)."""
    seq_len, bsz = x_parts[0].shape[:2]
    wf, bf = fwd_params
    wb, bb = bwd_params
    hp = wf.shape[1] // 4
    num_x = len(x_parts)
    kernel = functools.partial(_bidir_lstm_layer_kernel,
                               seq_len=seq_len, hidden=hp, num_x=num_x)
    out_f, out_b = pl.pallas_call(
        kernel,
        out_shape=[jax.ShapeDtypeStruct((seq_len, bsz, hp), jnp.bfloat16),
                   jax.ShapeDtypeStruct((seq_len, bsz, hp), jnp.bfloat16)],
        in_specs=[_VMEM] * (num_x + 4),
        out_specs=[_VMEM, _VMEM],
    )(*x_parts, wf, bf, wb, bb)
    return out_f, out_b


# ----------------------------------------------------------------------------
# Final layer fused with the FC head: forward recurrence over T steps + exactly
# one backward step, then logits = concat(h_f, h_b) @ W_fc + b_fc.  The full
# (T, B, 2H) output of the last layer is never written to HBM.
# ----------------------------------------------------------------------------
def _final_bidir_lstm_fc_kernel(*refs, seq_len, hidden, num_x):
    x_refs = refs[:num_x]
    wf_ref, bf_ref, wb_ref, bb_ref, fcw_ref, fcb_ref = refs[num_x:num_x + 6]
    out_ref = refs[num_x + 6]

    bsz = x_refs[0].shape[1]
    wf = wf_ref[...]
    bf = bf_ref[...]

    def read_x(t):
        return tuple(r[t] for r in x_refs)

    def fwd_body(t, carry):
        h, c = carry
        return _lstm_cell(read_x(t), h, c, wf, bf, hidden)

    z = jnp.zeros((bsz, hidden), jnp.float32)
    h_f, _ = _time_loop(seq_len, fwd_body, (z, z))

    # Backward direction: lstm_out[:, -1, :] only needs the backward hidden at
    # the original last timestep, i.e. the FIRST step of the reverse scan.
    h_b, _ = _lstm_cell(read_x(seq_len - 1), z, z, wb_ref[...], bb_ref[...], hidden)

    fcw = fcw_ref[...]
    hcat = jnp.concatenate([h_f, h_b], axis=-1).astype(fcw.dtype)
    out_ref[...] = (jnp.dot(hcat, fcw, preferred_element_type=jnp.float32)
                    + fcb_ref[...]).astype(out_ref.dtype)


def final_bidir_lstm_fc(x_parts, fwd_params, bwd_params, fc_w, fc_b):
    seq_len, bsz = x_parts[0].shape[:2]
    wf, bf = fwd_params
    wb, bb = bwd_params
    hp = wf.shape[1] // 4
    op = fc_w.shape[1]
    num_x = len(x_parts)
    kernel = functools.partial(_final_bidir_lstm_fc_kernel,
                               seq_len=seq_len, hidden=hp, num_x=num_x)
    return pl.pallas_call(
        kernel,
        out_shape=jax.ShapeDtypeStruct((bsz, op), jnp.float32),
        in_specs=[_VMEM] * (num_x + 6),
        out_specs=_VMEM,
    )(*x_parts, wf, bf, wb, bb, fc_w, fc_b)


# ----------------------------------------------------------------------------
# Full model forward (eval mode: dropouts are identity).
# ----------------------------------------------------------------------------
def bilstm_classifier_forward(x, packed):
    """x: (B, T, input_dim) f32 -> (B, output_dim) f32."""
    bsz, _, d_in = x.shape
    o_dim = packed["output_dim"]
    bp = _round_up(bsz, SUBLANE)
    dp = _round_up(d_in, LANE)

    # Pad batch to a sublane multiple and features to a lane multiple; go
    # time-major and bf16 (MXU operand dtype; f32 accumulation in-kernel).
    x_tm = jnp.zeros((x.shape[1], bp, dp), jnp.bfloat16)
    x_tm = x_tm.at[:, :bsz, :d_in].set(
        jnp.transpose(x, (1, 0, 2)).astype(jnp.bfloat16))

    x_parts = (x_tm,)
    layers = packed["lstm"]
    for layer in layers[:-1]:
        x_parts = bidir_lstm_layer(x_parts, layer["fwd"], layer["bwd"])
        # inter-layer LSTM dropout: identity in eval mode.
    out_p = final_bidir_lstm_fc(x_parts, layers[-1]["fwd"], layers[-1]["bwd"],
                                packed["fc_w"], packed["fc_b"])
    # self.dropout(lstm_out): identity in eval mode.
    return out_p[:bsz, :o_dim]


# ----------------------------------------------------------------------------
# Parameters: raw PyTorch-layout init + packing into padded, fused kernel layout.
# ----------------------------------------------------------------------------
def init_raw_params(key, input_dim, hidden_dim, output_dim, num_layers=2):
    """PyTorch layout: weight_ih (4H, D_in), weight_hh (4H, H), biases (4H,)."""
    k = 1.0 / float(hidden_dim) ** 0.5
    layers = []
    for layer in range(num_layers):
        d_in = input_dim if layer == 0 else 2 * hidden_dim
        dirs = {}
        for direction in ("fwd", "bwd"):
            key, k1, k2, k3, k4 = jax.random.split(key, 5)
            w_ih = jax.random.uniform(k1, (4 * hidden_dim, d_in), jnp.float32, -k, k)
            w_hh = jax.random.uniform(k2, (4 * hidden_dim, hidden_dim), jnp.float32, -k, k)
            b_ih = jax.random.uniform(k3, (4 * hidden_dim,), jnp.float32, -k, k)
            b_hh = jax.random.uniform(k4, (4 * hidden_dim,), jnp.float32, -k, k)
            dirs[direction] = (w_ih, w_hh, b_ih, b_hh)
        layers.append(dirs)
    kf = 1.0 / float(2 * hidden_dim) ** 0.5
    key, kw, kb = jax.random.split(key, 3)
    fc_w = jax.random.uniform(kw, (output_dim, 2 * hidden_dim), jnp.float32, -kf, kf)
    fc_b = jax.random.uniform(kb, (output_dim,), jnp.float32, -kf, kf)
    return {"lstm": layers, "fc_w": fc_w, "fc_b": fc_b,
            "input_dim": input_dim, "hidden_dim": hidden_dim, "output_dim": output_dim}


def pack_params(raw):
    """Stack [W_ih; W_hh] per direction into a (D_pad + Hp, 4*Hp) bf16 matrix with
    lane-aligned gate slabs and zero padding; combine biases; pack the FC head."""
    h = raw["hidden_dim"]
    d = raw["input_dim"]
    o = raw["output_dim"]
    hp = _round_up(h, LANE)
    dp = _round_up(d, LANE)
    op = _round_up(o, LANE)

    packed = {"lstm": [], "hidden_dim": h, "output_dim": o}
    for li, layer in enumerate(raw["lstm"]):
        if li == 0:
            d_pad = dp
            segs = [(0, d, 0)]                 # (src_col, length, dst_row)
        else:
            # Input of layers >= 1 is (fwd half, bwd half), each padded to Hp.
            d_pad = 2 * hp
            segs = [(0, h, 0), (h, h, hp)]
        dirs_packed = {}
        for direction in ("fwd", "bwd"):
            w_ih, w_hh, b_ih, b_hh = layer[direction]
            w_cat = jnp.zeros((d_pad + hp, 4 * hp), jnp.float32)
            b_cat = jnp.zeros((1, 4 * hp), jnp.float32)
            for g in range(4):
                col0 = g * hp
                for (src, n, dst) in segs:
                    w_cat = w_cat.at[dst:dst + n, col0:col0 + h].set(
                        w_ih[g * h:(g + 1) * h, src:src + n].T)
                w_cat = w_cat.at[d_pad:d_pad + h, col0:col0 + h].set(
                    w_hh[g * h:(g + 1) * h, :].T)
                b_cat = b_cat.at[0, col0:col0 + h].set(
                    b_ih[g * h:(g + 1) * h] + b_hh[g * h:(g + 1) * h])
            dirs_packed[direction] = (w_cat.astype(jnp.bfloat16), b_cat)
        packed["lstm"].append(dirs_packed)

    fcw = jnp.zeros((2 * hp, op), jnp.float32)
    fcw = fcw.at[0:h, 0:o].set(raw["fc_w"][:, 0:h].T)
    fcw = fcw.at[hp:hp + h, 0:o].set(raw["fc_w"][:, h:2 * h].T)
    fcb = jnp.zeros((1, op), jnp.float32).at[0, 0:o].set(raw["fc_b"])
    packed["fc_w"] = fcw.astype(jnp.bfloat16)
    packed["fc_b"] = fcb
    return packed


# ----------------------------------------------------------------------------
# Pure-JAX reference (f32, unpadded) matching the PyTorch module semantics.
# ----------------------------------------------------------------------------
def reference_forward(x, raw):
    def cell(x_t, h, c, p):
        w_ih, w_hh, b_ih, b_hh = p
        gates = x_t @ w_ih.T + h @ w_hh.T + b_ih + b_hh
        i_g, f_g, g_g, o_g = jnp.split(gates, 4, axis=-1)
        c = jax.nn.sigmoid(f_g) * c + jax.nn.sigmoid(i_g) * jnp.tanh(g_g)
        h = jax.nn.sigmoid(o_g) * jnp.tanh(c)
        return h, c

    bsz, seq_len, _ = x.shape
    h_dim = raw["hidden_dim"]
    seq = x
    for layer in raw["lstm"]:
        h = jnp.zeros((bsz, h_dim)); c = jnp.zeros((bsz, h_dim))
        fwd = []
        for t in range(seq_len):
            h, c = cell(seq[:, t], h, c, layer["fwd"])
            fwd.append(h)
        h = jnp.zeros((bsz, h_dim)); c = jnp.zeros((bsz, h_dim))
        bwd = [None] * seq_len
        for t in range(seq_len - 1, -1, -1):
            h, c = cell(seq[:, t], h, c, layer["bwd"])
            bwd[t] = h
        seq = jnp.stack([jnp.concatenate([f, b], axis=-1) for f, b in zip(fwd, bwd)],
                        axis=1)
    last = seq[:, -1, :]
    return last @ raw["fc_w"].T + raw["fc_b"]


if __name__ == "__main__":
    B, T, INPUT_DIM, HIDDEN_DIM, OUTPUT_DIM, NUM_LAYERS = 2, 8, 16, 32, 8, 2

    key = jax.random.PRNGKey(0)
    key, xk, pk = jax.random.split(key, 3)
    x = jax.random.normal(xk, (B, T, INPUT_DIM), dtype=jnp.float32)

    raw = init_raw_params(pk, INPUT_DIM, HIDDEN_DIM, OUTPUT_DIM, NUM_LAYERS)
    packed = pack_params(raw)

    out = bilstm_classifier_forward(x, packed)
    out = jax.block_until_ready(out)
    assert out.shape == (B, OUTPUT_DIM), out.shape

    ref = reference_forward(x, raw)
    max_err = float(jnp.max(jnp.abs(out - ref)))
    # bf16 MXU operands (f32 state/accum) -> small drift vs. the f32 reference.
    assert max_err < 5e-2, f"max abs err {max_err}"
    print("KERNEL_OK")
</pallas_src>

<mosaic_0001>
module attributes {stable_mosaic.version = 11 : i64} {
  func.func @_bidir_lstm_layer_kernel(%arg0: memref<8x8x128xbf16, #tpu.memory_space<vmem>>, %arg1: memref<256x512xbf16, #tpu.memory_space<vmem>>, %arg2: memref<1x512xf32, #tpu.memory_space<vmem>>, %arg3: memref<256x512xbf16, #tpu.memory_space<vmem>>, %arg4: memref<1x512xf32, #tpu.memory_space<vmem>>, %arg5: memref<8x8x128xbf16, #tpu.memory_space<vmem>>, %arg6: memref<8x8x128xbf16, #tpu.memory_space<vmem>>) attributes {dimension_semantics = [], scalar_prefetch = 0 : i64, scratch_operands = 0 : i64, tpu.core_type = #tpu.core_type<tc>} {
    %c0 = arith.constant 0 : index
    %c0_0 = arith.constant 0 : index
    %0 = vector.load %arg1[%c0, %c0_0] : memref<256x512xbf16, #tpu.memory_space<vmem>>, vector<256x512xbf16>
    %c0_1 = arith.constant 0 : index
    %c0_2 = arith.constant 0 : index
    %1 = vector.load %arg3[%c0_1, %c0_2] : memref<256x512xbf16, #tpu.memory_space<vmem>>, vector<256x512xbf16>
    %c0_3 = arith.constant 0 : index
    %c0_4 = arith.constant 0 : index
    %2 = vector.load %arg2[%c0_3, %c0_4] : memref<1x512xf32, #tpu.memory_space<vmem>>, vector<1x512xf32>
    %c0_5 = arith.constant 0 : index
    %c0_6 = arith.constant 0 : index
    %3 = vector.load %arg4[%c0_5, %c0_6] : memref<1x512xf32, #tpu.memory_space<vmem>>, vector<1x512xf32>
    %cst = arith.constant 0.000000e+00 : f32
    %4 = vector.broadcast %cst : f32 to vector<8x128xf32>
    %c0_7 = arith.constant 0 : index
    %c0_8 = arith.constant 0 : index
    %c0_9 = arith.constant 0 : index
    %5 = vector.load %arg0[%c0_7, %c0_8, %c0_9] : memref<8x8x128xbf16, #tpu.memory_space<vmem>>, vector<1x8x128xbf16>
    %6 = vector.shape_cast %5 : vector<1x8x128xbf16> to vector<8x128xbf16>
    %7 = arith.truncf %4 : vector<8x128xf32> to vector<8x128xbf16>
    %8 = tpu.concatenate %6, %7 in 1 : vector<8x128xbf16>, vector<8x128xbf16> -> vector<8x256xbf16>
    %cst_10 = arith.constant dense<0.000000e+00> : vector<8x512xf32>
    %9 = tpu.matmul %8, %0, %cst_10 {dimension_numbers = #tpu.dot_dimension_numbers<[1], [0], [0], [1], [0, 0, 1, 1], [], []>} : vector<8x256xbf16>, vector<256x512xbf16>, vector<8x512xf32> -> vector<8x512xf32>
    %10 = vector.broadcast %2 : vector<1x512xf32> to vector<8x512xf32>
    %11 = arith.addf %9, %10 : vector<8x512xf32>
    %12 = vector.extract_strided_slice %11 {offsets = [0, 0], sizes = [8, 128], strides = [1, 1]} : vector<8x512xf32> to vector<8x128xf32>
    %13 = arith.negf %12 : vector<8x128xf32>
    %14 = math.exp %13 : vector<8x128xf32>
    %cst_11 = arith.constant 1.000000e+00 : f32
    %15 = vector.broadcast %cst_11 : f32 to vector<8x128xf32>
    %16 = arith.addf %15, %14 : vector<8x128xf32>
    %17 = arith.divf %15, %16 : vector<8x128xf32>
    %18 = vector.extract_strided_slice %11 {offsets = [0, 128], sizes = [8, 128], strides = [1, 1]} : vector<8x512xf32> to vector<8x128xf32>
    %19 = arith.negf %18 : vector<8x128xf32>
    %20 = math.exp %19 : vector<8x128xf32>
    %cst_12 = arith.constant 1.000000e+00 : f32
    %21 = vector.broadcast %cst_12 : f32 to vector<8x128xf32>
    %22 = arith.addf %21, %20 : vector<8x128xf32>
    %23 = arith.divf %21, %22 : vector<8x128xf32>
    %24 = vector.extract_strided_slice %11 {offsets = [0, 256], sizes = [8, 128], strides = [1, 1]} : vector<8x512xf32> to vector<8x128xf32>
    %25 = math.tanh %24 : vector<8x128xf32>
    %26 = vector.extract_strided_slice %11 {offsets = [0, 384], sizes = [8, 128], strides = [1, 1]} : vector<8x512xf32> to vector<8x128xf32>
    %27 = arith.negf %26 : vector<8x128xf32>
    %28 = math.exp %27 : vector<8x128xf32>
    %cst_13 = arith.constant 1.000000e+00 : f32
    %29 = vector.broadcast %cst_13 : f32 to vector<8x128xf32>
    %30 = arith.addf %29, %28 : vector<8x128xf32>
    %31 = arith.divf %29, %30 : vector<8x128xf32>
    %32 = arith.mulf %23, %4 : vector<8x128xf32>
    %33 = arith.mulf %17, %25 : vector<8x128xf32>
    %34 = arith.addf %32, %33 : vector<8x128xf32>
    %35 = math.tanh %34 : vector<8x128xf32>
    %36 = arith.mulf %31, %35 : vector<8x128xf32>
    %c7 = arith.constant 7 : index
    %c0_14 = arith.constant 0 : index
    %c0_15 = arith.constant 0 : index
    %37 = vector.load %arg0[%c7, %c0_14, %c0_15] : memref<8x8x128xbf16, #tpu.memory_space<vmem>>, vector<1x8x128xbf16>
    %38 = vector.shape_cast %37 : vector<1x8x128xbf16> to vector<8x128xbf16>
    %39 = arith.truncf %4 : vector<8x128xf32> to vector<8x128xbf16>
    %40 = tpu.concatenate %38, %39 in 1 : vector<8x128xbf16>, vector<8x128xbf16> -> vector<8x256xbf16>
    %cst_16 = arith.constant dense<0.000000e+00> : vector<8x512xf32>
    %41 = tpu.matmul %40, %1, %cst_16 {dimension_numbers = #tpu.dot_dimension_numbers<[1], [0], [0], [1], [0, 0, 1, 1], [], []>} : vector<8x256xbf16>, vector<256x512xbf16>, vector<8x512xf32> -> vector<8x512xf32>
    %42 = vector.broadcast %3 : vector<1x512xf32> to vector<8x512xf32>
    %43 = arith.addf %41, %42 : vector<8x512xf32>
    %44 = vector.extract_strided_slice %43 {offsets = [0, 0], sizes = [8, 128], strides = [1, 1]} : vector<8x512xf32> to vector<8x128xf32>
    %45 = arith.negf %44 : vector<8x128xf32>
    %46 = math.exp %45 : vector<8x128xf32>
    %cst_17 = arith.constant 1.000000e+00 : f32
    %47 = vector.broadcast %cst_17 : f32 to vector<8x128xf32>
    %48 = arith.addf %47, %46 : vector<8x128xf32>
    %49 = arith.divf %47, %48 : vector<8x128xf32>
    %50 = vector.extract_strided_slice %43 {offsets = [0, 128], sizes = [8, 128], strides = [1, 1]} : vector<8x512xf32> to vector<8x128xf32>
    %51 = arith.negf %50 : vector<8x128xf32>
    %52 = math.exp %51 : vector<8x128xf32>
    %cst_18 = arith.constant 1.000000e+00 : f32
    %53 = vector.broadcast %cst_18 : f32 to vector<8x128xf32>
    %54 = arith.addf %53, %52 : vector<8x128xf32>
    %55 = arith.divf %53, %54 : vector<8x128xf32>
    %56 = vector.extract_strided_slice %43 {offsets = [0, 256], sizes = [8, 128], strides = [1, 1]} : vector<8x512xf32> to vector<8x128xf32>
    %57 = math.tanh %56 : vector<8x128xf32>
    %58 = vector.extract_strided_slice %43 {offsets = [0, 384], sizes = [8, 128], strides = [1, 1]} : vector<8x512xf32> to vector<8x128xf32>
    %59 = arith.negf %58 : vector<8x128xf32>
    %60 = math.exp %59 : vector<8x128xf32>
    %cst_19 = arith.constant 1.000000e+00 : f32
    %61 = vector.broadcast %cst_19 : f32 to vector<8x128xf32>
    %62 = arith.addf %61, %60 : vector<8x128xf32>
    %63 = arith.divf %61, %62 : vector<8x128xf32>
    %64 = arith.mulf %55, %4 : vector<8x128xf32>
    %65 = arith.mulf %49, %57 : vector<8x128xf32>
    %66 = arith.addf %64, %65 : vector<8x128xf32>
    %67 = math.tanh %66 : vector<8x128xf32>
    %68 = arith.mulf %63, %67 : vector<8x128xf32>
    %69 = arith.truncf %36 : vector<8x128xf32> to vector<8x128xbf16>
    %c0_20 = arith.constant 0 : index
    %c0_21 = arith.constant 0 : index
    %c0_22 = arith.constant 0 : index
    %70 = vector.load %arg5[%c0_20, %c0_21, %c0_22] : memref<8x8x128xbf16, #tpu.memory_space<vmem>>, vector<1x8x128xbf16>
    %71 = vector.shape_cast %70 : vector<1x8x128xbf16> to vector<8x128xbf16>
    %72 = vector.shape_cast %69 : vector<8x128xbf16> to vector<1x8x128xbf16>
    tpu.vector_store %arg5[%c0_20, %c0_21, %c0_22], %72 {strides = array<i32>} : memref<8x8x128xbf16, #tpu.memory_space<vmem>>, vector<1x8x128xbf16>,
    %73 = arith.truncf %68 : vector<8x128xf32> to vector<8x128xbf16>
    %c7_23 = arith.constant 7 : index
    %c0_24 = arith.constant 0 : index
    %c0_25 = arith.constant 0 : index
    %74 = vector.load %arg6[%c7_23, %c0_24, %c0_25] : memref<8x8x128xbf16, #tpu.memory_space<vmem>>, vector<1x8x128xbf16>
    %75 = vector.shape_cast %74 : vector<1x8x128xbf16> to vector<8x128xbf16>
    %76 = vector.shape_cast %73 : vector<8x128xbf16> to vector<1x8x128xbf16>
    tpu.vector_store %arg6[%c7_23, %c0_24, %c0_25], %76 {strides = array<i32>} : memref<8x8x128xbf16, #tpu.memory_space<vmem>>, vector<1x8x128xbf16>,
    %c1 = arith.constant 1 : index
    %c0_26 = arith.constant 0 : index
    %c0_27 = arith.constant 0 : index
    %77 = vector.load %arg0[%c1, %c0_26, %c0_27] : memref<8x8x128xbf16, #tpu.memory_space<vmem>>, vector<1x8x128xbf16>
    %78 = vector.shape_cast %77 : vector<1x8x128xbf16> to vector<8x128xbf16>
    %79 = arith.truncf %36 : vector<8x128xf32> to vector<8x128xbf16>
    %80 = tpu.concatenate %78, %79 in 1 : vector<8x128xbf16>, vector<8x128xbf16> -> vector<8x256xbf16>
    %cst_28 = arith.constant dense<0.000000e+00> : vector<8x512xf32>
    %81 = tpu.matmul %80, %0, %cst_28 {dimension_numbers = #tpu.dot_dimension_numbers<[1], [0], [0], [1], [0, 0, 1, 1], [], []>} : vector<8x256xbf16>, vector<256x512xbf16>, vector<8x512xf32> -> vector<8x512xf32>
    %82 = vector.broadcast %2 : vector<1x512xf32> to vector<8x512xf32>
    %83 = arith.addf %81, %82 : vector<8x512xf32>
    %84 = vector.extract_strided_slice %83 {offsets = [0, 0], sizes = [8, 128], strides = [1, 1]} : vector<8x512xf32> to vector<8x128xf32>
    %85 = arith.negf %84 : vector<8x128xf32>
    %86 = math.exp %85 : vector<8x128xf32>
    %cst_29 = arith.constant 1.000000e+00 : f32
    %87 = vector.broadcast %cst_29 : f32 to vector<8x128xf32>
    %88 = arith.addf %87, %86 : vector<8x128xf32>
    %89 = arith.divf %87, %88 : vector<8x128xf32>
    %90 = vector.extract_strided_slice %83 {offsets = [0, 128], sizes = [8, 128], strides = [1, 1]} : vector<8x512xf32> to vector<8x128xf32>
    %91 = arith.negf %90 : vector<8x128xf32>
    %92 = math.exp %91 : vector<8x128xf32>
    %cst_30 = arith.constant 1.000000e+00 : f32
    %93 = vector.broadcast %cst_30 : f32 to vector<8x128xf32>
    %94 = arith.addf %93, %92 : vector<8x128xf32>
    %95 = arith.divf %93, %94 : vector<8x128xf32>
    %96 = vector.extract_strided_slice %83 {offsets = [0, 256], sizes = [8, 128], strides = [1, 1]} : vector<8x512xf32> to vector<8x128xf32>
    %97 = math.tanh %96 : vector<8x128xf32>
    %98 = vector.extract_strided_slice %83 {offsets = [0, 384], sizes = [8, 128], strides = [1, 1]} : vector<8x512xf32> to vector<8x128xf32>
    %99 = arith.negf %98 : vector<8x128xf32>
    %100 = math.exp %99 : vector<8x128xf32>
    %cst_31 = arith.constant 1.000000e+00 : f32
    %101 = vector.broadcast %cst_31 : f32 to vector<8x128xf32>
    %102 = arith.addf %101, %100 : vector<8x128xf32>
    %103 = arith.divf %101, %102 : vector<8x128xf32>
    %104 = arith.mulf %95, %34 : vector<8x128xf32>
    %105 = arith.mulf %89, %97 : vector<8x128xf32>
    %106 = arith.addf %104, %105 : vector<8x128xf32>
    %107 = math.tanh %106 : vector<8x128xf32>
    %108 = arith.mulf %103, %107 : vector<8x128xf32>
    %c6 = arith.constant 6 : index
    %c0_32 = arith.constant 0 : index
    %c0_33 = arith.constant 0 : index
    %109 = vector.load %arg0[%c6, %c0_32, %c0_33] : memref<8x8x128xbf16, #tpu.memory_space<vmem>>, vector<1x8x128xbf16>
    %110 = vector.shape_cast %109 : vector<1x8x128xbf16> to vector<8x128xbf16>
    %111 = arith.truncf %68 : vector<8x128xf32> to vector<8x128xbf16>
    %112 = tpu.concatenate %110, %111 in 1 : vector<8x128xbf16>, vector<8x128xbf16> -> vector<8x256xbf16>
    %cst_34 = arith.constant dense<0.000000e+00> : vector<8x512xf32>
    %113 = tpu.matmul %112, %1, %cst_34 {dimension_numbers = #tpu.dot_dimension_numbers<[1], [0], [0], [1], [0, 0, 1, 1], [], []>} : vector<8x256xbf16>, vector<256x512xbf16>, vector<8x512xf32> -> vector<8x512xf32>
    %114 = vector.broadcast %3 : vector<1x512xf32> to vector<8x512xf32>
    %115 = arith.addf %113, %114 : vector<8x512xf32>
    %116 = vector.extract_strided_slice %115 {offsets = [0, 0], sizes = [8, 128], strides = [1, 1]} : vector<8x512xf32> to vector<8x128xf32>
    %117 = arith.negf %116 : vector<8x128xf32>
    %118 = math.exp %117 : vector<8x128xf32>
    %cst_35 = arith.constant 1.000000e+00 : f32
    %119 = vector.broadcast %cst_35 : f32 to vector<8x128xf32>
    %120 = arith.addf %119, %118 : vector<8x128xf32>
    %121 = arith.divf %119, %120 : vector<8x128xf32>
    %122 = vector.extract_strided_slice %115 {offsets = [0, 128], sizes = [8, 128], strides = [1, 1]} : vector<8x512xf32> to vector<8x128xf32>
    %123 = arith.negf %122 : vector<8x128xf32>
    %124 = math.exp %123 : vector<8x128xf32>
    %cst_36 = arith.constant 1.000000e+00 : f32
    %125 = vector.broadcast %cst_36 : f32 to vector<8x128xf32>
    %126 = arith.addf %125, %124 : vector<8x128xf32>
    %127 = arith.divf %125, %126 : vector<8x128xf32>
    %128 = vector.extract_strided_slice %115 {offsets = [0, 256], sizes = [8, 128], strides = [1, 1]} : vector<8x512xf32> to vector<8x128xf32>
    %129 = math.tanh %128 : vector<8x128xf32>
    %130 = vector.extract_strided_slice %115 {offsets = [0, 384], sizes = [8, 128], strides = [1, 1]} : vector<8x512xf32> to vector<8x128xf32>
    %131 = arith.negf %130 : vector<8x128xf32>
    %132 = math.exp %131 : vector<8x128xf32>
    %cst_37 = arith.constant 1.000000e+00 : f32
    %133 = vector.broadcast %cst_37 : f32 to vector<8x128xf32>
    %134 = arith.addf %133, %132 : vector<8x128xf32>
    %135 = arith.divf %133, %134 : vector<8x128xf32>
    %136 = arith.mulf %127, %66 : vector<8x128xf32>
    %137 = arith.mulf %121, %129 : vector<8x128xf32>
    %138 = arith.addf %136, %137 : vector<8x128xf32>
    %139 = math.tanh %138 : vector<8x128xf32>
    %140 = arith.mulf %135, %139 : vector<8x128xf32>
    %141 = arith.truncf %108 : vector<8x128xf32> to vector<8x128xbf16>
    %c1_38 = arith.constant 1 : index
    %c0_39 = arith.constant 0 : index
    %c0_40 = arith.constant 0 : index
    %142 = vector.load %arg5[%c1_38, %c0_39, %c0_40] : memref<8x8x128xbf16, #tpu.memory_space<vmem>>, vector<1x8x128xbf16>
    %143 = vector.shape_cast %142 : vector<1x8x128xbf16> to vector<8x128xbf16>
    %144 = vector.shape_cast %141 : vector<8x128xbf16> to vector<1x8x128xbf16>
    tpu.vector_store %arg5[%c1_38, %c0_39, %c0_40], %144 {strides = array<i32>} : memref<8x8x128xbf16, #tpu.memory_space<vmem>>, vector<1x8x128xbf16>,
    %145 = arith.truncf %140 : vector<8x128xf32> to vector<8x128xbf16>
    %c6_41 = arith.constant 6 : index
    %c0_42 = arith.constant 0 : index
    %c0_43 = arith.constant 0 : index
    %146 = vector.load %arg6[%c6_41, %c0_42, %c0_43] : memref<8x8x128xbf16, #tpu.memory_space<vmem>>, vector<1x8x128xbf16>
    %147 = vector.shape_cast %146 : vector<1x8x128xbf16> to vector<8x128xbf16>
    %148 = vector.shape_cast %145 : vector<8x128xbf16> to vector<1x8x128xbf16>
    tpu.vector_store %arg6[%c6_41, %c0_42, %c0_43], %148 {strides = array<i32>} : memref<8x8x128xbf16, #tpu.memory_space<vmem>>, vector<1x8x128xbf16>,
    %c2 = arith.constant 2 : index
    %c0_44 = arith.constant 0 : index
    %c0_45 = arith.constant 0 : index
    %149 = vector.load %arg0[%c2, %c0_44, %c0_45] : memref<8x8x128xbf16, #tpu.memory_space<vmem>>, vector<1x8x128xbf16>
    %150 = vector.shape_cast %149 : vector<1x8x128xbf16> to vector<8x128xbf16>
    %151 = arith.truncf %108 : vector<8x128xf32> to vector<8x128xbf16>
    %152 = tpu.concatenate %150, %151 in 1 : vector<8x128xbf16>, vector<8x128xbf16> -> vector<8x256xbf16>
    %cst_46 = arith.constant dense<0.000000e+00> : vector<8x512xf32>
    %153 = tpu.matmul %152, %0, %cst_46 {dimension_numbers = #tpu.dot_dimension_numbers<[1], [0], [0], [1], [0, 0, 1, 1], [], []>} : vector<8x256xbf16>, vector<256x512xbf16>, vector<8x512xf32> -> vector<8x512xf32>
    %154 = vector.broadcast %2 : vector<1x512xf32> to vector<8x512xf32>
    %155 = arith.addf %153, %154 : vector<8x512xf32>
    %156 = vector.extract_strided_slice %155 {offsets = [0, 0], sizes = [8, 128], strides = [1, 1]} : vector<8x512xf32> to vector<8x128xf32>
    %157 = arith.negf %156 : vector<8x128xf32>
    %158 = math.exp %157 : vector<8x128xf32>
    %cst_47 = arith.constant 1.000000e+00 : f32
    %159 = vector.broadcast %cst_47 : f32 to vector<8x128xf32>
    %160 = arith.addf %159, %158 : vector<8x128xf32>
    %161 = arith.divf %159, %160 : vector<8x128xf32>
    %162 = vector.extract_strided_slice %155 {offsets = [0, 128], sizes = [8, 128], strides = [1, 1]} : vector<8x512xf32> to vector<8x128xf32>
    %163 = arith.negf %162 : vector<8x128xf32>
    %164 = math.exp %163 : vector<8x128xf32>
    %cst_48 = arith.constant 1.000000e+00 : f32
    %165 = vector.broadcast %cst_48 : f32 to vector<8x128xf32>
    %166 = arith.addf %165, %164 : vector<8x128xf32>
    %167 = arith.divf %165, %166 : vector<8x128xf32>
    %168 = vector.extract_strided_slice %155 {offsets = [0, 256], sizes = [8, 128], strides = [1, 1]} : vector<8x512xf32> to vector<8x128xf32>
    %169 = math.tanh %168 : vector<8x128xf32>
    %170 = vector.extract_strided_slice %155 {offsets = [0, 384], sizes = [8, 128], strides = [1, 1]} : vector<8x512xf32> to vector<8x128xf32>
    %171 = arith.negf %170 : vector<8x128xf32>
    %172 = math.exp %171 : vector<8x128xf32>
    %cst_49 = arith.constant 1.000000e+00 : f32
    %173 = vector.broadcast %cst_49 : f32 to vector<8x128xf32>
    %174 = arith.addf %173, %172 : vector<8x128xf32>
    %175 = arith.divf %173, %174 : vector<8x128xf32>
    %176 = arith.mulf %167, %106 : vector<8x128xf32>
    %177 = arith.mulf %161, %169 : vector<8x128xf32>
    %178 = arith.addf %176, %177 : vector<8x128xf32>
    %179 = math.tanh %178 : vector<8x128xf32>
    %180 = arith.mulf %175, %179 : vector<8x128xf32>
    %c5 = arith.constant 5 : index
    %c0_50 = arith.constant 0 : index
    %c0_51 = arith.constant 0 : index
    %181 = vector.load %arg0[%c5, %c0_50, %c0_51] : memref<8x8x128xbf16, #tpu.memory_space<vmem>>, vector<1x8x128xbf16>
    %182 = vector.shape_cast %181 : vector<1x8x128xbf16> to vector<8x128xbf16>
    %183 = arith.truncf %140 : vector<8x128xf32> to vector<8x128xbf16>
    %184 = tpu.concatenate %182, %183 in 1 : vector<8x128xbf16>, vector<8x128xbf16> -> vector<8x256xbf16>
    %cst_52 = arith.constant dense<0.000000e+00> : vector<8x512xf32>
    %185 = tpu.matmul %184, %1, %cst_52 {dimension_numbers = #tpu.dot_dimension_numbers<[1], [0], [0], [1], [0, 0, 1, 1], [], []>} : vector<8x256xbf16>, vector<256x512xbf16>, vector<8x512xf32> -> vector<8x512xf32>
    %186 = vector.broadcast %3 : vector<1x512xf32> to vector<8x512xf32>
    %187 = arith.addf %185, %186 : vector<8x512xf32>
    %188 = vector.extract_strided_slice %187 {offsets = [0, 0], sizes = [8, 128], strides = [1, 1]} : vector<8x512xf32> to vector<8x128xf32>
    %189 = arith.negf %188 : vector<8x128xf32>
    %190 = math.exp %189 : vector<8x128xf32>
    %cst_53 = arith.constant 1.000000e+00 : f32
    %191 = vector.broadcast %cst_53 : f32 to vector<8x128xf32>
    %192 = arith.addf %191, %190 : vector<8x128xf32>
    %193 = arith.divf %191, %192 : vector<8x128xf32>
    %194 = vector.extract_strided_slice %187 {offsets = [0, 128], sizes = [8, 128], strides = [1, 1]} : vector<8x512xf32> to vector<8x128xf32>
    %195 = arith.negf %194 : vector<8x128xf32>
    %196 = math.exp %195 : vector<8x128xf32>
    %cst_54 = arith.constant 1.000000e+00 : f32
    %197 = vector.broadcast %cst_54 : f32 to vector<8x128xf32>
    %198 = arith.addf %197, %196 : vector<8x128xf32>
    %199 = arith.divf %197, %198 : vector<8x128xf32>
    %200 = vector.extract_strided_slice %187 {offsets = [0, 256], sizes = [8, 128], strides = [1, 1]} : vector<8x512xf32> to vector<8x128xf32>
    %201 = math.tanh %200 : vector<8x128xf32>
    %202 = vector.extract_strided_slice %187 {offsets = [0, 384], sizes = [8, 128], strides = [1, 1]} : vector<8x512xf32> to vector<8x128xf32>
    %203 = arith.negf %202 : vector<8x128xf32>
    %204 = math.exp %203 : vector<8x128xf32>
    %cst_55 = arith.constant 1.000000e+00 : f32
    %205 = vector.broadcast %cst_55 : f32 to vector<8x128xf32>
    %206 = arith.addf %205, %204 : vector<8x128xf32>
    %207 = arith.divf %205, %206 : vector<8x128xf32>
    %208 = arith.mulf %199, %138 : vector<8x128xf32>
    %209 = arith.mulf %193, %201 : vector<8x128xf32>
    %210 = arith.addf %208, %209 : vector<8x128xf32>
    %211 = math.tanh %210 : vector<8x128xf32>
    %212 = arith.mulf %207, %211 : vector<8x128xf32>
    %213 = arith.truncf %180 : vector<8x128xf32> to vector<8x128xbf16>
    %c2_56 = arith.constant 2 : index
    %c0_57 = arith.constant 0 : index
    %c0_58 = arith.constant 0 : index
    %214 = vector.load %arg5[%c2_56, %c0_57, %c0_58] : memref<8x8x128xbf16, #tpu.memory_space<vmem>>, vector<1x8x128xbf16>
    %215 = vector.shape_cast %214 : vector<1x8x128xbf16> to vector<8x128xbf16>
    %216 = vector.shape_cast %213 : vector<8x128xbf16> to vector<1x8x128xbf16>
    tpu.vector_store %arg5[%c2_56, %c0_57, %c0_58], %216 {strides = array<i32>} : memref<8x8x128xbf16, #tpu.memory_space<vmem>>, vector<1x8x128xbf16>,
    %217 = arith.truncf %212 : vector<8x128xf32> to vector<8x128xbf16>
    %c5_59 = arith.constant 5 : index
    %c0_60 = arith.constant 0 : index
    %c0_61 = arith.constant 0 : index
    %218 = vector.load %arg6[%c5_59, %c0_60, %c0_61] : memref<8x8x128xbf16, #tpu.memory_space<vmem>>, vector<1x8x128xbf16>
    %219 = vector.shape_cast %218 : vector<1x8x128xbf16> to vector<8x128xbf16>
    %220 = vector.shape_cast %217 : vector<8x128xbf16> to vector<1x8x128xbf16>
    tpu.vector_store %arg6[%c5_59, %c0_60, %c0_61], %220 {strides = array<i32>} : memref<8x8x128xbf16, #tpu.memory_space<vmem>>, vector<1x8x128xbf16>,
    %c3 = arith.constant 3 : index
    %c0_62 = arith.constant 0 : index
    %c0_63 = arith.constant 0 : index
    %221 = vector.load %arg0[%c3, %c0_62, %c0_63] : memref<8x8x128xbf16, #tpu.memory_space<vmem>>, vector<1x8x128xbf16>
    %222 = vector.shape_cast %221 : vector<1x8x128xbf16> to vector<8x128xbf16>
    %223 = arith.truncf %180 : vector<8x128xf32> to vector<8x128xbf16>
    %224 = tpu.concatenate %222, %223 in 1 : vector<8x128xbf16>, vector<8x128xbf16> -> vector<8x256xbf16>
    %cst_64 = arith.constant dense<0.000000e+00> : vector<8x512xf32>
    %225 = tpu.matmul %224, %0, %cst_64 {dimension_numbers = #tpu.dot_dimension_numbers<[1], [0], [0], [1], [0, 0, 1, 1], [], []>} : vector<8x256xbf16>, vector<256x512xbf16>, vector<8x512xf32> -> vector<8x512xf32>
    %226 = vector.broadcast %2 : vector<1x512xf32> to vector<8x512xf32>
    %227 = arith.addf %225, %226 : vector<8x512xf32>
    %228 = vector.extract_strided_slice %227 {offsets = [0, 0], sizes = [8, 128], strides = [1, 1]} : vector<8x512xf32> to vector<8x128xf32>
    %229 = arith.negf %228 : vector<8x128xf32>
    %230 = math.exp %229 : vector<8x128xf32>
    %cst_65 = arith.constant 1.000000e+00 : f32
    %231 = vector.broadcast %cst_65 : f32 to vector<8x128xf32>
    %232 = arith.addf %231, %230 : vector<8x128xf32>
    %233 = arith.divf %231, %232 : vector<8x128xf32>
    %234 = vector.extract_strided_slice %227 {offsets = [0, 128], sizes = [8, 128], strides = [1, 1]} : vector<8x512xf32> to vector<8x128xf32>
    %235 = arith.negf %234 : vector<8x128xf32>
    %236 = math.exp %235 : vector<8x128xf32>
    %cst_66 = arith.constant 1.000000e+00 : f32
    %237 = vector.broadcast %cst_66 : f32 to vector<8x128xf32>
    %238 = arith.addf %237, %236 : vector<8x128xf32>
    %239 = arith.divf %237, %238 : vector<8x128xf32>
    %240 = vector.extract_strided_slice %227 {offsets = [0, 256], sizes = [8, 128], strides = [1, 1]} : vector<8x512xf32> to vector<8x128xf32>
    %241 = math.tanh %240 : vector<8x128xf32>
    %242 = vector.extract_strided_slice %227 {offsets = [0, 384], sizes = [8, 128], strides = [1, 1]} : vector<8x512xf32> to vector<8x128xf32>
    %243 = arith.negf %242 : vector<8x128xf32>
    %244 = math.exp %243 : vector<8x128xf32>
    %cst_67 = arith.constant 1.000000e+00 : f32
    %245 = vector.broadcast %cst_67 : f32 to vector<8x128xf32>
    %246 = arith.addf %245, %244 : vector<8x128xf32>
    %247 = arith.divf %245, %246 : vector<8x128xf32>
    %248 = arith.mulf %239, %178 : vector<8x128xf32>
    %249 = arith.mulf %233, %241 : vector<8x128xf32>
    %250 = arith.addf %248, %249 : vector<8x128xf32>
    %251 = math.tanh %250 : vector<8x128xf32>
    %252 = arith.mulf %247, %251 : vector<8x128xf32>
    %c4 = arith.constant 4 : index
    %c0_68 = arith.constant 0 : index
    %c0_69 = arith.constant 0 : index
    %253 = vector.load %arg0[%c4, %c0_68, %c0_69] : memref<8x8x128xbf16, #tpu.memory_space<vmem>>, vector<1x8x128xbf16>
    %254 = vector.shape_cast %253 : vector<1x8x128xbf16> to vector<8x128xbf16>
    %255 = arith.truncf %212 : vector<8x128xf32> to vector<8x128xbf16>
    %256 = tpu.concatenate %254, %255 in 1 : vector<8x128xbf16>, vector<8x128xbf16> -> vector<8x256xbf16>
    %cst_70 = arith.constant dense<0.000000e+00> : vector<8x512xf32>
    %257 = tpu.matmul %256, %1, %cst_70 {dimension_numbers = #tpu.dot_dimension_numbers<[1], [0], [0], [1], [0, 0, 1, 1], [], []>} : vector<8x256xbf16>, vector<256x512xbf16>, vector<8x512xf32> -> vector<8x512xf32>
    %258 = vector.broadcast %3 : vector<1x512xf32> to vector<8x512xf32>
    %259 = arith.addf %257, %258 : vector<8x512xf32>
    %260 = vector.extract_strided_slice %259 {offsets = [0, 0], sizes = [8, 128], strides = [1, 1]} : vector<8x512xf32> to vector<8x128xf32>
    %261 = arith.negf %260 : vector<8x128xf32>
    %262 = math.exp %261 : vector<8x128xf32>
    %cst_71 = arith.constant 1.000000e+00 : f32
    %263 = vector.broadcast %cst_71 : f32 to vector<8x128xf32>
    %264 = arith.addf %263, %262 : vector<8x128xf32>
    %265 = arith.divf %263, %264 : vector<8x128xf32>
    %266 = vector.extract_strided_slice %259 {offsets = [0, 128], sizes = [8, 128], strides = [1, 1]} : vector<8x512xf32> to vector<8x128xf32>
    %267 = arith.negf %266 : vector<8x128xf32>
    %268 = math.exp %267 : vector<8x128xf32>
    %cst_72 = arith.constant 1.000000e+00 : f32
    %269 = vector.broadcast %cst_72 : f32 to vector<8x128xf32>
    %270 = arith.addf %269, %268 : vector<8x128xf32>
    %271 = arith.divf %269, %270 : vector<8x128xf32>
    %272 = vector.extract_strided_slice %259 {offsets = [0, 256], sizes = [8, 128], strides = [1, 1]} : vector<8x512xf32> to vector<8x128xf32>
    %273 = math.tanh %272 : vector<8x128xf32>
    %274 = vector.extract_strided_slice %259 {offsets = [0, 384], sizes = [8, 128], strides = [1, 1]} : vector<8x512xf32> to vector<8x128xf32>
    %275 = arith.negf %274 : vector<8x128xf32>
    %276 = math.exp %275 : vector<8x128xf32>
    %cst_73 = arith.constant 1.000000e+00 : f32
    %277 = vector.broadcast %cst_73 : f32 to vector<8x128xf32>
    %278 = arith.addf %277, %276 : vector<8x128xf32>
    %279 = arith.divf %277, %278 : vector<8x128xf32>
    %280 = arith.mulf %271, %210 : vector<8x128xf32>
    %281 = arith.mulf %265, %273 : vector<8x128xf32>
    %282 = arith.addf %280, %281 : vector<8x128xf32>
    %283 = math.tanh %282 : vector<8x128xf32>
    %284 = arith.mulf %279, %283 : vector<8x128xf32>
    %285 = arith.truncf %252 : vector<8x128xf32> to vector<8x128xbf16>
    %c3_74 = arith.constant 3 : index
    %c0_75 = arith.constant 0 : index
    %c0_76 = arith.constant 0 : index
    %286 = vector.load %arg5[%c3_74, %c0_75, %c0_76] : memref<8x8x128xbf16, #tpu.memory_space<vmem>>, vector<1x8x128xbf16>
    %287 = vector.shape_cast %286 : vector<1x8x128xbf16> to vector<8x128xbf16>
    %288 = vector.shape_cast %285 : vector<8x128xbf16> to vector<1x8x128xbf16>
    tpu.vector_store %arg5[%c3_74, %c0_75, %c0_76], %288 {strides = array<i32>} : memref<8x8x128xbf16, #tpu.memory_space<vmem>>, vector<1x8x128xbf16>,
    %289 = arith.truncf %284 : vector<8x128xf32> to vector<8x128xbf16>
    %c4_77 = arith.constant 4 : index
    %c0_78 = arith.constant 0 : index
    %c0_79 = arith.constant 0 : index
    %290 = vector.load %arg6[%c4_77, %c0_78, %c0_79] : memref<8x8x128xbf16, #tpu.memory_space<vmem>>, vector<1x8x128xbf16>
    %291 = vector.shape_cast %290 : vector<1x8x128xbf16> to vector<8x128xbf16>
    %292 = vector.shape_cast %289 : vector<8x128xbf16> to vector<1x8x128xbf16>
    tpu.vector_store %arg6[%c4_77, %c0_78, %c0_79], %292 {strides = array<i32>} : memref<8x8x128xbf16, #tpu.memory_space<vmem>>, vector<1x8x128xbf16>,
    %c4_80 = arith.constant 4 : index
    %c0_81 = arith.constant 0 : index
    %c0_82 = arith.constant 0 : index
    %293 = vector.load %arg0[%c4_80, %c0_81, %c0_82] : memref<8x8x128xbf16, #tpu.memory_space<vmem>>, vector<1x8x128xbf16>
    %294 = vector.shape_cast %293 : vector<1x8x128xbf16> to vector<8x128xbf16>
    %295 = arith.truncf %252 : vector<8x128xf32> to vector<8x128xbf16>
    %296 = tpu.concatenate %294, %295 in 1 : vector<8x128xbf16>, vector<8x128xbf16> -> vector<8x256xbf16>
    %cst_83 = arith.constant dense<0.000000e+00> : vector<8x512xf32>
    %297 = tpu.matmul %296, %0, %cst_83 {dimension_numbers = #tpu.dot_dimension_numbers<[1], [0], [0], [1], [0, 0, 1, 1], [], []>} : vector<8x256xbf16>, vector<256x512xbf16>, vector<8x512xf32> -> vector<8x512xf32>
    %298 = vector.broadcast %2 : vector<1x512xf32> to vector<8x512xf32>
    %299 = arith.addf %297, %298 : vector<8x512xf32>
    %300 = vector.extract_strided_slice %299 {offsets = [0, 0], sizes = [8, 128], strides = [1, 1]} : vector<8x512xf32> to vector<8x128xf32>
    %301 = arith.negf %300 : vector<8x128xf32>
    %302 = math.exp %301 : vector<8x128xf32>
    %cst_84 = arith.constant 1.000000e+00 : f32
    %303 = vector.broadcast %cst_84 : f32 to vector<8x128xf32>
    %304 = arith.addf %303, %302 : vector<8x128xf32>
    %305 = arith.divf %303, %304 : vector<8x128xf32>
    %306 = vector.extract_strided_slice %299 {offsets = [0, 128], sizes = [8, 128], strides = [1, 1]} : vector<8x512xf32> to vector<8x128xf32>
    %307 = arith.negf %306 : vector<8x128xf32>
    %308 = math.exp %307 : vector<8x128xf32>
    %cst_85 = arith.constant 1.000000e+00 : f32
    %309 = vector.broadcast %cst_85 : f32 to vector<8x128xf32>
    %310 = arith.addf %309, %308 : vector<8x128xf32>
    %311 = arith.divf %309, %310 : vector<8x128xf32>
    %312 = vector.extract_strided_slice %299 {offsets = [0, 256], sizes = [8, 128], strides = [1, 1]} : vector<8x512xf32> to vector<8x128xf32>
    %313 = math.tanh %312 : vector<8x128xf32>
    %314 = vector.extract_strided_slice %299 {offsets = [0, 384], sizes = [8, 128], strides = [1, 1]} : vector<8x512xf32> to vector<8x128xf32>
    %315 = arith.negf %314 : vector<8x128xf32>
    %316 = math.exp %315 : vector<8x128xf32>
    %cst_86 = arith.constant 1.000000e+00 : f32
    %317 = vector.broadcast %cst_86 : f32 to vector<8x128xf32>
    %318 = arith.addf %317, %316 : vector<8x128xf32>
    %319 = arith.divf %317, %318 : vector<8x128xf32>
    %320 = arith.mulf %311, %250 : vector<8x128xf32>
    %321 = arith.mulf %305, %313 : vector<8x128xf32>
    %322 = arith.addf %320, %321 : vector<8x128xf32>
    %323 = math.tanh %322 : vector<8x128xf32>
    %324 = arith.mulf %319, %323 : vector<8x128xf32>
    %c3_87 = arith.constant 3 : index
    %c0_88 = arith.constant 0 : index
    %c0_89 = arith.constant 0 : index
    %325 = vector.load %arg0[%c3_87, %c0_88, %c0_89] : memref<8x8x128xbf16, #tpu.memory_space<vmem>>, vector<1x8x128xbf16>
    %326 = vector.shape_cast %325 : vector<1x8x128xbf16> to vector<8x128xbf16>
    %327 = arith.truncf %284 : vector<8x128xf32> to vector<8x128xbf16>
    %328 = tpu.concatenate %326, %327 in 1 : vector<8x128xbf16>, vector<8x128xbf16> -> vector<8x256xbf16>
    %cst_90 = arith.constant dense<0.000000e+00> : vector<8x512xf32>
    %329 = tpu.matmul %328, %1, %cst_90 {dimension_numbers = #tpu.dot_dimension_numbers<[1], [0], [0], [1], [0, 0, 1, 1], [], []>} : vector<8x256xbf16>, vector<256x512xbf16>, vector<8x512xf32> -> vector<8x512xf32>
    %330 = vector.broadcast %3 : vector<1x512xf32> to vector<8x512xf32>
    %331 = arith.addf %329, %330 : vector<8x512xf32>
    %332 = vector.extract_strided_slice %331 {offsets = [0, 0], sizes = [8, 128], strides = [1, 1]} : vector<8x512xf32> to vector<8x128xf32>
    %333 = arith.negf %332 : vector<8x128xf32>
    %334 = math.exp %333 : vector<8x128xf32>
    %cst_91 = arith.constant 1.000000e+00 : f32
    %335 = vector.broadcast %cst_91 : f32 to vector<8x128xf32>
    %336 = arith.addf %335, %334 : vector<8x128xf32>
    %337 = arith.divf %335, %336 : vector<8x128xf32>
    %338 = vector.extract_strided_slice %331 {offsets = [0, 128], sizes = [8, 128], strides = [1, 1]} : vector<8x512xf32> to vector<8x128xf32>
    %339 = arith.negf %338 : vector<8x128xf32>
    %340 = math.exp %339 : vector<8x128xf32>
    %cst_92 = arith.constant 1.000000e+00 : f32
    %341 = vector.broadcast %cst_92 : f32 to vector<8x128xf32>
    %342 = arith.addf %341, %340 : vector<8x128xf32>
    %343 = arith.divf %341, %342 : vector<8x128xf32>
    %344 = vector.extract_strided_slice %331 {offsets = [0, 256], sizes = [8, 128], strides = [1, 1]} : vector<8x512xf32> to vector<8x128xf32>
    %345 = math.tanh %344 : vector<8x128xf32>
    %346 = vector.extract_strided_slice %331 {offsets = [0, 384], sizes = [8, 128], strides = [1, 1]} : vector<8x512xf32> to vector<8x128xf32>
    %347 = arith.negf %346 : vector<8x128xf32>
    %348 = math.exp %347 : vector<8x128xf32>
    %cst_93 = arith.constant 1.000000e+00 : f32
    %349 = vector.broadcast %cst_93 : f32 to vector<8x128xf32>
    %350 = arith.addf %349, %348 : vector<8x128xf32>
    %351 = arith.divf %349, %350 : vector<8x128xf32>
    %352 = arith.mulf %343, %282 : vector<8x128xf32>
    %353 = arith.mulf %337, %345 : vector<8x128xf32>
    %354 = arith.addf %352, %353 : vector<8x128xf32>
    %355 = math.tanh %354 : vector<8x128xf32>
    %356 = arith.mulf %351, %355 : vector<8x128xf32>
    %357 = arith.truncf %324 : vector<8x128xf32> to vector<8x128xbf16>
    %c4_94 = arith.constant 4 : index
    %c0_95 = arith.constant 0 : index
    %c0_96 = arith.constant 0 : index
    %358 = vector.load %arg5[%c4_94, %c0_95, %c0_96] : memref<8x8x128xbf16, #tpu.memory_space<vmem>>, vector<1x8x128xbf16>
    %359 = vector.shape_cast %358 : vector<1x8x128xbf16> to vector<8x128xbf16>
    %360 = vector.shape_cast %357 : vector<8x128xbf16> to vector<1x8x128xbf16>
    tpu.vector_store %arg5[%c4_94, %c0_95, %c0_96], %360 {strides = array<i32>} : memref<8x8x128xbf16, #tpu.memory_space<vmem>>, vector<1x8x128xbf16>,
    %361 = arith.truncf %356 : vector<8x128xf32> to vector<8x128xbf16>
    %c3_97 = arith.constant 3 : index
    %c0_98 = arith.constant 0 : index
    %c0_99 = arith.constant 0 : index
    %362 = vector.load %arg6[%c3_97, %c0_98, %c0_99] : memref<8x8x128xbf16, #tpu.memory_space<vmem>>, vector<1x8x128xbf16>
    %363 = vector.shape_cast %362 : vector<1x8x128xbf16> to vector<8x128xbf16>
    %364 = vector.shape_cast %361 : vector<8x128xbf16> to vector<1x8x128xbf16>
    tpu.vector_store %arg6[%c3_97, %c0_98, %c0_99], %364 {strides = array<i32>} : memref<8x8x128xbf16, #tpu.memory_space<vmem>>, vector<1x8x128xbf16>,
    %c5_100 = arith.constant 5 : index
    %c0_101 = arith.constant 0 : index
    %c0_102 = arith.constant 0 : index
    %365 = vector.load %arg0[%c5_100, %c0_101, %c0_102] : memref<8x8x128xbf16, #tpu.memory_space<vmem>>, vector<1x8x128xbf16>
    %366 = vector.shape_cast %365 : vector<1x8x128xbf16> to vector<8x128xbf16>
    %367 = arith.truncf %324 : vector<8x128xf32> to vector<8x128xbf16>
    %368 = tpu.concatenate %366, %367 in 1 : vector<8x128xbf16>, vector<8x128xbf16> -> vector<8x256xbf16>
    %cst_103 = arith.constant dense<0.000000e+00> : vector<8x512xf32>
    %369 = tpu.matmul %368, %0, %cst_103 {dimension_numbers = #tpu.dot_dimension_numbers<[1], [0], [0], [1], [0, 0, 1, 1], [], []>} : vector<8x256xbf16>, vector<256x512xbf16>, vector<8x512xf32> -> vector<8x512xf32>
    %370 = vector.broadcast %2 : vector<1x512xf32> to vector<8x512xf32>
    %371 = arith.addf %369, %370 : vector<8x512xf32>
    %372 = vector.extract_strided_slice %371 {offsets = [0, 0], sizes = [8, 128], strides = [1, 1]} : vector<8x512xf32> to vector<8x128xf32>
    %373 = arith.negf %372 : vector<8x128xf32>
    %374 = math.exp %373 : vector<8x128xf32>
    %cst_104 = arith.constant 1.000000e+00 : f32
    %375 = vector.broadcast %cst_104 : f32 to vector<8x128xf32>
    %376 = arith.addf %375, %374 : vector<8x128xf32>
    %377 = arith.divf %375, %376 : vector<8x128xf32>
    %378 = vector.extract_strided_slice %371 {offsets = [0, 128], sizes = [8, 128], strides = [1, 1]} : vector<8x512xf32> to vector<8x128xf32>
    %379 = arith.negf %378 : vector<8x128xf32>
    %380 = math.exp %379 : vector<8x128xf32>
    %cst_105 = arith.constant 1.000000e+00 : f32
    %381 = vector.broadcast %cst_105 : f32 to vector<8x128xf32>
    %382 = arith.addf %381, %380 : vector<8x128xf32>
    %383 = arith.divf %381, %382 : vector<8x128xf32>
    %384 = vector.extract_strided_slice %371 {offsets = [0, 256], sizes = [8, 128], strides = [1, 1]} : vector<8x512xf32> to vector<8x128xf32>
    %385 = math.tanh %384 : vector<8x128xf32>
    %386 = vector.extract_strided_slice %371 {offsets = [0, 384], sizes = [8, 128], strides = [1, 1]} : vector<8x512xf32> to vector<8x128xf32>
    %387 = arith.negf %386 : vector<8x128xf32>
    %388 = math.exp %387 : vector<8x128xf32>
    %cst_106 = arith.constant 1.000000e+00 : f32
    %389 = vector.broadcast %cst_106 : f32 to vector<8x128xf32>
    %390 = arith.addf %389, %388 : vector<8x128xf32>
    %391 = arith.divf %389, %390 : vector<8x128xf32>
    %392 = arith.mulf %383, %322 : vector<8x128xf32>
    %393 = arith.mulf %377, %385 : vector<8x128xf32>
    %394 = arith.addf %392, %393 : vector<8x128xf32>
    %395 = math.tanh %394 : vector<8x128xf32>
    %396 = arith.mulf %391, %395 : vector<8x128xf32>
    %c2_107 = arith.constant 2 : index
    %c0_108 = arith.constant 0 : index
    %c0_109 = arith.constant 0 : index
    %397 = vector.load %arg0[%c2_107, %c0_108, %c0_109] : memref<8x8x128xbf16, #tpu.memory_space<vmem>>, vector<1x8x128xbf16>
    %398 = vector.shape_cast %397 : vector<1x8x128xbf16> to vector<8x128xbf16>
    %399 = arith.truncf %356 : vector<8x128xf32> to vector<8x128xbf16>
    %400 = tpu.concatenate %398, %399 in 1 : vector<8x128xbf16>, vector<8x128xbf16> -> vector<8x256xbf16>
    %cst_110 = arith.constant dense<0.000000e+00> : vector<8x512xf32>
    %401 = tpu.matmul %400, %1, %cst_110 {dimension_numbers = #tpu.dot_dimension_numbers<[1], [0], [0], [1], [0, 0, 1, 1], [], []>} : vector<8x256xbf16>, vector<256x512xbf16>, vector<8x512xf32> -> vector<8x512xf32>
    %402 = vector.broadcast %3 : vector<1x512xf32> to vector<8x512xf32>
    %403 = arith.addf %401, %402 : vector<8x512xf32>
    %404 = vector.extract_strided_slice %403 {offsets = [0, 0], sizes = [8, 128], strides = [1, 1]} : vector<8x512xf32> to vector<8x128xf32>
    %405 = arith.negf %404 : vector<8x128xf32>
    %406 = math.exp %405 : vector<8x128xf32>
    %cst_111 = arith.constant 1.000000e+00 : f32
    %407 = vector.broadcast %cst_111 : f32 to vector<8x128xf32>
    %408 = arith.addf %407, %406 : vector<8x128xf32>
    %409 = arith.divf %407, %408 : vector<8x128xf32>
    %410 = vector.extract_strided_slice %403 {offsets = [0, 128], sizes = [8, 128], strides = [1, 1]} : vector<8x512xf32> to vector<8x128xf32>
    %411 = arith.negf %410 : vector<8x128xf32>
    %412 = math.exp %411 : vector<8x128xf32>
    %cst_112 = arith.constant 1.000000e+00 : f32
    %413 = vector.broadcast %cst_112 : f32 to vector<8x128xf32>
    %414 = arith.addf %413, %412 : vector<8x128xf32>
    %415 = arith.divf %413, %414 : vector<8x128xf32>
    %416 = vector.extract_strided_slice %403 {offsets = [0, 256], sizes = [8, 128], strides = [1, 1]} : vector<8x512xf32> to vector<8x128xf32>
    %417 = math.tanh %416 : vector<8x128xf32>
    %418 = vector.extract_strided_slice %403 {offsets = [0, 384], sizes = [8, 128], strides = [1, 1]} : vector<8x512xf32> to vector<8x128xf32>
    %419 = arith.negf %418 : vector<8x128xf32>
    %420 = math.exp %419 : vector<8x128xf32>
    %cst_113 = arith.constant 1.000000e+00 : f32
    %421 = vector.broadcast %cst_113 : f32 to vector<8x128xf32>
    %422 = arith.addf %421, %420 : vector<8x128xf32>
    %423 = arith.divf %421, %422 : vector<8x128xf32>
    %424 = arith.mulf %415, %354 : vector<8x128xf32>
    %425 = arith.mulf %409, %417 : vector<8x128xf32>
    %426 = arith.addf %424, %425 : vector<8x128xf32>
    %427 = math.tanh %426 : vector<8x128xf32>
    %428 = arith.mulf %423, %427 : vector<8x128xf32>
    %429 = arith.truncf %396 : vector<8x128xf32> to vector<8x128xbf16>
    %c5_114 = arith.constant 5 : index
    %c0_115 = arith.constant 0 : index
    %c0_116 = arith.constant 0 : index
    %430 = vector.load %arg5[%c5_114, %c0_115, %c0_116] : memref<8x8x128xbf16, #tpu.memory_space<vmem>>, vector<1x8x128xbf16>
    %431 = vector.shape_cast %430 : vector<1x8x128xbf16> to vector<8x128xbf16>
    %432 = vector.shape_cast %429 : vector<8x128xbf16> to vector<1x8x128xbf16>
    tpu.vector_store %arg5[%c5_114, %c0_115, %c0_116], %432 {strides = array<i32>} : memref<8x8x128xbf16, #tpu.memory_space<vmem>>, vector<1x8x128xbf16>,
    %433 = arith.truncf %428 : vector<8x128xf32> to vector<8x128xbf16>
    %c2_117 = arith.constant 2 : index
    %c0_118 = arith.constant 0 : index
    %c0_119 = arith.constant 0 : index
    %434 = vector.load %arg6[%c2_117, %c0_118, %c0_119] : memref<8x8x128xbf16, #tpu.memory_space<vmem>>, vector<1x8x128xbf16>
    %435 = vector.shape_cast %434 : vector<1x8x128xbf16> to vector<8x128xbf16>
    %436 = vector.shape_cast %433 : vector<8x128xbf16> to vector<1x8x128xbf16>
    tpu.vector_store %arg6[%c2_117, %c0_118, %c0_119], %436 {strides = array<i32>} : memref<8x8x128xbf16, #tpu.memory_space<vmem>>, vector<1x8x128xbf16>,
    %c6_120 = arith.constant 6 : index
    %c0_121 = arith.constant 0 : index
    %c0_122 = arith.constant 0 : index
    %437 = vector.load %arg0[%c6_120, %c0_121, %c0_122] : memref<8x8x128xbf16, #tpu.memory_space<vmem>>, vector<1x8x128xbf16>
    %438 = vector.shape_cast %437 : vector<1x8x128xbf16> to vector<8x128xbf16>
    %439 = arith.truncf %396 : vector<8x128xf32> to vector<8x128xbf16>
    %440 = tpu.concatenate %438, %439 in 1 : vector<8x128xbf16>, vector<8x128xbf16> -> vector<8x256xbf16>
    %cst_123 = arith.constant dense<0.000000e+00> : vector<8x512xf32>
    %441 = tpu.matmul %440, %0, %cst_123 {dimension_numbers = #tpu.dot_dimension_numbers<[1], [0], [0], [1], [0, 0, 1, 1], [], []>} : vector<8x256xbf16>, vector<256x512xbf16>, vector<8x512xf32> -> vector<8x512xf32>
    %442 = vector.broadcast %2 : vector<1x512xf32> to vector<8x512xf32>
    %443 = arith.addf %441, %442 : vector<8x512xf32>
    %444 = vector.extract_strided_slice %443 {offsets = [0, 0], sizes = [8, 128], strides = [1, 1]} : vector<8x512xf32> to vector<8x128xf32>
    %445 = arith.negf %444 : vector<8x128xf32>
    %446 = math.exp %445 : vector<8x128xf32>
    %cst_124 = arith.constant 1.000000e+00 : f32
    %447 = vector.broadcast %cst_124 : f32 to vector<8x128xf32>
    %448 = arith.addf %447, %446 : vector<8x128xf32>
    %449 = arith.divf %447, %448 : vector<8x128xf32>
    %450 = vector.extract_strided_slice %443 {offsets = [0, 128], sizes = [8, 128], strides = [1, 1]} : vector<8x512xf32> to vector<8x128xf32>
    %451 = arith.negf %450 : vector<8x128xf32>
    %452 = math.exp %451 : vector<8x128xf32>
    %cst_125 = arith.constant 1.000000e+00 : f32
    %453 = vector.broadcast %cst_125 : f32 to vector<8x128xf32>
    %454 = arith.addf %453, %452 : vector<8x128xf32>
    %455 = arith.divf %453, %454 : vector<8x128xf32>
    %456 = vector.extract_strided_slice %443 {offsets = [0, 256], sizes = [8, 128], strides = [1, 1]} : vector<8x512xf32> to vector<8x128xf32>
    %457 = math.tanh %456 : vector<8x128xf32>
    %458 = vector.extract_strided_slice %443 {offsets = [0, 384], sizes = [8, 128], strides = [1, 1]} : vector<8x512xf32> to vector<8x128xf32>
    %459 = arith.negf %458 : vector<8x128xf32>
    %460 = math.exp %459 : vector<8x128xf32>
    %cst_126 = arith.constant 1.000000e+00 : f32
    %461 = vector.broadcast %cst_126 : f32 to vector<8x128xf32>
    %462 = arith.addf %461, %460 : vector<8x128xf32>
    %463 = arith.divf %461, %462 : vector<8x128xf32>
    %464 = arith.mulf %455, %394 : vector<8x128xf32>
    %465 = arith.mulf %449, %457 : vector<8x128xf32>
    %466 = arith.addf %464, %465 : vector<8x128xf32>
    %467 = math.tanh %466 : vector<8x128xf32>
    %468 = arith.mulf %463, %467 : vector<8x128xf32>
    %c1_127 = arith.constant 1 : index
    %c0_128 = arith.constant 0 : index
    %c0_129 = arith.constant 0 : index
    %469 = vector.load %arg0[%c1_127, %c0_128, %c0_129] : memref<8x8x128xbf16, #tpu.memory_space<vmem>>, vector<1x8x128xbf16>
    %470 = vector.shape_cast %469 : vector<1x8x128xbf16> to vector<8x128xbf16>
    %471 = arith.truncf %428 : vector<8x128xf32> to vector<8x128xbf16>
    %472 = tpu.concatenate %470, %471 in 1 : vector<8x128xbf16>, vector<8x128xbf16> -> vector<8x256xbf16>
    %cst_130 = arith.constant dense<0.000000e+00> : vector<8x512xf32>
    %473 = tpu.matmul %472, %1, %cst_130 {dimension_numbers = #tpu.dot_dimension_numbers<[1], [0], [0], [1], [0, 0, 1, 1], [], []>} : vector<8x256xbf16>, vector<256x512xbf16>, vector<8x512xf32> -> vector<8x512xf32>
    %474 = vector.broadcast %3 : vector<1x512xf32> to vector<8x512xf32>
    %475 = arith.addf %473, %474 : vector<8x512xf32>
    %476 = vector.extract_strided_slice %475 {offsets = [0, 0], sizes = [8, 128], strides = [1, 1]} : vector<8x512xf32> to vector<8x128xf32>
    %477 = arith.negf %476 : vector<8x128xf32>
    %478 = math.exp %477 : vector<8x128xf32>
    %cst_131 = arith.constant 1.000000e+00 : f32
    %479 = vector.broadcast %cst_131 : f32 to vector<8x128xf32>
    %480 = arith.addf %479, %478 : vector<8x128xf32>
    %481 = arith.divf %479, %480 : vector<8x128xf32>
    %482 = vector.extract_strided_slice %475 {offsets = [0, 128], sizes = [8, 128], strides = [1, 1]} : vector<8x512xf32> to vector<8x128xf32>
    %483 = arith.negf %482 : vector<8x128xf32>
    %484 = math.exp %483 : vector<8x128xf32>
    %cst_132 = arith.constant 1.000000e+00 : f32
    %485 = vector.broadcast %cst_132 : f32 to vector<8x128xf32>
    %486 = arith.addf %485, %484 : vector<8x128xf32>
    %487 = arith.divf %485, %486 : vector<8x128xf32>
    %488 = vector.extract_strided_slice %475 {offsets = [0, 256], sizes = [8, 128], strides = [1, 1]} : vector<8x512xf32> to vector<8x128xf32>
    %489 = math.tanh %488 : vector<8x128xf32>
    %490 = vector.extract_strided_slice %475 {offsets = [0, 384], sizes = [8, 128], strides = [1, 1]} : vector<8x512xf32> to vector<8x128xf32>
    %491 = arith.negf %490 : vector<8x128xf32>
    %492 = math.exp %491 : vector<8x128xf32>
    %cst_133 = arith.constant 1.000000e+00 : f32
    %493 = vector.broadcast %cst_133 : f32 to vector<8x128xf32>
    %494 = arith.addf %493, %492 : vector<8x128xf32>
    %495 = arith.divf %493, %494 : vector<8x128xf32>
    %496 = arith.mulf %487, %426 : vector<8x128xf32>
    %497 = arith.mulf %481, %489 : vector<8x128xf32>
    %498 = arith.addf %496, %497 : vector<8x128xf32>
    %499 = math.tanh %498 : vector<8x128xf32>
    %500 = arith.mulf %495, %499 : vector<8x128xf32>
    %501 = arith.truncf %468 : vector<8x128xf32> to vector<8x128xbf16>
    %c6_134 = arith.constant 6 : index
    %c0_135 = arith.constant 0 : index
    %c0_136 = arith.constant 0 : index
    %502 = vector.load %arg5[%c6_134, %c0_135, %c0_136] : memref<8x8x128xbf16, #tpu.memory_space<vmem>>, vector<1x8x128xbf16>
    %503 = vector.shape_cast %502 : vector<1x8x128xbf16> to vector<8x128xbf16>
    %504 = vector.shape_cast %501 : vector<8x128xbf16> to vector<1x8x128xbf16>
    tpu.vector_store %arg5[%c6_134, %c0_135, %c0_136], %504 {strides = array<i32>} : memref<8x8x128xbf16, #tpu.memory_space<vmem>>, vector<1x8x128xbf16>,
    %505 = arith.truncf %500 : vector<8x128xf32> to vector<8x128xbf16>
    %c1_137 = arith.constant 1 : index
    %c0_138 = arith.constant 0 : index
    %c0_139 = arith.constant 0 : index
    %506 = vector.load %arg6[%c1_137, %c0_138, %c0_139] : memref<8x8x128xbf16, #tpu.memory_space<vmem>>, vector<1x8x128xbf16>
    %507 = vector.shape_cast %506 : vector<1x8x128xbf16> to vector<8x128xbf16>
    %508 = vector.shape_cast %505 : vector<8x128xbf16> to vector<1x8x128xbf16>
    tpu.vector_store %arg6[%c1_137, %c0_138, %c0_139], %508 {strides = array<i32>} : memref<8x8x128xbf16, #tpu.memory_space<vmem>>, vector<1x8x128xbf16>,
    %c7_140 = arith.constant 7 : index
    %c0_141 = arith.constant 0 : index
    %c0_142 = arith.constant 0 : index
    %509 = vector.load %arg0[%c7_140, %c0_141, %c0_142] : memref<8x8x128xbf16, #tpu.memory_space<vmem>>, vector<1x8x128xbf16>
    %510 = vector.shape_cast %509 : vector<1x8x128xbf16> to vector<8x128xbf16>
    %511 = arith.truncf %468 : vector<8x128xf32> to vector<8x128xbf16>
    %512 = tpu.concatenate %510, %511 in 1 : vector<8x128xbf16>, vector<8x128xbf16> -> vector<8x256xbf16>
    %cst_143 = arith.constant dense<0.000000e+00> : vector<8x512xf32>
    %513 = tpu.matmul %512, %0, %cst_143 {dimension_numbers = #tpu.dot_dimension_numbers<[1], [0], [0], [1], [0, 0, 1, 1], [], []>} : vector<8x256xbf16>, vector<256x512xbf16>, vector<8x512xf32> -> vector<8x512xf32>
    %514 = vector.broadcast %2 : vector<1x512xf32> to vector<8x512xf32>
    %515 = arith.addf %513, %514 : vector<8x512xf32>
    %516 = vector.extract_strided_slice %515 {offsets = [0, 0], sizes = [8, 128], strides = [1, 1]} : vector<8x512xf32> to vector<8x128xf32>
    %517 = arith.negf %516 : vector<8x128xf32>
    %518 = math.exp %517 : vector<8x128xf32>
    %cst_144 = arith.constant 1.000000e+00 : f32
    %519 = vector.broadcast %cst_144 : f32 to vector<8x128xf32>
    %520 = arith.addf %519, %518 : vector<8x128xf32>
    %521 = arith.divf %519, %520 : vector<8x128xf32>
    %522 = vector.extract_strided_slice %515 {offsets = [0, 128], sizes = [8, 128], strides = [1, 1]} : vector<8x512xf32> to vector<8x128xf32>
    %523 = arith.negf %522 : vector<8x128xf32>
    %524 = math.exp %523 : vector<8x128xf32>
    %cst_145 = arith.constant 1.000000e+00 : f32
    %525 = vector.broadcast %cst_145 : f32 to vector<8x128xf32>
    %526 = arith.addf %525, %524 : vector<8x128xf32>
    %527 = arith.divf %525, %526 : vector<8x128xf32>
    %528 = vector.extract_strided_slice %515 {offsets = [0, 256], sizes = [8, 128], strides = [1, 1]} : vector<8x512xf32> to vector<8x128xf32>
    %529 = math.tanh %528 : vector<8x128xf32>
    %530 = vector.extract_strided_slice %515 {offsets = [0, 384], sizes = [8, 128], strides = [1, 1]} : vector<8x512xf32> to vector<8x128xf32>
    %531 = arith.negf %530 : vector<8x128xf32>
    %532 = math.exp %531 : vector<8x128xf32>
    %cst_146 = arith.constant 1.000000e+00 : f32
    %533 = vector.broadcast %cst_146 : f32 to vector<8x128xf32>
    %534 = arith.addf %533, %532 : vector<8x128xf32>
    %535 = arith.divf %533, %534 : vector<8x128xf32>
    %536 = arith.mulf %527, %466 : vector<8x128xf32>
    %537 = arith.mulf %521, %529 : vector<8x128xf32>
    %538 = arith.addf %536, %537 : vector<8x128xf32>
    %539 = math.tanh %538 : vector<8x128xf32>
    %540 = arith.mulf %535, %539 : vector<8x128xf32>
    %c0_147 = arith.constant 0 : index
    %c0_148 = arith.constant 0 : index
    %c0_149 = arith.constant 0 : index
    %541 = vector.load %arg0[%c0_147, %c0_148, %c0_149] : memref<8x8x128xbf16, #tpu.memory_space<vmem>>, vector<1x8x128xbf16>
    %542 = vector.shape_cast %541 : vector<1x8x128xbf16> to vector<8x128xbf16>
    %543 = arith.truncf %500 : vector<8x128xf32> to vector<8x128xbf16>
    %544 = tpu.concatenate %542, %543 in 1 : vector<8x128xbf16>, vector<8x128xbf16> -> vector<8x256xbf16>
    %cst_150 = arith.constant dense<0.000000e+00> : vector<8x512xf32>
    %545 = tpu.matmul %544, %1, %cst_150 {dimension_numbers = #tpu.dot_dimension_numbers<[1], [0], [0], [1], [0, 0, 1, 1], [], []>} : vector<8x256xbf16>, vector<256x512xbf16>, vector<8x512xf32> -> vector<8x512xf32>
    %546 = vector.broadcast %3 : vector<1x512xf32> to vector<8x512xf32>
    %547 = arith.addf %545, %546 : vector<8x512xf32>
    %548 = vector.extract_strided_slice %547 {offsets = [0, 0], sizes = [8, 128], strides = [1, 1]} : vector<8x512xf32> to vector<8x128xf32>
    %549 = arith.negf %548 : vector<8x128xf32>
    %550 = math.exp %549 : vector<8x128xf32>
    %cst_151 = arith.constant 1.000000e+00 : f32
    %551 = vector.broadcast %cst_151 : f32 to vector<8x128xf32>
    %552 = arith.addf %551, %550 : vector<8x128xf32>
    %553 = arith.divf %551, %552 : vector<8x128xf32>
    %554 = vector.extract_strided_slice %547 {offsets = [0, 128], sizes = [8, 128], strides = [1, 1]} : vector<8x512xf32> to vector<8x128xf32>
    %555 = arith.negf %554 : vector<8x128xf32>
    %556 = math.exp %555 : vector<8x128xf32>
    %cst_152 = arith.constant 1.000000e+00 : f32
    %557 = vector.broadcast %cst_152 : f32 to vector<8x128xf32>
    %558 = arith.addf %557, %556 : vector<8x128xf32>
    %559 = arith.divf %557, %558 : vector<8x128xf32>
    %560 = vector.extract_strided_slice %547 {offsets = [0, 256], sizes = [8, 128], strides = [1, 1]} : vector<8x512xf32> to vector<8x128xf32>
    %561 = math.tanh %560 : vector<8x128xf32>
    %562 = vector.extract_strided_slice %547 {offsets = [0, 384], sizes = [8, 128], strides = [1, 1]} : vector<8x512xf32> to vector<8x128xf32>
    %563 = arith.negf %562 : vector<8x128xf32>
    %564 = math.exp %563 : vector<8x128xf32>
    %cst_153 = arith.constant 1.000000e+00 : f32
    %565 = vector.broadcast %cst_153 : f32 to vector<8x128xf32>
    %566 = arith.addf %565, %564 : vector<8x128xf32>
    %567 = arith.divf %565, %566 : vector<8x128xf32>
    %568 = arith.mulf %559, %498 : vector<8x128xf32>
    %569 = arith.mulf %553, %561 : vector<8x128xf32>
    %570 = arith.addf %568, %569 : vector<8x128xf32>
    %571 = math.tanh %570 : vector<8x128xf32>
    %572 = arith.mulf %567, %571 : vector<8x128xf32>
    %573 = arith.truncf %540 : vector<8x128xf32> to vector<8x128xbf16>
    %c7_154 = arith.constant 7 : index
    %c0_155 = arith.constant 0 : index
    %c0_156 = arith.constant 0 : index
    %574 = vector.load %arg5[%c7_154, %c0_155, %c0_156] : memref<8x8x128xbf16, #tpu.memory_space<vmem>>, vector<1x8x128xbf16>
    %575 = vector.shape_cast %574 : vector<1x8x128xbf16> to vector<8x128xbf16>
    %576 = vector.shape_cast %573 : vector<8x128xbf16> to vector<1x8x128xbf16>
    tpu.vector_store %arg5[%c7_154, %c0_155, %c0_156], %576 {strides = array<i32>} : memref<8x8x128xbf16, #tpu.memory_space<vmem>>, vector<1x8x128xbf16>,
    %577 = arith.truncf %572 : vector<8x128xf32> to vector<8x128xbf16>
    %c0_157 = arith.constant 0 : index
    %c0_158 = arith.constant 0 : index
    %c0_159 = arith.constant 0 : index
    %578 = vector.load %arg6[%c0_157, %c0_158, %c0_159] : memref<8x8x128xbf16, #tpu.memory_space<vmem>>, vector<1x8x128xbf16>
    %579 = vector.shape_cast %578 : vector<1x8x128xbf16> to vector<8x128xbf16>
    %580 = vector.shape_cast %577 : vector<8x128xbf16> to vector<1x8x128xbf16>
    tpu.vector_store %arg6[%c0_157, %c0_158, %c0_159], %580 {strides = array<i32>} : memref<8x8x128xbf16, #tpu.memory_space<vmem>>, vector<1x8x128xbf16>,
    return
  }
}

</mosaic_0001>

<bundles_post_ra>
// kernel: tpu_custom_call.1
= control target key start
LH: loop header
LB: loop body
LE: loop exit
PB: predicated region body
PF: predicated region fallthrough
CT: control target
= control target key end

     0   :  { %12 = vsyncpa [#allocation3], 0  ;;  %s5765_s0 = inlined_call_operand.hbm [shape: bf16[8,8,128], index: 0, kind: input, shape index: {}]   ;;  %s5766_s1 = inlined_call_operand.hbm [shape: bf16[256,512], index: 1, kind: input, shape index: {}]   ;;  %s5767_s2 = inlined_call_operand.vmem [shape: f32[1,512], index: 2, kind: input, shape index: {}]   ;;  %s5768_s3 = inlined_call_operand.hbm [shape: bf16[256,512], index: 3, kind: input, shape index: {}]   ;;  %s5769_s4 = inlined_call_operand.vmem [shape: f32[1,512], index: 4, kind: input, shape index: {}]   ;;  %s5770_s5 = inlined_call_operand.hbm [shape: bf16[8,8,128], index: 5, kind: output, shape index: {0}]   ;;  %s5771_s6 = inlined_call_operand.hbm [shape: bf16[8,8,128], index: 6, kind: output, shape index: {1}]  }
   0x1   :  { %13 = vsyncpa [#allocation6], 0 }
   0x2   :  { %14 = vsyncpa [#allocation4], 0 }
   0x3   :  { %15 = vsyncpa [#allocation10], 0  ;;  %s3685_s21 = smov [#allocation5]   ;;  %s3567_s25 = scalar_lea.hbm %s5766_s1, 8192 }
   0x4   :  { %s33_s22 = sshll.u32 %s3685_s21, 4  ;;  %p3568_p0 = scmp.ne.s32.totalorder %s5766_s1, %s3567_s25  ;;  %s34_s22 = int_to_ptr.vmem [resolvable:$true] %s33_s22 }
   0x5   :  { %p3571_p1 = scmp.lt.u32.totalorder %s3567_s25, %s5766_s1 }
   0x7   :  { %p3573_p2 = pnand %p3571_p1, %p3568_p0 }
   0x9   :  { %3576 = shalt.err (!%p3573_p2)
}
   0xa   :  { %s3577_s30 = scalar_lea.vmem %s34_s22, 8192  ;;  %p3582_p4 = scmp.lt.s32.totalorder %s34_s22, %s34_s22 }
   0xb   :  { %p3578_p3 = scmp.ne.s32.totalorder %s34_s22, %s3577_s30  ;;  %p3583_p5 = scmp.lt.s32.totalorder %s3577_s30, %s3577_s30 }
   0xd   :  { %p3584_p6 = por %p3583_p5, %p3582_p4 }
   0xf   :  { %p3585_p7 = pnand %p3584_p6, %p3578_p3 }
  0x11   :  { %3588 = shalt.err (!%p3585_p7)
}
  0x12   :  { %s3686_s7 = smov 256   ;;  %s3687_s8 = smov 16  }
  0x13   :  { %39 = dma.hbm_to_vmem [thread:$0]  %s5766_s1, 8192, %s34_s22, [#allocation6], %s3686_s7, %s3686_s7, %s3687_s8  }
  0x14   :  { %s3688_s11 = smov [#allocation2]   ;;  %s3589_s15 = scalar_lea.hbm %s5765_s0, 512 }
  0x15   :  { %s21_s12 = sshll.u32 %s3688_s11, 4  ;;  %p3590_p8 = scmp.ne.s32.totalorder %s5765_s0, %s3589_s15  ;;  %s22_s12 = int_to_ptr.vmem [resolvable:$true] %s21_s12 }
  0x16   :  { %p3593_p9 = scmp.lt.u32.totalorder %s3589_s15, %s5765_s0 }
  0x18   :  { %p3595_p10 = pnand %p3593_p9, %p3590_p8 }
  0x1a   :  { %3598 = shalt.err (!%p3595_p10)
}
  0x1b   :  { %s3599_s20 = scalar_lea.vmem %s22_s12, 512  ;;  %p3604_p12 = scmp.lt.s32.totalorder %s22_s12, %s22_s12 }
  0x1c   :  { %p3600_p11 = scmp.ne.s32.totalorder %s22_s12, %s3599_s20  ;;  %p3605_p13 = scmp.lt.s32.totalorder %s3599_s20, %s3599_s20 }
  0x1e   :  { %p3606_p0 = por %p3605_p13, %p3604_p12 }
  0x20   :  { %p3607_p1 = pnand %p3606_p0, %p3600_p11 }
  0x22   :  { %3610 = shalt.err (!%p3607_p1)
}
  0x23   :  { %s3689_s1 = smov 64   ;;  %s3690_s21 = smov 4  }
  0x24   :  { %27 = dma.hbm_to_vmem [thread:$0]  %s5765_s0, 512, %s22_s12, [#allocation3], %s3689_s1, %s3689_s1, %s3690_s21  }
  0x25   :  { %s3691_s24 = smov [#allocation7]   ;;  %s3611_s28 = scalar_lea.hbm %s5768_s3, 8192 }
  0x26   :  { %s47_s25 = sshll.u32 %s3691_s24, 4  ;;  %p3612_p2 = scmp.ne.s32.totalorder %s5768_s3, %s3611_s28  ;;  %s48_s25 = int_to_ptr.vmem [resolvable:$true] %s47_s25 }
  0x27   :  { %p3615_p3 = scmp.lt.u32.totalorder %s3611_s28, %s5768_s3 }
  0x29   :  { %p3617_p4 = pnand %p3615_p3, %p3612_p2 }
  0x2b   :  { %3620 = shalt.err (!%p3617_p4)
}
  0x2c   :  { %s3621_s11 = scalar_lea.vmem %s48_s25, 8192  ;;  %p3626_p6 = scmp.lt.s32.totalorder %s48_s25, %s48_s25 }
  0x2d   :  { %p3622_p5 = scmp.ne.s32.totalorder %s48_s25, %s3621_s11  ;;  %p3627_p7 = scmp.lt.s32.totalorder %s3621_s11, %s3621_s11 }
  0x2f   :  { %p3628_p8 = por %p3627_p7, %p3626_p6 }
  0x31   :  { %p3629_p9 = pnand %p3628_p8, %p3622_p5 }
  0x33   :  { %3632 = shalt.err (!%p3629_p9)
}
  0x34   :  { %53 = dma.hbm_to_vmem [thread:$0]  %s5768_s3, 8192, %s48_s25, [#allocation6], %s3686_s7, %s3686_s7, %s3687_s8  }
  0x35   :  { %3677 = dma.done.wait [#allocation3], 512  }
  0x36   :  { %3678 = vsyncadd [#allocation3], 4294966784 }
  0x37   :  { %3679 = dma.done.wait [#allocation6], 16384  }
  0x38   :  { %3680 = vsyncadd [#allocation6], 4294950912  ;;  %v5772_v0 = vmov 0   ;;  %v3777_v1 = vld [vmem:[#allocation5 + $0x4] ss:$16 sps:$4 sm:$0xff]  }
  0x39   :  { %570 = vmatprep.mubr.bf16.mxu0 %v5772_v0  ;;  %611 = vmatprep.mubr.bf16.mxu1 %v5772_v0  ;;  %v3779_v2 = vld [vmem:[#allocation5] ss:$16 sps:$4 sm:$0xff]   ;;  %v3782_v3 = vld [vmem:[#allocation5 + $0x24] ss:$16 sps:$4 sm:$0xff]   ;;  %v3790_v6 = vld [vmem:[#allocation5 + $0xc] ss:$16 sps:$4 sm:$0xff]  }
  0x3a   :  { %538 = vmatprep.subr.bf16.mxu0 %v3777_v1  ;;  %v3785_v4 = vld [vmem:[#allocation5 + $0x20] ss:$16 sps:$4 sm:$0xff]   ;;  %v3788_v5 = vld [vmem:[#allocation5 + $0x44] ss:$16 sps:$4 sm:$0xff]   ;;  %v3792_v7 = vld [vmem:[#allocation5 + $0x8] ss:$16 sps:$4 sm:$0xff]   ;;  %579 = vmatprep.subr.bf16.mxu1 %v3790_v6 }
  0x3b   :  { %539 = vmatpush1.bf16.msra.mxu0 %v3779_v2  ;;  %v3795_v8 = vld [vmem:[#allocation5 + $0x40] ss:$16 sps:$4 sm:$0xff]   ;;  %v3799_v9 = vld [vmem:[#allocation5 + $0x64] ss:$16 sps:$4 sm:$0xff]   ;;  %580 = vmatpush1.bf16.msra.mxu1 %v3792_v7  ;;  %v3802_v10 = vld [vmem:[#allocation5 + $0x2c] ss:$16 sps:$4 sm:$0xff]  }
  0x3c   :  { %540 = vmatprep.subr.bf16.mxu0 %v3782_v3  ;;  %v3804_v11 = vld [vmem:[#allocation5 + $0x28] ss:$16 sps:$4 sm:$0xff]   ;;  %581 = vmatprep.subr.bf16.mxu1 %v3802_v10  ;;  %v3808_v12 = vld [vmem:[#allocation5 + $0x60] ss:$16 sps:$4 sm:$0xff]   ;;  %v3810_v13 = vld [vmem:[#allocation5 + $0x84] ss:$16 sps:$4 sm:$0xff]  }
  0x3d   :  { %v3812_v14 = vld [vmem:[#allocation5 + $0x4c] ss:$16 sps:$4 sm:$0xff]   ;;  %v3816_v15 = vld [vmem:[#allocation5 + $0x48] ss:$16 sps:$4 sm:$0xff]   ;;  %v3822_v17 = vld [vmem:[#allocation5 + $0x80] ss:$16 sps:$4 sm:$0xff]  }
  0x3e   :  { %v3819_v16 = vld [vmem:[#allocation5 + $0x6c] ss:$16 sps:$4 sm:$0xff]   ;;  %v3825_v18 = vld [vmem:[#allocation5 + $0xa4] ss:$16 sps:$4 sm:$0xff]   ;;  %v3828_v19 = vld [vmem:[#allocation5 + $0x68] ss:$16 sps:$4 sm:$0xff]  }
  0x3f   :  { %541 = vmatpush1.bf16.msra.mxu0 %v3785_v4  ;;  %582 = vmatpush1.bf16.msra.mxu1 %v3804_v11  ;;  %v3831_v20 = vld [vmem:[#allocation5 + $0x8c] ss:$16 sps:$4 sm:$0xff]   ;;  %v3834_v21 = vld [vmem:[#allocation5 + $0xa0] ss:$16 sps:$4 sm:$0xff]   ;;  %v3836_v22 = vld [vmem:[#allocation5 + $0xc4] ss:$16 sps:$4 sm:$0xff]  }
  0x40   :  { %542 = vmatprep.subr.bf16.mxu0 %v3788_v5  ;;  %583 = vmatprep.subr.bf16.mxu1 %v3812_v14  ;;  %v3840_v23 = vld [vmem:[#allocation5 + $0x88] ss:$16 sps:$4 sm:$0xff]   ;;  %v3843_v24 = vld [vmem:[#allocation5 + $0xac] ss:$16 sps:$4 sm:$0xff]   ;;  %v3846_v25 = vld [vmem:[#allocation5 + $0xc0] ss:$16 sps:$4 sm:$0xff]  }
  0x41   :  { %v3849_v26 = vld [vmem:[#allocation5 + $0xe4] ss:$16 sps:$4 sm:$0xff]   ;;  %v3852_v27 = vld [vmem:[#allocation5 + $0xa8] ss:$16 sps:$4 sm:$0xff]   ;;  %v3855_v28 = vld [vmem:[#allocation5 + $0xcc] ss:$16 sps:$4 sm:$0xff]  }
  0x42   :  { %v3858_v29 = vld [vmem:[#allocation5 + $0xe0] ss:$16 sps:$4 sm:$0xff]   ;;  %v3860_v30 = vld [vmem:[#allocation5 + $0x104] ss:$16 sps:$4 sm:$0xff]   ;;  %v3864_v31 = vld [vmem:[#allocation5 + $0xc8] ss:$16 sps:$4 sm:$0xff]  }
  0x43   :  { %543 = vmatpush1.bf16.msra.mxu0 %v3795_v8  ;;  %584 = vmatpush1.bf16.msra.mxu1 %v3816_v15  ;;  %v3867_v32 = vld [vmem:[#allocation5 + $0xec] ss:$16 sps:$4 sm:$0xff]   ;;  %v3870_v33 = vld [vmem:[#allocation5 + $0x100] ss:$16 sps:$4 sm:$0xff]   ;;  %v3873_v34 = vld [vmem:[#allocation5 + $0x124] ss:$16 sps:$4 sm:$0xff]  }
  0x44   :  { %544 = vmatprep.subr.bf16.mxu0 %v3799_v9  ;;  %585 = vmatprep.subr.bf16.mxu1 %v3819_v16  ;;  %v3876_v35 = vld [vmem:[#allocation5 + $0xe8] ss:$16 sps:$4 sm:$0xff]   ;;  %v3879_v36 = vld [vmem:[#allocation5 + $0x10c] ss:$16 sps:$4 sm:$0xff]   ;;  %v3882_v37 = vld [vmem:[#allocation5 + $0x120] ss:$16 sps:$4 sm:$0xff]  }
  0x45   :  { %v3884_v38 = vld [vmem:[#allocation5 + $0x144] ss:$16 sps:$4 sm:$0xff]   ;;  %v3888_v39 = vld [vmem:[#allocation5 + $0x108] ss:$16 sps:$4 sm:$0xff]   ;;  %v3891_v40 = vld [vmem:[#allocation5 + $0x12c] ss:$16 sps:$4 sm:$0xff]  }
  0x46   :  { %v3893_v41 = vld [vmem:[#allocation5 + $0x140] ss:$16 sps:$4 sm:$0xff]   ;;  %v3896_v42 = vld [vmem:[#allocation5 + $0x164] ss:$16 sps:$4 sm:$0xff]   ;;  %v3900_v43 = vld [vmem:[#allocation5 + $0x128] ss:$16 sps:$4 sm:$0xff]  }
  0x47   :  { %545 = vmatpush1.bf16.msra.mxu0 %v3808_v12  ;;  %586 = vmatpush1.bf16.msra.mxu1 %v3828_v19  ;;  %v3903_v44 = vld [vmem:[#allocation5 + $0x14c] ss:$16 sps:$4 sm:$0xff]   ;;  %v3906_v45 = vld [vmem:[#allocation5 + $0x160] ss:$16 sps:$4 sm:$0xff]   ;;  %v3908_v46 = vld [vmem:[#allocation5 + $0x184] ss:$16 sps:$4 sm:$0xff]  }
  0x48   :  { %546 = vmatprep.subr.bf16.mxu0 %v3810_v13  ;;  %587 = vmatprep.subr.bf16.mxu1 %v3831_v20  ;;  %v3912_v47 = vld [vmem:[#allocation5 + $0x148] ss:$16 sps:$4 sm:$0xff]   ;;  %v3915_v48 = vld [vmem:[#allocation5 + $0x16c] ss:$16 sps:$4 sm:$0xff]   ;;  %v3917_v49 = vld [vmem:[#allocation5 + $0x180] ss:$16 sps:$4 sm:$0xff]  }
  0x49   :  { %v3920_v50 = vld [vmem:[#allocation5 + $0x1a4] ss:$16 sps:$4 sm:$0xff]   ;;  %v3924_v51 = vld [vmem:[#allocation5 + $0x168] ss:$16 sps:$4 sm:$0xff]   ;;  %v3927_v52 = vld [vmem:[#allocation5 + $0x18c] ss:$16 sps:$4 sm:$0xff]  }
  0x4a   :  { %v3930_v53 = vld [vmem:[#allocation5 + $0x1a0] ss:$16 sps:$4 sm:$0xff]   ;;  %v3932_v54 = vld [vmem:[#allocation5 + $0x1c4] ss:$16 sps:$4 sm:$0xff]   ;;  %v3936_v55 = vld [vmem:[#allocation5 + $0x188] ss:$16 sps:$4 sm:$0xff]  }
  0x4b   :  { %547 = vmatpush1.bf16.msra.mxu0 %v3822_v17  ;;  %588 = vmatpush1.bf16.msra.mxu1 %v3840_v23  ;;  %6284 = vst [vmem:[#allocation15_spill] sm:$0xff] %v3932_v54  ;;  %6285 = vst [vmem:[#allocation16_spill] sm:$0xff] %v3936_v55  ;;  %v3939_v56 = vld [vmem:[#allocation5 + $0x1ac] ss:$16 sps:$4 sm:$0xff]   ;;  %v3941_v57 = vld [vmem:[#allocation5 + $0x1c0] ss:$16 sps:$4 sm:$0xff]  }
  0x4c   :  { %548 = vmatprep.subr.bf16.mxu0 %v3825_v18  ;;  %589 = vmatprep.subr.bf16.mxu1 %v3843_v24  ;;  %6286 = vst [vmem:[#allocation17_spill] sm:$0xff] %v3939_v56  ;;  %6287 = vst [vmem:[#allocation18_spill] sm:$0xff] %v3941_v57  ;;  %v3944_v58 = vld [vmem:[#allocation5 + $0x1e4] ss:$16 sps:$4 sm:$0xff]   ;;  %v3948_v59 = vld [vmem:[#allocation5 + $0x1a8] ss:$16 sps:$4 sm:$0xff]  }
  0x4d   :  { %6288 = vst [vmem:[#allocation19_spill] sm:$0xff] %v3944_v58  ;;  %6289 = vst [vmem:[#allocation20_spill] sm:$0xff] %v3948_v59  ;;  %v3951_v60 = vld [vmem:[#allocation5 + $0x1cc] ss:$16 sps:$4 sm:$0xff]   ;;  %v3954_v61 = vld [vmem:[#allocation5 + $0x1e0] ss:$16 sps:$4 sm:$0xff]  }
  0x4e   :  { %6290 = vst [vmem:[#allocation21_spill] sm:$0xff] %v3951_v60  ;;  %6291 = vst [vmem:[#allocation22_spill] sm:$0xff] %v3954_v61  ;;  %v3956_v62 = vld [vmem:[#allocation7 + $0x4] ss:$16 sps:$4 sm:$0xff]   ;;  %v3960_v63 = vld [vmem:[#allocation5 + $0x1c8] ss:$16 sps:$4 sm:$0xff]  }
  0x4f   :  { %549 = vmatpush1.bf16.msra.mxu0 %v3834_v21  ;;  %590 = vmatpush1.bf16.msra.mxu1 %v3852_v27  ;;  %6292 = vst [vmem:[#allocation23_spill] sm:$0xff] %v3956_v62  ;;  %6293 = vst [vmem:[#allocation24_spill] sm:$0xff] %v3960_v63  ;;  %v3963_v0 = vld [vmem:[#allocation5 + $0x1ec] ss:$16 sps:$4 sm:$0xff]  }
  0x50   :  { %550 = vmatprep.subr.bf16.mxu0 %v3836_v22  ;;  %591 = vmatprep.subr.bf16.mxu1 %v3855_v28  ;;  %6294 = vst [vmem:[#allocation25_spill] sm:$0xff] %v3963_v0 }
  0x53   :  { %551 = vmatpush1.bf16.msra.mxu0 %v3846_v25  ;;  %592 = vmatpush1.bf16.msra.mxu1 %v3864_v31 }
  0x54   :  { %552 = vmatprep.subr.bf16.mxu0 %v3849_v26  ;;  %593 = vmatprep.subr.bf16.mxu1 %v3867_v32 }
  0x57   :  { %553 = vmatpush1.bf16.msra.mxu0 %v3858_v29  ;;  %594 = vmatpush1.bf16.msra.mxu1 %v3876_v35 }
  0x58   :  { %554 = vmatprep.subr.bf16.mxu0 %v3860_v30  ;;  %595 = vmatprep.subr.bf16.mxu1 %v3879_v36 }
  0x5b   :  { %555 = vmatpush1.bf16.msra.mxu0 %v3870_v33  ;;  %596 = vmatpush1.bf16.msra.mxu1 %v3888_v39 }
  0x5c   :  { %556 = vmatprep.subr.bf16.mxu0 %v3873_v34  ;;  %597 = vmatprep.subr.bf16.mxu1 %v3891_v40 }
  0x5f   :  { %557 = vmatpush1.bf16.msra.mxu0 %v3882_v37  ;;  %598 = vmatpush1.bf16.msra.mxu1 %v3900_v43 }
  0x60   :  { %558 = vmatprep.subr.bf16.mxu0 %v3884_v38  ;;  %599 = vmatprep.subr.bf16.mxu1 %v3903_v44 }
  0x63   :  { %559 = vmatpush1.bf16.msra.mxu0 %v3893_v41  ;;  %600 = vmatpush1.bf16.msra.mxu1 %v3912_v47 }
  0x64   :  { %560 = vmatprep.subr.bf16.mxu0 %v3896_v42  ;;  %601 = vmatprep.subr.bf16.mxu1 %v3915_v48 }
  0x67   :  { %561 = vmatpush1.bf16.msra.mxu0 %v3906_v45  ;;  %602 = vmatpush1.bf16.msra.mxu1 %v3924_v51 }
  0x68   :  { %562 = vmatprep.subr.bf16.mxu0 %v3908_v46  ;;  %603 = vmatprep.subr.bf16.mxu1 %v3927_v52 }
  0x6b   :  { %563 = vmatpush1.bf16.msra.mxu0 %v3917_v49  ;;  %604 = vmatpush1.bf16.msra.mxu1 %v3936_v55  ;;  %v196_v55 = vld [vmem:[#allocation2] sm:$0xf] }
  0x6c   :  { %564 = vmatprep.subr.bf16.mxu0 %v3920_v50  ;;  %605 = vmatprep.subr.bf16.mxu1 %v3939_v56  ;;  %v3965_v56 = vld [vmem:[#allocation7] ss:$16 sps:$4 sm:$0xff]  }
  0x6d   :  { %6295 = vst [vmem:[#allocation26_spill] sm:$0xff] %v3965_v56 }
  0x6f   :  { %565 = vmatpush1.bf16.msra.mxu0 %v3930_v53  ;;  %606 = vmatpush1.bf16.msra.mxu1 %v3948_v59  ;;  %v3975_v59 = vld [vmem:[#allocation7 + $0xc] ss:$16 sps:$4 sm:$0xff]  }
  0x70   :  { %566 = vmatprep.subr.bf16.mxu0 %v3932_v54  ;;  %607 = vmatprep.subr.bf16.mxu1 %v3951_v60  ;;  %6298 = vst [vmem:[#allocation29_spill] sm:$0xff] %v3975_v59  ;;  %v3978_v60 = vld [vmem:[#allocation7 + $0x20] ss:$16 sps:$4 sm:$0xff]   ;;  %v3980_v54 = vld [vmem:[#allocation7 + $0x44] ss:$16 sps:$4 sm:$0xff]  }
  0x71   :  { %6299 = vst [vmem:[#allocation30_spill] sm:$0xff] %v3978_v60  ;;  %6300 = vst [vmem:[#allocation31_spill] sm:$0xff] %v3980_v54 }
  0x73   :  { %567 = vmatpush1.bf16.msra.mxu0 %v3941_v57  ;;  %v3968_v57 = vld [vmem:[#allocation7 + $0x24] ss:$16 sps:$4 sm:$0xff]   ;;  %608 = vmatpush1.bf16.msra.mxu1 %v3960_v63  ;;  %v3985_v63 = vld [vmem:[#allocation7 + $0x8] ss:$16 sps:$4 sm:$0xff]  }
  0x74   :  { %568 = vmatprep.subr.bf16.mxu0 %v3944_v58  ;;  %6296 = vst [vmem:[#allocation27_spill] sm:$0xff] %v3968_v57  ;;  %v3972_v58 = vld [vmem:[#allocation5 + $0x1e8] ss:$16 sps:$4 sm:$0xff]   ;;  %609 = vmatprep.subr.bf16.mxu1 %v3963_v0  ;;  %v3988_v0 = vld [vmem:[#allocation7 + $0x2c] ss:$16 sps:$4 sm:$0xff]  }
  0x75   :  { %6297 = vst [vmem:[#allocation28_spill] sm:$0xff] %v3972_v58  ;;  %6302 = vst [vmem:[#allocation32_spill] sm:$0xff] %v3988_v0 }
  0x77   :  { %569 = vmatpush1.bf16.msra.mxu0 %v3954_v61  ;;  %v6301_v61 = vmov 0   ;;  %610 = vmatpush1.bf16.msra.mxu1 %v3972_v58  ;;  %v4000_v58 = vld [vmem:[#allocation7 + $0x4c] ss:$16 sps:$4 sm:$0xff]  }
  0x78   :  { %987 = vmatprep.subr.bf16.mxu0 %v3956_v62  ;;  %1028 = vmatprep.subr.bf16.mxu1 %v3975_v59  ;;  %v3990_v62 = vld [vmem:[#allocation7 + $0x40] ss:$16 sps:$4 sm:$0xff]   ;;  %6306 = vst [vmem:[#allocation36_spill] sm:$0xff] %v4000_v58 }
  0x79   :  { %6303 = vst [vmem:[#allocation33_spill] sm:$0xff] %v3990_v62  ;;  %v4004_v59 = vld [vmem:[#allocation7 + $0x60] ss:$16 sps:$4 sm:$0xff]  }
  0x7a   :  { %571 = vmatmul.mubr.bf16.vlgmr.msra.gmra.mrb[0].mxu0 %v196_v55  ;;  %612 = vmatmul.mubr.bf16.vlgmr.msra.gmra.mrb[0].mxu1 %v196_v55  ;;  %6307 = vst [vmem:[#allocation37_spill] sm:$0xff] %v4004_v59  ;;  %v4010_v55 = vld [vmem:[#allocation7 + $0x48] ss:$16 sps:$4 sm:$0xff]  }
  0x7b   :  { %988 = vmatpush1.bf16.msra.mxu0 %v3965_v56  ;;  %1019 = vmatprep.mubr.bf16.mxu0 %v6301_v61  ;;  %v3993_v56 = vld [vmem:[#allocation7 + $0x64] ss:$16 sps:$4 sm:$0xff]  }
  0x7c   :  { %989 = vmatprep.subr.bf16.mxu0 %v3968_v57  ;;  %6304 = vst [vmem:[#allocation34_spill] sm:$0xff] %v3993_v56  ;;  %1029 = vmatpush1.bf16.msra.mxu1 %v3985_v63  ;;  %v3997_v57 = vld [vmem:[#allocation7 + $0x28] ss:$16 sps:$4 sm:$0xff]  }
  0x7d   :  { %6305 = vst [vmem:[#allocation35_spill] sm:$0xff] %v3997_v57  ;;  %1030 = vmatprep.subr.bf16.mxu1 %v3988_v0  ;;  %1060 = vmatprep.mubr.bf16.mxu1 %v6301_v61  ;;  %v4015_v0 = vld [vmem:[#allocation7 + $0x80] ss:$16 sps:$4 sm:$0xff]   ;;  %v4018_v61 = vld [vmem:[#allocation7 + $0xa4] ss:$16 sps:$4 sm:$0xff]  }
  0x7e   :  { %6310 = vst [vmem:[#allocation40_spill] sm:$0xff] %v4015_v0  ;;  %6311 = vst [vmem:[#allocation41_spill] sm:$0xff] %v4018_v61 }
  0x7f   :  { %990 = vmatpush1.bf16.msra.mxu0 %v3978_v60  ;;  %v4006_v60 = vld [vmem:[#allocation7 + $0x84] ss:$16 sps:$4 sm:$0xff]  }
  0x80   :  { %991 = vmatprep.subr.bf16.mxu0 %v3980_v54  ;;  %6308 = vst [vmem:[#allocation38_spill] sm:$0xff] %v4006_v60  ;;  %1031 = vmatpush1.bf16.msra.mxu1 %v3997_v57  ;;  %v4013_v54 = vld [vmem:[#allocation7 + $0x6c] ss:$16 sps:$4 sm:$0xff]   ;;  %v4031_v57 = vld [vmem:[#allocation7 + $0xc4] ss:$16 sps:$4 sm:$0xff]  }
  0x81   :  { %1032 = vmatprep.subr.bf16.mxu1 %v4000_v58  ;;  %6309 = vst [vmem:[#allocation39_spill] sm:$0xff] %v4013_v54  ;;  %v4028_v58 = vld [vmem:[#allocation7 + $0xa0] ss:$16 sps:$4 sm:$0xff]   ;;  %6315 = vst [vmem:[#allocation45_spill] sm:$0xff] %v4031_v57 }
  0x82   :  { %6314 = vst [vmem:[#allocation44_spill] sm:$0xff] %v4028_v58 }
  0x83   :  { %992 = vmatpush1.bf16.msra.mxu0 %v3990_v62  ;;  %v4022_v62 = vld [vmem:[#allocation7 + $0x68] ss:$16 sps:$4 sm:$0xff]  }
  0x84   :  { %993 = vmatprep.subr.bf16.mxu0 %v3993_v56  ;;  %1033 = vmatpush1.bf16.msra.mxu1 %v4010_v55  ;;  %6312 = vst [vmem:[#allocation42_spill] sm:$0xff] %v4022_v62  ;;  %v4025_v56 = vld [vmem:[#allocation7 + $0x8c] ss:$16 sps:$4 sm:$0xff]  }
  0x85   :  { %1034 = vmatprep.subr.bf16.mxu1 %v4013_v54  ;;  %6313 = vst [vmem:[#allocation43_spill] sm:$0xff] %v4025_v56  ;;  %v4040_v54 = vld [vmem:[#allocation7 + $0xc0] ss:$16 sps:$4 sm:$0xff]  }
  0x86   :  { %6318 = vst [vmem:[#allocation48_spill] sm:$0xff] %v4040_v54 }
  0x87   :  { %994 = vmatpush1.bf16.msra.mxu0 %v4004_v59  ;;  %v4034_v59 = vld [vmem:[#allocation7 + $0x88] ss:$16 sps:$4 sm:$0xff]  }
  0x88   :  { %995 = vmatprep.subr.bf16.mxu0 %v4006_v60  ;;  %1035 = vmatpush1.bf16.msra.mxu1 %v4022_v62  ;;  %6316 = vst [vmem:[#allocation46_spill] sm:$0xff] %v4034_v59  ;;  %v4037_v60 = vld [vmem:[#allocation7 + $0xac] ss:$16 sps:$4 sm:$0xff]  }
  0x89   :  { %1036 = vmatprep.subr.bf16.mxu1 %v4025_v56  ;;  %6317 = vst [vmem:[#allocation47_spill] sm:$0xff] %v4037_v60  ;;  %v4049_v62 = vld [vmem:[#allocation7 + $0xcc] ss:$16 sps:$4 sm:$0xff]   ;;  %v4052_v56 = vld [vmem:[#allocation7 + $0xe0] ss:$16 sps:$4 sm:$0xff]  }
  0x8a   :  { %6321 = vst [vmem:[#allocation51_spill] sm:$0xff] %v4049_v62  ;;  %6322 = vst [vmem:[#allocation52_spill] sm:$0xff] %v4052_v56 }
  0x8b   :  { %996 = vmatpush1.bf16.msra.mxu0 %v4015_v0  ;;  %v4043_v0 = vld [vmem:[#allocation7 + $0xe4] ss:$16 sps:$4 sm:$0xff]  }
  0x8c   :  { %997 = vmatprep.subr.bf16.mxu0 %v4018_v61  ;;  %6319 = vst [vmem:[#allocation49_spill] sm:$0xff] %v4043_v0  ;;  %1037 = vmatpush1.bf16.msra.mxu1 %v4034_v59  ;;  %v4046_v61 = vld [vmem:[#allocation7 + $0xa8] ss:$16 sps:$4 sm:$0xff]   ;;  %v4061_v59 = vld [vmem:[#allocation7 + $0xec] ss:$16 sps:$4 sm:$0xff]  }
  0x8d   :  { %6320 = vst [vmem:[#allocation50_spill] sm:$0xff] %v4046_v61  ;;  %1038 = vmatprep.subr.bf16.mxu1 %v4037_v60  ;;  %6325 = vst [vmem:[#allocation55_spill] sm:$0xff] %v4061_v59  ;;  %v4064_v60 = vld [vmem:[#allocation7 + $0x100] ss:$16 sps:$4 sm:$0xff]  }
  0x8e   :  { %6326 = vst [vmem:[#allocation56_spill] sm:$0xff] %v4064_v60 }
  0x8f   :  { %998 = vmatpush1.bf16.msra.mxu0 %v4028_v58  ;;  %v4055_v58 = vld [vmem:[#allocation7 + $0x104] ss:$16 sps:$4 sm:$0xff]  }
  0x90   :  { %999 = vmatprep.subr.bf16.mxu0 %v4031_v57  ;;  %6323 = vst [vmem:[#allocation53_spill] sm:$0xff] %v4055_v58  ;;  %1039 = vmatpush1.bf16.msra.mxu1 %v4046_v61  ;;  %v4058_v57 = vld [vmem:[#allocation7 + $0xc8] ss:$16 sps:$4 sm:$0xff]   ;;  %v4073_v61 = vld [vmem:[#allocation7 + $0x10c] ss:$16 sps:$4 sm:$0xff]  }
  0x91   :  { %6324 = vst [vmem:[#allocation54_spill] sm:$0xff] %v4058_v57  ;;  %1040 = vmatprep.subr.bf16.mxu1 %v4049_v62  ;;  %6329 = vst [vmem:[#allocation59_spill] sm:$0xff] %v4073_v61  ;;  %v4076_v62 = vld [vmem:[#allocation7 + $0x120] ss:$16 sps:$4 sm:$0xff]  }
  0x92   :  { %6330 = vst [vmem:[#allocation60_spill] sm:$0xff] %v4076_v62 }
  0x93   :  { %1000 = vmatpush1.bf16.msra.mxu0 %v4040_v54  ;;  %v4067_v54 = vld [vmem:[#allocation7 + $0x124] ss:$16 sps:$4 sm:$0xff]  }
  0x94   :  { %1001 = vmatprep.subr.bf16.mxu0 %v4043_v0  ;;  %6327 = vst [vmem:[#allocation57_spill] sm:$0xff] %v4067_v54  ;;  %1041 = vmatpush1.bf16.msra.mxu1 %v4058_v57  ;;  %v4070_v0 = vld [vmem:[#allocation7 + $0xe8] ss:$16 sps:$4 sm:$0xff]   ;;  %v4085_v57 = vld [vmem:[#allocation7 + $0x12c] ss:$16 sps:$4 sm:$0xff]  }
  0x95   :  { %6328 = vst [vmem:[#allocation58_spill] sm:$0xff] %v4070_v0  ;;  %1042 = vmatprep.subr.bf16.mxu1 %v4061_v59  ;;  %6333 = vst [vmem:[#allocation63_spill] sm:$0xff] %v4085_v57  ;;  %v4088_v59 = vld [vmem:[#allocation7 + $0x140] ss:$16 sps:$4 sm:$0xff]  }
  0x96   :  { %6334 = vst [vmem:[#allocation64_spill] sm:$0xff] %v4088_v59 }
  0x97   :  { %1002 = vmatpush1.bf16.msra.mxu0 %v4052_v56  ;;  %v4079_v56 = vld [vmem:[#allocation7 + $0x144] ss:$16 sps:$4 sm:$0xff]  }
  0x98   :  { %1003 = vmatprep.subr.bf16.mxu0 %v4055_v58  ;;  %6331 = vst [vmem:[#allocation61_spill] sm:$0xff] %v4079_v56  ;;  %1043 = vmatpush1.bf16.msra.mxu1 %v4070_v0  ;;  %v4082_v58 = vld [vmem:[#allocation7 + $0x108] ss:$16 sps:$4 sm:$0xff]   ;;  %v4097_v0 = vld [vmem:[#allocation7 + $0x14c] ss:$16 sps:$4 sm:$0xff]  }
  0x99   :  { %6332 = vst [vmem:[#allocation62_spill] sm:$0xff] %v4082_v58  ;;  %1044 = vmatprep.subr.bf16.mxu1 %v4073_v61  ;;  %6337 = vst [vmem:[#allocation67_spill] sm:$0xff] %v4097_v0  ;;  %v4100_v61 = vld [vmem:[#allocation7 + $0x160] ss:$16 sps:$4 sm:$0xff]  }
  0x9a   :  { %6338 = vst [vmem:[#allocation68_spill] sm:$0xff] %v4100_v61 }
  0x9b   :  { %1004 = vmatpush1.bf16.msra.mxu0 %v4064_v60  ;;  %v4091_v60 = vld [vmem:[#allocation7 + $0x164] ss:$16 sps:$4 sm:$0xff]  }
  0x9c   :  { %1005 = vmatprep.subr.bf16.mxu0 %v4067_v54  ;;  %6335 = vst [vmem:[#allocation65_spill] sm:$0xff] %v4091_v60  ;;  %1045 = vmatpush1.bf16.msra.mxu1 %v4082_v58  ;;  %v4094_v54 = vld [vmem:[#allocation7 + $0x128] ss:$16 sps:$4 sm:$0xff]   ;;  %v4109_v58 = vld [vmem:[#allocation7 + $0x16c] ss:$16 sps:$4 sm:$0xff]  }
  0x9d   :  { %6336 = vst [vmem:[#allocation66_spill] sm:$0xff] %v4094_v54  ;;  %1046 = vmatprep.subr.bf16.mxu1 %v4085_v57  ;;  %6341 = vst [vmem:[#allocation71_spill] sm:$0xff] %v4109_v58  ;;  %v4112_v57 = vld [vmem:[#allocation7 + $0x180] ss:$16 sps:$4 sm:$0xff]  }
  0x9e   :  { %6342 = vst [vmem:[#allocation72_spill] sm:$0xff] %v4112_v57 }
  0x9f   :  { %1006 = vmatpush1.bf16.msra.mxu0 %v4076_v62  ;;  %v4103_v62 = vld [vmem:[#allocation7 + $0x184] ss:$16 sps:$4 sm:$0xff]  }
  0xa0   :  { %1007 = vmatprep.subr.bf16.mxu0 %v4079_v56  ;;  %6339 = vst [vmem:[#allocation69_spill] sm:$0xff] %v4103_v62  ;;  %1047 = vmatpush1.bf16.msra.mxu1 %v4094_v54  ;;  %v4106_v56 = vld [vmem:[#allocation7 + $0x148] ss:$16 sps:$4 sm:$0xff]   ;;  %v4121_v54 = vld [vmem:[#allocation7 + $0x18c] ss:$16 sps:$4 sm:$0xff]  }
  0xa1   :  { %6340 = vst [vmem:[#allocation70_spill] sm:$0xff] %v4106_v56  ;;  %1048 = vmatprep.subr.bf16.mxu1 %v4097_v0  ;;  %6345 = vst [vmem:[#allocation75_spill] sm:$0xff] %v4121_v54  ;;  %v4124_v0 = vld [vmem:[#allocation7 + $0x1a0] ss:$16 sps:$4 sm:$0xff]  }
  0xa2   :  { %6346 = vst [vmem:[#allocation76_spill] sm:$0xff] %v4124_v0 }
  0xa3   :  { %1008 = vmatpush1.bf16.msra.mxu0 %v4088_v59  ;;  %v4115_v59 = vld [vmem:[#allocation7 + $0x1a4] ss:$16 sps:$4 sm:$0xff]  }
  0xa4   :  { %1009 = vmatprep.subr.bf16.mxu0 %v4091_v60  ;;  %6343 = vst [vmem:[#allocation73_spill] sm:$0xff] %v4115_v59  ;;  %1049 = vmatpush1.bf16.msra.mxu1 %v4106_v56  ;;  %v4118_v60 = vld [vmem:[#allocation7 + $0x168] ss:$16 sps:$4 sm:$0xff]   ;;  %v4133_v56 = vld [vmem:[#allocation7 + $0x1ac] ss:$16 sps:$4 sm:$0xff]  }
  0xa5   :  { %6344 = vst [vmem:[#allocation74_spill] sm:$0xff] %v4118_v60  ;;  %1050 = vmatprep.subr.bf16.mxu1 %v4109_v58  ;;  %6349 = vst [vmem:[#allocation79_spill] sm:$0xff] %v4133_v56  ;;  %v4136_v58 = vld [vmem:[#allocation7 + $0x1c0] ss:$16 sps:$4 sm:$0xff]  }
  0xa7   :  { %1010 = vmatpush1.bf16.msra.mxu0 %v4100_v61  ;;  %v4127_v61 = vld [vmem:[#allocation7 + $0x1c4] ss:$16 sps:$4 sm:$0xff]  }
  0xa8   :  { %1011 = vmatprep.subr.bf16.mxu0 %v4103_v62  ;;  %6347 = vst [vmem:[#allocation77_spill] sm:$0xff] %v4127_v61  ;;  %1051 = vmatpush1.bf16.msra.mxu1 %v4118_v60  ;;  %v4130_v62 = vld [vmem:[#allocation7 + $0x188] ss:$16 sps:$4 sm:$0xff]   ;;  %v4145_v60 = vld [vmem:[#allocation7 + $0x1cc] ss:$16 sps:$4 sm:$0xff]  }
  0xa9   :  { %6348 = vst [vmem:[#allocation78_spill] sm:$0xff] %v4130_v62  ;;  %1052 = vmatprep.subr.bf16.mxu1 %v4121_v54  ;;  %6350 = vst [vmem:[#allocation80_spill] sm:$0xff] %v4145_v60  ;;  %v4148_v54 = vld [vmem:[#allocation7 + $0x1e0] ss:$16 sps:$4 sm:$0xff]  }
  0xab   :  { %1012 = vmatpush1.bf16.msra.mxu0 %v4112_v57  ;;  %v4139_v57 = vld [vmem:[#allocation7 + $0x1e4] ss:$16 sps:$4 sm:$0xff]  }
  0xac   :  { %1013 = vmatprep.subr.bf16.mxu0 %v4115_v59  ;;  %1053 = vmatpush1.bf16.msra.mxu1 %v4130_v62  ;;  %v4142_v59 = vld [vmem:[#allocation7 + $0x1a8] ss:$16 sps:$4 sm:$0xff]   ;;  %v645_v62 = vld [vmem:[#allocation2 + $0x1c] sm:$0xf] }
  0xad   :  { %1054 = vmatprep.subr.bf16.mxu1 %v4133_v56  ;;  %v4159_v56 = vld [vmem:[#allocation7 + $0x1e8] ss:$16 sps:$4 sm:$0xff]  }
  0xaf   :  { %1014 = vmatpush1.bf16.msra.mxu0 %v4124_v0  ;;  %v4152_v0 = vld [vmem:[#allocation7 + $0x1c8] ss:$16 sps:$4 sm:$0xff]  }
  0xb0   :  { %1015 = vmatprep.subr.bf16.mxu0 %v4127_v61  ;;  %1055 = vmatpush1.bf16.msra.mxu1 %v4142_v59  ;;  %v4155_v61 = vld [vmem:[#allocation7 + $0x1ec] ss:$16 sps:$4 sm:$0xff]  }
  0xb1   :  { %1056 = vmatprep.subr.bf16.mxu1 %v4145_v60 }
  0xb3   :  { %1016 = vmatpush1.bf16.msra.mxu0 %v4136_v58 }
  0xb4   :  { %1017 = vmatprep.subr.bf16.mxu0 %v4139_v57  ;;  %1057 = vmatpush1.bf16.msra.mxu1 %v4152_v0 }
  0xb5   :  { %1058 = vmatprep.subr.bf16.mxu1 %v4155_v61 }
  0xb7   :  { %1018 = vmatpush1.bf16.msra.mxu0 %v4148_v54 }
  0xb8   :  { %1100 = vmatprep.subr.bf16.mxu0 %v3777_v1  ;;  %1059 = vmatpush1.bf16.msra.mxu1 %v4159_v56  ;;  %v6351_v1 = vld [vmem:[#allocation15_spill] sm:$0xff] }
  0xb9   :  { %1141 = vmatprep.subr.bf16.mxu1 %v3790_v6  ;;  %v6356_v6 = vld [vmem:[#allocation20_spill] sm:$0xff] }
  0xba   :  { %1020 = vmatmul.mubr.bf16.vlgmr.msra.gmra.mrb[4].mxu0 %v645_v62 }
  0xbb   :  { %1101 = vmatpush1.bf16.msra.mxu0 %v3779_v2  ;;  %1061 = vmatmul.mubr.bf16.vlgmr.msra.gmra.mrb[4].mxu1 %v645_v62  ;;  %v6352_v2 = vld [vmem:[#allocation16_spill] sm:$0xff] }
  0xbc   :  { %1102 = vmatprep.subr.bf16.mxu0 %v3782_v3  ;;  %1142 = vmatpush1.bf16.msra.mxu1 %v3792_v7  ;;  %v6353_v3 = vld [vmem:[#allocation17_spill] sm:$0xff] }
  0xbd   :  { %1143 = vmatprep.subr.bf16.mxu1 %v3802_v10  ;;  %v6357_v7 = vld [vmem:[#allocation21_spill] sm:$0xff]  ;;  %v6360_v10 = vld [vmem:[#allocation24_spill] sm:$0xff] }
  0xbf   :  { %1103 = vmatpush1.bf16.msra.mxu0 %v3785_v4  ;;  %v6354_v4 = vld [vmem:[#allocation18_spill] sm:$0xff] }
  0xc0   :  { %1104 = vmatprep.subr.bf16.mxu0 %v3788_v5  ;;  %1144 = vmatpush1.bf16.msra.mxu1 %v3804_v11  ;;  %v6355_v5 = vld [vmem:[#allocation19_spill] sm:$0xff]  ;;  %v6361_v11 = vld [vmem:[#allocation25_spill] sm:$0xff] }
  0xc1   :  { %1145 = vmatprep.subr.bf16.mxu1 %v3812_v14  ;;  %v198_v14 = vlaneseq }
  0xc3   :  { %1105 = vmatpush1.bf16.msra.mxu0 %v3795_v8  ;;  %v6358_v8 = vld [vmem:[#allocation22_spill] sm:$0xff] }
  0xc4   :  { %1106 = vmatprep.subr.bf16.mxu0 %v3799_v9  ;;  %1146 = vmatpush1.bf16.msra.mxu1 %v3816_v15  ;;  %v6359_v9 = vld [vmem:[#allocation23_spill] sm:$0xff]  ;;  %v4229_v15 = vshrl.u32 %v198_v14, 7 }
  0xc5   :  { %1147 = vmatprep.subr.bf16.mxu1 %v3819_v16 }
  0xc6   :  { %v200_v16 = vsub.s32 0, %v4229_v15 }
  0xc7   :  { %1107 = vmatpush1.bf16.msra.mxu0 %v3808_v12  ;;  %v6362_v12 = vld [vmem:[#allocation28_spill] sm:$0xff] }
  0xc8   :  { %1108 = vmatprep.subr.bf16.mxu0 %v3810_v13  ;;  %1148 = vmatpush1.bf16.msra.mxu1 %v3828_v19  ;;  %v6363_v13 = vld [vmem:[#allocation29_spill] sm:$0xff] }
  0xc9   :  { %1149 = vmatprep.subr.bf16.mxu1 %v3831_v20 }
  0xcb   :  { %1109 = vmatpush1.bf16.msra.mxu0 %v3822_v17  ;;  %v194_v17 = vld [vmem:[%s5767_s2] sm:$0xf] }
  0xcc   :  { %1110 = vmatprep.subr.bf16.mxu0 %v3825_v18  ;;  %1150 = vmatpush1.bf16.msra.mxu1 %v3840_v23  ;;  %v204_v18 = vsub.s32 1, %v4229_v15  ;;  %v4238_v19 = vrot.slane %v194_v17, %v200_v16 }
  0xcd   :  { %1151 = vmatprep.subr.bf16.mxu1 %v3843_v24 }
  0xce   :  { %6364 = vst [vmem:[#allocation15_spill] sm:$0xff] %v4238_v19  ;;  %v4242_v20 = vrot.slane %v194_v17, %v204_v18 }
  0xcf   :  { %1111 = vmatpush1.bf16.msra.mxu0 %v3834_v21  ;;  %v212_v21 = vsub.s32 3, %v4229_v15 }
  0xd0   :  { %1112 = vmatprep.subr.bf16.mxu0 %v3836_v22  ;;  %1152 = vmatpush1.bf16.msra.mxu1 %v3852_v27 }
  0xd1   :  { %1153 = vmatprep.subr.bf16.mxu1 %v3855_v28 }
  0xd3   :  { %1113 = vmatpush1.bf16.msra.mxu0 %v3846_v25 }
  0xd4   :  { %1114 = vmatprep.subr.bf16.mxu0 %v3849_v26  ;;  %1154 = vmatpush1.bf16.msra.mxu1 %v3864_v31  ;;  %v208_v31 = vsub.s32 2, %v4229_v15  ;;  %v6394_v15 = vld [vmem:[#allocation58_spill] sm:$0xff] }
  0xd5   :  { %1155 = vmatprep.subr.bf16.mxu1 %v3867_v32 }
  0xd7   :  { %1115 = vmatpush1.bf16.msra.mxu0 %v3858_v29  ;;  %v4249_v29 = vrot.slane %v194_v17, %v212_v21 }
  0xd8   :  { %1116 = vmatprep.subr.bf16.mxu0 %v3860_v30  ;;  %1156 = vmatpush1.bf16.msra.mxu1 %v3876_v35 }
  0xd9   :  { %1157 = vmatprep.subr.bf16.mxu1 %v3879_v36  ;;  %v4255_v36 = vrot.slane %v194_v17, %v208_v31 }
  0xdb   :  { %1117 = vmatpush1.bf16.msra.mxu0 %v3870_v33 }
  0xdc   :  { %1118 = vmatprep.subr.bf16.mxu0 %v3873_v34  ;;  %1158 = vmatpush1.bf16.msra.mxu1 %v3888_v39 }
  0xdd   :  { %1159 = vmatprep.subr.bf16.mxu1 %v3891_v40 }
  0xdf   :  { %1119 = vmatpush1.bf16.msra.mxu0 %v3882_v37 }
  0xe0   :  { %1120 = vmatprep.subr.bf16.mxu0 %v3884_v38  ;;  %1160 = vmatpush1.bf16.msra.mxu1 %v3900_v43 }
  0xe1   :  { %1161 = vmatprep.subr.bf16.mxu1 %v3903_v44 }
  0xe3   :  { %1121 = vmatpush1.bf16.msra.mxu0 %v3893_v41 }
  0xe4   :  { %1122 = vmatprep.subr.bf16.mxu0 %v3896_v42  ;;  %1162 = vmatpush1.bf16.msra.mxu1 %v3912_v47 }
  0xe5   :  { %1163 = vmatprep.subr.bf16.mxu1 %v3915_v48 }
  0xe7   :  { %1123 = vmatpush1.bf16.msra.mxu0 %v3906_v45 }
  0xe8   :  { %1124 = vmatprep.subr.bf16.mxu0 %v3908_v46  ;;  %1164 = vmatpush1.bf16.msra.mxu1 %v3924_v51 }
  0xe9   :  { %1165 = vmatprep.subr.bf16.mxu1 %v3927_v52 }
  0xeb   :  { %1125 = vmatpush1.bf16.msra.mxu0 %v3917_v49 }
  0xec   :  { %1126 = vmatprep.subr.bf16.mxu0 %v3920_v50  ;;  %1166 = vmatpush1.bf16.msra.mxu1 %v6352_v2 }
  0xed   :  { %1167 = vmatprep.subr.bf16.mxu1 %v6353_v3 }
  0xef   :  { %1127 = vmatpush1.bf16.msra.mxu0 %v3930_v53 }
  0xf0   :  { %1128 = vmatprep.subr.bf16.mxu0 %v6351_v1  ;;  %1168 = vmatpush1.bf16.msra.mxu1 %v6356_v6 }
  0xf1   :  { %1169 = vmatprep.subr.bf16.mxu1 %v6357_v7 }
  0xf3   :  { %1129 = vmatpush1.bf16.msra.mxu0 %v6354_v4 }
  0xf4   :  { %1130 = vmatprep.subr.bf16.mxu0 %v6355_v5  ;;  %1170 = vmatpush1.bf16.msra.mxu1 %v6360_v10 }
  0xf5   :  { %1171 = vmatprep.subr.bf16.mxu1 %v6361_v11 }
  0xf7   :  { %1131 = vmatpush1.bf16.msra.mxu0 %v6358_v8 }
  0xf8   :  { %1208 = vmatprep.subr.bf16.mxu0 %v6359_v9  ;;  %1172 = vmatpush1.bf16.msra.mxu1 %v6362_v12 }
  0xf9   :  { %1249 = vmatprep.subr.bf16.mxu1 %v6363_v13 }
 0x14d   :  { %v572_v22 = vpop.f32.mrb[0].mxu0  ;;  %v613_v32 = vpop.f32.mrb[0].mxu1 }
 0x14e   :  { %v573_v23 = vadd.f32 %v572_v22, %v4238_v19  ;;  %v574_v24 = vpop.f32.mrb[1].mxu0  ;;  %v615_v33 = vpop.f32.mrb[1].mxu1  ;;  %v614_v39 = vadd.f32 %v613_v32, %v4255_v36  ;;  %v6370_v32 = vld [vmem:[#allocation31_spill] sm:$0xff] }
 0x14f   :  { %v575_v25 = vadd.f32 %v574_v24, %v4242_v20  ;;  %v576_v26 = vpop.f32.mrb[2].mxu0  ;;  %v616_v34 = vadd.f32 %v615_v33, %v4249_v29  ;;  %v617_v35 = vpop.f32.mrb[2].mxu1  ;;  %v1099_v24 = vld [vmem:[#allocation2 + $0x4] sm:$0xf]  ;;  %v6371_v33 = vld [vmem:[#allocation36_spill] sm:$0xff] }
 0x150   :  { %v2741_v27 = vmul.f32 -1.442695, %v573_v23  ;;  %v577_v28 = vpop.f32.mrb[3].mxu0  ;;  %v618_v37 = vpop.f32.mrb[3].mxu1  ;;  %v6366_v26 = vld [vmem:[#allocation27_spill] sm:$0xff]  ;;  %v6372_v35 = vld [vmem:[#allocation33_spill] sm:$0xff] }
 0x151   :  { %v2742_v30 = vmul.f32 -1.442695, %v575_v25  ;;  %v2743_v38 = vmul.f32 -1.442695, %v616_v34  ;;  %v6365_v25 = vld [vmem:[#allocation26_spill] sm:$0xff] }
 0x152   :  { %3055 = vpow2.f32 %v2741_v27  ;;  %v6367_v27 = vld [vmem:[#allocation32_spill] sm:$0xff]  ;;  %v6368_v28 = vld [vmem:[#allocation30_spill] sm:$0xff]  ;;  %v195_v34 = vld [vmem:[%s5769_s4] sm:$0xf]  ;;  %s3693_s4 = smov [#allocation8]  }
 0x153   :  { %3057 = vpow2.f32 %v2742_v30  ;;  %v6369_v30 = vld [vmem:[#allocation35_spill] sm:$0xff]  ;;  %v6373_v37 = vld [vmem:[#allocation34_spill] sm:$0xff]  ;;  %s2648_s13 = sshll.u32 %s3693_s4, 4  ;;  %s2649_s13 = int_to_ptr.vmem [resolvable:$true] %s2648_s13 }
 0x154   :  { %3059 = vpow2.f32 %v2743_v38  ;;  %v6374_v38 = vld [vmem:[#allocation39_spill] sm:$0xff]  ;;  %s3633_s14 = scalar_lea.vmem %s2649_s13, 512  ;;  %p3638_p11 = scmp.lt.s32.totalorder %s2649_s13, %s2649_s13 }
 0x155   :  { %3061 = vtanh.f32 %v614_v39  ;;  %v4278_v39 = vrot.slane %v195_v34, %v200_v16  ;;  %p3634_p10 = scmp.ne.s32.totalorder %s2649_s13, %s3633_s14  ;;  %p3639_p12 = scmp.lt.s32.totalorder %s3633_s14, %s3633_s14 }
 0x157   :  { %p3640_p13 = por %p3639_p12, %p3638_p11 }
 0x159   :  { %p3641_p0 = pnand %p3640_p13, %p3634_p10 }
 0x15c   :  { %v3056_v40 = vpop.eup %3055 }
 0x15d   :  { %v3058_v41 = vpop.eup %3057  ;;  %v623_v42 = vadd.f32 1.0, %v3056_v40  ;;  %v4282_v40 = vrot.slane %v195_v34, %v204_v18  ;;  %v4293_v18 = vrot.slane %v195_v34, %v212_v21  ;;  %v6386_v21 = vld [vmem:[#allocation45_spill] sm:$0xff] }
 0x15e   :  { %v629_v43 = vadd.f32 1.0, %v3058_v41  ;;  %v3060_v44 = vpop.eup %3059  ;;  %v6375_v41 = vld [vmem:[#allocation37_spill] sm:$0xff] }
 0x15f   :  { %3063 = vrcp.f32 %v623_v42  ;;  %v3062_v45 = vpop.eup %3061  ;;  %v636_v47 = vadd.f32 1.0, %v3060_v44  ;;  %v6376_v42 = vld [vmem:[#allocation42_spill] sm:$0xff]  ;;  %6380 = vst [vmem:[#allocation16_spill] sm:$0xff] %v4293_v18 }
 0x160   :  { %3065 = vrcp.f32 %v629_v43  ;;  %v6377_v44 = vld [vmem:[#allocation38_spill] sm:$0xff] }
 0x161   :  { %3067 = vrcp.f32 %v636_v47 }
 0x169   :  { %v3064_v46 = vpop.eup %3063 }
 0x16a   :  { %v3066_v48 = vpop.eup %3065  ;;  %v640_v49 = vmul.f32 %v3064_v46, %v3062_v45  ;;  %v6378_v45 = vld [vmem:[#allocation43_spill] sm:$0xff] }
 0x16b   :  { %v639_v50 = vmul.f32 0.0, %v3066_v48  ;;  %v3068_v14 = vpop.eup %3067 }
 0x16d   :  { %v4258_v62 = vadd.f32 %v640_v49, %v639_v50 }
 0x16f   :  { %3069 = vtanh.f32 %v4258_v62 }
 0x179   :  { %v3070_v17 = vpop.eup %3069 }
 0x17a   :  { %v643_v22 = vmul.f32 %v3070_v17, %v3068_v14  ;;  %v6379_v14 = vld [vmem:[#allocation40_spill] sm:$0xff]  ;;  %v6381_v17 = vld [vmem:[#allocation46_spill] sm:$0xff] }
 0x17c   :  { %v1093_v23 = vpack.c.bf16 %v643_v22, %v643_v22 }
 0x17e   :  { %1094 = vst [vmem:[#allocation8] sm:$0xf] %v1093_v23  ;;  %1132 = vmatprep.mubr.bf16.mxu0 %v1093_v23  ;;  %1173 = vmatprep.mubr.bf16.mxu1 %v1093_v23  ;;  %v6382_v23 = vld [vmem:[#allocation41_spill] sm:$0xff] }
 0x17f   :  { %1133 = vmatmul.mubr.bf16.vlgmr.msra.gmra.mrb[8].mxu0 %v1099_v24  ;;  %1174 = vmatmul.mubr.bf16.vlgmr.msra.gmra.mrb[8].mxu1 %v1099_v24  ;;  %v6383_v24 = vld [vmem:[#allocation47_spill] sm:$0xff] }
 0x180   :  { %1209 = vmatpush1.bf16.msra.mxu0 %v6365_v25  ;;  %1250 = vmatpush1.bf16.msra.mxu1 %v3985_v63 }
 0x181   :  { %1210 = vmatprep.subr.bf16.mxu0 %v6366_v26  ;;  %1251 = vmatprep.subr.bf16.mxu1 %v6367_v27 }
 0x184   :  { %1211 = vmatpush1.bf16.msra.mxu0 %v6368_v28  ;;  %1252 = vmatpush1.bf16.msra.mxu1 %v6369_v30 }
 0x185   :  { %1212 = vmatprep.subr.bf16.mxu0 %v6370_v32  ;;  %1253 = vmatprep.subr.bf16.mxu1 %v6371_v33 }
 0x188   :  { %1213 = vmatpush1.bf16.msra.mxu0 %v6372_v35  ;;  %1254 = vmatpush1.bf16.msra.mxu1 %v4010_v55 }
 0x189   :  { %1214 = vmatprep.subr.bf16.mxu0 %v6373_v37  ;;  %1255 = vmatprep.subr.bf16.mxu1 %v6374_v38 }
 0x18c   :  { %1215 = vmatpush1.bf16.msra.mxu0 %v6375_v41  ;;  %1256 = vmatpush1.bf16.msra.mxu1 %v6376_v42 }
 0x18d   :  { %v1021_v43 = vpop.f32.mrb[4].mxu0  ;;  %1216 = vmatprep.subr.bf16.mxu0 %v6377_v44  ;;  %1257 = vmatprep.subr.bf16.mxu1 %v6378_v45 }
 0x18e   :  { %v1022_v46 = vadd.f32 %v1021_v43, %v4278_v39  ;;  %v1023_v47 = vpop.f32.mrb[5].mxu0  ;;  %v1062_v25 = vpop.f32.mrb[4].mxu1  ;;  %v6384_v43 = vld [vmem:[#allocation44_spill] sm:$0xff] }
 0x18f   :  { %v1024_v48 = vadd.f32 %v1023_v47, %v4282_v40  ;;  %v1025_v16 = vpop.f32.mrb[6].mxu0  ;;  %v1064_v26 = vpop.f32.mrb[5].mxu1 }
 0x190   :  { %v2808_v49 = vmul.f32 -1.442695, %v1022_v46  ;;  %v1026_v50 = vpop.f32.mrb[7].mxu0  ;;  %1217 = vmatpush1.bf16.msra.mxu0 %v6379_v14  ;;  %1258 = vmatpush1.bf16.msra.mxu1 %v6381_v17  ;;  %v1065_v46 = vadd.f32 %v1064_v26, %v4293_v18  ;;  %v1066_v47 = vpop.f32.mrb[6].mxu1  ;;  %v6385_v16 = vld [vmem:[#allocation50_spill] sm:$0xff]  ;;  %v6391_v26 = vld [vmem:[#allocation49_spill] sm:$0xff] }
 0x191   :  { %v2809_v22 = vmul.f32 -1.442695, %v1024_v48  ;;  %1218 = vmatprep.subr.bf16.mxu0 %v6382_v23  ;;  %1259 = vmatprep.subr.bf16.mxu1 %v6383_v24  ;;  %v4304_v48 = vrot.slane %v195_v34, %v208_v31  ;;  %v1067_v50 = vpop.f32.mrb[7].mxu1  ;;  %v6388_v23 = vld [vmem:[#allocation51_spill] sm:$0xff]  ;;  %v6390_v24 = vld [vmem:[#allocation54_spill] sm:$0xff] }
 0x192   :  { %3071 = vpow2.f32 %v2808_v49  ;;  %v6389_v49 = vld [vmem:[#allocation48_spill] sm:$0xff]  ;;  %v6392_v47 = vld [vmem:[#allocation55_spill] sm:$0xff]  ;;  %v6395_v50 = vld [vmem:[#allocation53_spill] sm:$0xff] }
 0x193   :  { %3073 = vpow2.f32 %v2809_v22  ;;  %6387 = vst [vmem:[#allocation17_spill] sm:$0xff] %v4304_v48  ;;  %v2810_v22 = vmul.f32 -1.442695, %v1065_v46  ;;  %v6396_v46 = vld [vmem:[#allocation59_spill] sm:$0xff] }
 0x194   :  { %1219 = vmatpush1.bf16.msra.mxu0 %v6384_v43  ;;  %1260 = vmatpush1.bf16.msra.mxu1 %v6385_v16  ;;  %v1063_v43 = vadd.f32 %v1062_v25, %v4304_v48  ;;  %v6397_v25 = vld [vmem:[#allocation56_spill] sm:$0xff] }
 0x195   :  { %1220 = vmatprep.subr.bf16.mxu0 %v6386_v21  ;;  %1261 = vmatprep.subr.bf16.mxu1 %v6388_v23  ;;  %3075 = vpow2.f32 %v2810_v22  ;;  %v6393_v21 = vld [vmem:[#allocation52_spill] sm:$0xff]  ;;  %v6400_v22 = vld [vmem:[#allocation63_spill] sm:$0xff] }
 0x196   :  { %3077 = vtanh.f32 %v1063_v43  ;;  %v6403_v43 = vld [vmem:[#allocation61_spill] sm:$0xff] }
 0x198   :  { %1221 = vmatpush1.bf16.msra.mxu0 %v6389_v49  ;;  %1262 = vmatpush1.bf16.msra.mxu1 %v6390_v24  ;;  %v6411_v49 = vld [vmem:[#allocation69_spill] sm:$0xff] }
 0x199   :  { %1222 = vmatprep.subr.bf16.mxu0 %v6391_v26  ;;  %1263 = vmatprep.subr.bf16.mxu1 %v6392_v47  ;;  %v6398_v26 = vld [vmem:[#allocation62_spill] sm:$0xff]  ;;  %v6399_v47 = vld [vmem:[#allocation57_spill] sm:$0xff] }
 0x19c   :  { %v3072_v16 = vpop.eup %3071  ;;  %1223 = vmatpush1.bf16.msra.mxu0 %v6393_v21  ;;  %1264 = vmatpush1.bf16.msra.mxu1 %v6394_v15  ;;  %v6401_v21 = vld [vmem:[#allocation60_spill] sm:$0xff]  ;;  %v6402_v15 = vld [vmem:[#allocation66_spill] sm:$0xff] }
 0x19d   :  { %v3074_v31 = vpop.eup %3073  ;;  %v1072_v34 = vadd.f32 1.0, %v3072_v16  ;;  %1224 = vmatprep.subr.bf16.mxu0 %v6395_v50  ;;  %1265 = vmatprep.subr.bf16.mxu1 %v6396_v46  ;;  %v6404_v16 = vld [vmem:[#allocation67_spill] sm:$0xff]  ;;  %v6407_v50 = vld [vmem:[#allocation65_spill] sm:$0xff] }
 0x19e   :  { %v1078_v24 = vadd.f32 1.0, %v3074_v31 }
 0x19f   :  { %3079 = vrcp.f32 %v1072_v34  ;;  %v3076_v46 = vpop.eup %3075  ;;  %v6405_v34 = vld [vmem:[#allocation64_spill] sm:$0xff] }
 0x1a0   :  { %3081 = vrcp.f32 %v1078_v24  ;;  %1225 = vmatpush1.bf16.msra.mxu0 %v6397_v25  ;;  %1266 = vmatpush1.bf16.msra.mxu1 %v6398_v26  ;;  %v3078_v31 = vpop.eup %3077  ;;  %v6406_v24 = vld [vmem:[#allocation70_spill] sm:$0xff]  ;;  %v1085_v26 = vadd.f32 1.0, %v3076_v46  ;;  %v6413_v46 = vld [vmem:[#allocation72_spill] sm:$0xff] }
 0x1a1   :  { %1226 = vmatprep.subr.bf16.mxu0 %v6399_v47  ;;  %1267 = vmatprep.subr.bf16.mxu1 %v6400_v22  ;;  %v6408_v47 = vld [vmem:[#allocation71_spill] sm:$0xff] }
 0x1a2   :  { %3083 = vrcp.f32 %v1085_v26 }
 0x1a4   :  { %1227 = vmatpush1.bf16.msra.mxu0 %v6401_v21  ;;  %1268 = vmatpush1.bf16.msra.mxu1 %v6402_v15  ;;  %v6409_v15 = vld [vmem:[#allocation68_spill] sm:$0xff] }
 0x1a5   :  { %1228 = vmatprep.subr.bf16.mxu0 %v6403_v43  ;;  %1269 = vmatprep.subr.bf16.mxu1 %v6404_v16  ;;  %v6410_v43 = vld [vmem:[#allocation74_spill] sm:$0xff] }
 0x1a8   :  { %1229 = vmatpush1.bf16.msra.mxu0 %v6405_v34  ;;  %1270 = vmatpush1.bf16.msra.mxu1 %v6406_v24  ;;  %v6412_v34 = vld [vmem:[#allocation75_spill] sm:$0xff] }
 0x1a9   :  { %v3080_v25 = vpop.eup %3079  ;;  %1230 = vmatprep.subr.bf16.mxu0 %v6407_v50  ;;  %1271 = vmatprep.subr.bf16.mxu1 %v6408_v47  ;;  %v6414_v50 = vld [vmem:[#allocation78_spill] sm:$0xff]  ;;  %v6415_v47 = vld [vmem:[#allocation73_spill] sm:$0xff] }
 0x1aa   :  { %v3082_v22 = vpop.eup %3081  ;;  %v1089_v21 = vmul.f32 %v3080_v25, %v3078_v31  ;;  %v6416_v25 = vld [vmem:[#allocation79_spill] sm:$0xff] }
 0x1ab   :  { %v1088_v48 = vmul.f32 0.0, %v3082_v22  ;;  %v6417_v22 = vld [vmem:[#allocation76_spill] sm:$0xff] }
 0x1ac   :  { %1231 = vmatpush1.bf16.msra.mxu0 %v6409_v15  ;;  %1272 = vmatpush1.bf16.msra.mxu1 %v6410_v43 }
 0x1ad   :  { %v4330_v16 = vadd.f32 %v1089_v21, %v1088_v48  ;;  %1232 = vmatprep.subr.bf16.mxu0 %v6411_v49  ;;  %1273 = vmatprep.subr.bf16.mxu1 %v6412_v34  ;;  %v6418_v21 = vld [vmem:[#allocation77_spill] sm:$0xff]  ;;  %v3084_v48 = vpop.eup %3083 }
 0x1af   :  { %3085 = vtanh.f32 %v4330_v16 }
 0x1b0   :  { %1233 = vmatpush1.bf16.msra.mxu0 %v6413_v46  ;;  %1274 = vmatpush1.bf16.msra.mxu1 %v6414_v50 }
 0x1b1   :  { %1234 = vmatprep.subr.bf16.mxu0 %v6415_v47  ;;  %1275 = vmatprep.subr.bf16.mxu1 %v6416_v25  ;;  %v1207_v25 = vld [vmem:[#allocation2 + $0x18] sm:$0xf] }
 0x1b4   :  { %1235 = vmatpush1.bf16.msra.mxu0 %v6417_v22  ;;  %1276 = vmatpush1.bf16.msra.mxu1 %v4142_v59 }
 0x1b5   :  { %1236 = vmatprep.subr.bf16.mxu0 %v6418_v21  ;;  %1277 = vmatprep.subr.bf16.mxu1 %v4145_v60  ;;  %v4349_v21 = vld [vmem:[#allocation5 + $0x4] ss:$16 sps:$4 sm:$0xff]   ;;  %v4352_v60 = vld [vmem:[#allocation5 + $0xc] ss:$16 sps:$4 sm:$0xff]  }
 0x1b6   :  { %6419 = vst [vmem:[#allocation18_spill] sm:$0xff] %v4349_v21  ;;  %6420 = vst [vmem:[#allocation19_spill] sm:$0xff] %v4352_v60 }
 0x1b8   :  { %1237 = vmatpush1.bf16.msra.mxu0 %v4136_v58  ;;  %1278 = vmatpush1.bf16.msra.mxu1 %v4152_v0 }
 0x1b9   :  { %v3086_v26 = vpop.eup %3085  ;;  %1238 = vmatprep.subr.bf16.mxu0 %v4139_v57  ;;  %1279 = vmatprep.subr.bf16.mxu1 %v4155_v61 }
 0x1ba   :  { %v1092_v31 = vmul.f32 %v3086_v26, %v3084_v48  ;;  %v4355_v48 = vld [vmem:[#allocation5] ss:$16 sps:$4 sm:$0xff]   ;;  %v4358_v26 = vld [vmem:[#allocation5 + $0x8] ss:$16 sps:$4 sm:$0xff]  }
 0x1bb   :  { %6421 = vst [vmem:[#allocation20_spill] sm:$0xff] %v4358_v26 }
 0x1bc   :  { %1239 = vmatpush1.bf16.msra.mxu0 %v4148_v54  ;;  %v1095_v22 = vpack.c.bf16 %v1092_v31, %v1092_v31  ;;  %1280 = vmatpush1.bf16.msra.mxu1 %v4159_v56  ;;  %v4361_v31 = vld [vmem:[#allocation5 + $0x24] ss:$16 sps:$4 sm:$0xff]  }
 0x1bd   :  { %1322 = vmatprep.subr.bf16.mxu0 %v4349_v21  ;;  %1363 = vmatprep.subr.bf16.mxu1 %v4352_v60  ;;  %6422 = vst [vmem:[#allocation21_spill] sm:$0xff] %v4361_v31  ;;  %v4364_v21 = vld [vmem:[#allocation5 + $0x2c] ss:$16 sps:$4 sm:$0xff]   ;;  %v4367_v60 = vld [vmem:[#allocation5 + $0x20] ss:$16 sps:$4 sm:$0xff]  }
 0x1be   :  { %1097 = vst [vmem:[#allocation9 + $0x1c] sm:$0xf] %v1095_v22  ;;  %1240 = vmatprep.mubr.bf16.mxu0 %v1095_v22  ;;  %1281 = vmatprep.mubr.bf16.mxu1 %v1095_v22  ;;  %6423 = vst [vmem:[#allocation22_spill] sm:$0xff] %v4364_v21  ;;  %v4373_v22 = vld [vmem:[#allocation5 + $0x44] ss:$16 sps:$4 sm:$0xff]  }
 0x1bf   :  { %1241 = vmatmul.mubr.bf16.vlgmr.msra.gmra.mrb[12].mxu0 %v1207_v25  ;;  %1282 = vmatmul.mubr.bf16.vlgmr.msra.gmra.mrb[12].mxu1 %v1207_v25  ;;  %6424 = vst [vmem:[#allocation23_spill] sm:$0xff] %v4367_v60  ;;  %v4370_v25 = vld [vmem:[#allocation5 + $0x28] ss:$16 sps:$4 sm:$0xff]   ;;  %6426 = vst [vmem:[#allocation25_spill] sm:$0xff] %v4373_v22 }
 0x1c0   :  { %1323 = vmatpush1.bf16.msra.mxu0 %v4355_v48  ;;  %1364 = vmatpush1.bf16.msra.mxu1 %v4358_v26  ;;  %6425 = vst [vmem:[#allocation24_spill] sm:$0xff] %v4370_v25  ;;  %v4376_v26 = vld [vmem:[#allocation5 + $0x4c] ss:$16 sps:$4 sm:$0xff]  }
 0x1c1   :  { %1324 = vmatprep.subr.bf16.mxu0 %v4361_v31  ;;  %1365 = vmatprep.subr.bf16.mxu1 %v4364_v21  ;;  %6427 = vst [vmem:[#allocation28_spill] sm:$0xff] %v4376_v26  ;;  %v4379_v31 = vld [vmem:[#allocation5 + $0x40] ss:$16 sps:$4 sm:$0xff]   ;;  %v4382_v21 = vld [vmem:[#allocation5 + $0x48] ss:$16 sps:$4 sm:$0xff]  }
 0x1c2   :  { %6428 = vst [vmem:[#allocation29_spill] sm:$0xff] %v4379_v31  ;;  %6429 = vst [vmem:[#allocation26_spill] sm:$0xff] %v4382_v21 }
 0x1c4   :  { %1325 = vmatpush1.bf16.msra.mxu0 %v4367_v60  ;;  %1366 = vmatpush1.bf16.msra.mxu1 %v4370_v25  ;;  %v4385_v60 = vld [vmem:[#allocation5 + $0x64] ss:$16 sps:$4 sm:$0xff]   ;;  %v4388_v25 = vld [vmem:[#allocation5 + $0x6c] ss:$16 sps:$4 sm:$0xff]  }
 0x1c5   :  { %1326 = vmatprep.subr.bf16.mxu0 %v4373_v22  ;;  %1367 = vmatprep.subr.bf16.mxu1 %v4376_v26  ;;  %6430 = vst [vmem:[#allocation27_spill] sm:$0xff] %v4385_v60  ;;  %6431 = vst [vmem:[#allocation32_spill] sm:$0xff] %v4388_v25  ;;  %v4391_v22 = vld [vmem:[#allocation5 + $0x60] ss:$16 sps:$4 sm:$0xff]   ;;  %v4394_v26 = vld [vmem:[#allocation5 + $0x68] ss:$16 sps:$4 sm:$0xff]  }
 0x1c6   :  { %6432 = vst [vmem:[#allocation30_spill] sm:$0xff] %v4391_v22  ;;  %6433 = vst [vmem:[#allocation35_spill] sm:$0xff] %v4394_v26 }
 0x1c8   :  { %1327 = vmatpush1.bf16.msra.mxu0 %v4379_v31  ;;  %1368 = vmatpush1.bf16.msra.mxu1 %v4382_v21  ;;  %v4397_v31 = vld [vmem:[#allocation5 + $0x84] ss:$16 sps:$4 sm:$0xff]   ;;  %v4400_v21 = vld [vmem:[#allocation5 + $0x8c] ss:$16 sps:$4 sm:$0xff]  }
 0x1c9   :  { %1328 = vmatprep.subr.bf16.mxu0 %v4385_v60  ;;  %1369 = vmatprep.subr.bf16.mxu1 %v4388_v25  ;;  %6434 = vst [vmem:[#allocation31_spill] sm:$0xff] %v4397_v31  ;;  %6435 = vst [vmem:[#allocation36_spill] sm:$0xff] %v4400_v21  ;;  %v4403_v60 = vld [vmem:[#allocation5 + $0x80] ss:$16 sps:$4 sm:$0xff]   ;;  %v4406_v25 = vld [vmem:[#allocation5 + $0x88] ss:$16 sps:$4 sm:$0xff]  }
 0x1ca   :  { %6436 = vst [vmem:[#allocation33_spill] sm:$0xff] %v4403_v60  ;;  %6437 = vst [vmem:[#allocation34_spill] sm:$0xff] %v4406_v25 }
 0x1cc   :  { %1329 = vmatpush1.bf16.msra.mxu0 %v4391_v22  ;;  %1370 = vmatpush1.bf16.msra.mxu1 %v4394_v26  ;;  %v4409_v22 = vld [vmem:[#allocation5 + $0xa4] ss:$16 sps:$4 sm:$0xff]   ;;  %v4412_v26 = vld [vmem:[#allocation5 + $0xac] ss:$16 sps:$4 sm:$0xff]  }
 0x1cd   :  { %1330 = vmatprep.subr.bf16.mxu0 %v4397_v31  ;;  %1371 = vmatprep.subr.bf16.mxu1 %v4400_v21  ;;  %6438 = vst [vmem:[#allocation39_spill] sm:$0xff] %v4409_v22  ;;  %6439 = vst [vmem:[#allocation37_spill] sm:$0xff] %v4412_v26  ;;  %v4415_v31 = vld [vmem:[#allocation5 + $0xa0] ss:$16 sps:$4 sm:$0xff]   ;;  %v4418_v21 = vld [vmem:[#allocation5 + $0xa8] ss:$16 sps:$4 sm:$0xff]  }
 0x1ce   :  { %6440 = vst [vmem:[#allocation42_spill] sm:$0xff] %v4415_v31  ;;  %6441 = vst [vmem:[#allocation38_spill] sm:$0xff] %v4418_v21 }
 0x1d0   :  { %1331 = vmatpush1.bf16.msra.mxu0 %v4403_v60  ;;  %1372 = vmatpush1.bf16.msra.mxu1 %v4406_v25  ;;  %v4421_v60 = vld [vmem:[#allocation5 + $0xc4] ss:$16 sps:$4 sm:$0xff]   ;;  %v4424_v25 = vld [vmem:[#allocation5 + $0xcc] ss:$16 sps:$4 sm:$0xff]  }
 0x1d1   :  { %1332 = vmatprep.subr.bf16.mxu0 %v4409_v22  ;;  %1373 = vmatprep.subr.bf16.mxu1 %v4412_v26  ;;  %6442 = vst [vmem:[#allocation43_spill] sm:$0xff] %v4421_v60  ;;  %6443 = vst [vmem:[#allocation40_spill] sm:$0xff] %v4424_v25  ;;  %v4427_v22 = vld [vmem:[#allocation5 + $0xc0] ss:$16 sps:$4 sm:$0xff]   ;;  %v4430_v26 = vld [vmem:[#allocation5 + $0xc8] ss:$16 sps:$4 sm:$0xff]  }
 0x1d2   :  { %6444 = vst [vmem:[#allocation46_spill] sm:$0xff] %v4427_v22  ;;  %6445 = vst [vmem:[#allocation51_spill] sm:$0xff] %v4430_v26 }
 0x1d4   :  { %1333 = vmatpush1.bf16.msra.mxu0 %v4415_v31  ;;  %1374 = vmatpush1.bf16.msra.mxu1 %v4418_v21  ;;  %v4433_v31 = vld [vmem:[#allocation5 + $0xe4] ss:$16 sps:$4 sm:$0xff]   ;;  %v4436_v21 = vld [vmem:[#allocation5 + $0xec] ss:$16 sps:$4 sm:$0xff]  }
 0x1d5   :  { %1334 = vmatprep.subr.bf16.mxu0 %v4421_v60  ;;  %1375 = vmatprep.subr.bf16.mxu1 %v4424_v25  ;;  %6446 = vst [vmem:[#allocation70_spill] sm:$0xff] %v4433_v31  ;;  %6447 = vst [vmem:[#allocation68_spill] sm:$0xff] %v4436_v21  ;;  %v4439_v60 = vld [vmem:[#allocation5 + $0xe0] ss:$16 sps:$4 sm:$0xff]   ;;  %v4442_v25 = vld [vmem:[#allocation5 + $0xe8] ss:$16 sps:$4 sm:$0xff]  }
 0x1d6   :  { %6448 = vst [vmem:[#allocation74_spill] sm:$0xff] %v4439_v60  ;;  %6449 = vst [vmem:[#allocation69_spill] sm:$0xff] %v4442_v25 }
 0x1d8   :  { %1335 = vmatpush1.bf16.msra.mxu0 %v4427_v22  ;;  %1376 = vmatpush1.bf16.msra.mxu1 %v4430_v26  ;;  %v4445_v22 = vld [vmem:[#allocation5 + $0x104] ss:$16 sps:$4 sm:$0xff]   ;;  %v4448_v26 = vld [vmem:[#allocation5 + $0x10c] ss:$16 sps:$4 sm:$0xff]  }
 0x1d9   :  { %1336 = vmatprep.subr.bf16.mxu0 %v4433_v31  ;;  %1377 = vmatprep.subr.bf16.mxu1 %v4436_v21  ;;  %6450 = vst [vmem:[#allocation75_spill] sm:$0xff] %v4445_v22  ;;  %6451 = vst [vmem:[#allocation72_spill] sm:$0xff] %v4448_v26  ;;  %v4451_v31 = vld [vmem:[#allocation5 + $0x100] ss:$16 sps:$4 sm:$0xff]   ;;  %v4454_v21 = vld [vmem:[#allocation5 + $0x108] ss:$16 sps:$4 sm:$0xff]  }
 0x1da   :  { %6452 = vst [vmem:[#allocation78_spill] sm:$0xff] %v4451_v31  ;;  %6453 = vst [vmem:[#allocation73_spill] sm:$0xff] %v4454_v21 }
 0x1dc   :  { %1337 = vmatpush1.bf16.msra.mxu0 %v4439_v60  ;;  %1378 = vmatpush1.bf16.msra.mxu1 %v4442_v25  ;;  %v4457_v60 = vld [vmem:[#allocation5 + $0x124] ss:$16 sps:$4 sm:$0xff]   ;;  %v4460_v25 = vld [vmem:[#allocation5 + $0x12c] ss:$16 sps:$4 sm:$0xff]  }
 0x1dd   :  { %1338 = vmatprep.subr.bf16.mxu0 %v4445_v22  ;;  %1379 = vmatprep.subr.bf16.mxu1 %v4448_v26  ;;  %6454 = vst [vmem:[#allocation81_spill] sm:$0xff] %v4457_v60  ;;  %6455 = vst [vmem:[#allocation82_spill] sm:$0xff] %v4460_v25  ;;  %v4463_v22 = vld [vmem:[#allocation5 + $0x120] ss:$16 sps:$4 sm:$0xff]   ;;  %v4466_v26 = vld [vmem:[#allocation5 + $0x128] ss:$16 sps:$4 sm:$0xff]  }
 0x1de   :  { %6456 = vst [vmem:[#allocation83_spill] sm:$0xff] %v4463_v22  ;;  %6457 = vst [vmem:[#allocation84_spill] sm:$0xff] %v4466_v26 }
 0x1e0   :  { %1339 = vmatpush1.bf16.msra.mxu0 %v4451_v31  ;;  %1380 = vmatpush1.bf16.msra.mxu1 %v4454_v21  ;;  %v4469_v31 = vld [vmem:[#allocation5 + $0x144] ss:$16 sps:$4 sm:$0xff]   ;;  %v4472_v21 = vld [vmem:[#allocation5 + $0x14c] ss:$16 sps:$4 sm:$0xff]  }
 0x1e1   :  { %1340 = vmatprep.subr.bf16.mxu0 %v4457_v60  ;;  %1381 = vmatprep.subr.bf16.mxu1 %v4460_v25  ;;  %6458 = vst [vmem:[#allocation85_spill] sm:$0xff] %v4469_v31  ;;  %6459 = vst [vmem:[#allocation86_spill] sm:$0xff] %v4472_v21  ;;  %v4475_v60 = vld [vmem:[#allocation5 + $0x140] ss:$16 sps:$4 sm:$0xff]   ;;  %v4478_v25 = vld [vmem:[#allocation5 + $0x148] ss:$16 sps:$4 sm:$0xff]  }
 0x1e2   :  { %6460 = vst [vmem:[#allocation87_spill] sm:$0xff] %v4475_v60  ;;  %6461 = vst [vmem:[#allocation88_spill] sm:$0xff] %v4478_v25 }
 0x1e4   :  { %1341 = vmatpush1.bf16.msra.mxu0 %v4463_v22  ;;  %1382 = vmatpush1.bf16.msra.mxu1 %v4466_v26  ;;  %v4481_v22 = vld [vmem:[#allocation5 + $0x164] ss:$16 sps:$4 sm:$0xff]   ;;  %v4484_v26 = vld [vmem:[#allocation5 + $0x16c] ss:$16 sps:$4 sm:$0xff]  }
 0x1e5   :  { %1342 = vmatprep.subr.bf16.mxu0 %v4469_v31  ;;  %1383 = vmatprep.subr.bf16.mxu1 %v4472_v21  ;;  %6462 = vst [vmem:[#allocation89_spill] sm:$0xff] %v4481_v22  ;;  %6463 = vst [vmem:[#allocation90_spill] sm:$0xff] %v4484_v26  ;;  %v4487_v31 = vld [vmem:[#allocation5 + $0x160] ss:$16 sps:$4 sm:$0xff]   ;;  %v4491_v21 = vld [vmem:[#allocation5 + $0x184] ss:$16 sps:$4 sm:$0xff]  }
 0x1e6   :  { %6464 = vst [vmem:[#allocation91_spill] sm:$0xff] %v4487_v31  ;;  %6465 = vst [vmem:[#allocation92_spill] sm:$0xff] %v4491_v21 }
 0x1e8   :  { %1343 = vmatpush1.bf16.msra.mxu0 %v4475_v60  ;;  %1384 = vmatpush1.bf16.msra.mxu1 %v4478_v25  ;;  %v4495_v25 = vld [vmem:[#allocation5 + $0x180] ss:$16 sps:$4 sm:$0xff]  }
 0x1e9   :  { %1344 = vmatprep.subr.bf16.mxu0 %v4481_v22  ;;  %1385 = vmatprep.subr.bf16.mxu1 %v4484_v26  ;;  %6466 = vst [vmem:[#allocation93_spill] sm:$0xff] %v4495_v25  ;;  %v4499_v22 = vld [vmem:[#allocation5 + $0x1a4] ss:$16 sps:$4 sm:$0xff]  }
 0x1ea   :  { %6467 = vst [vmem:[#allocation94_spill] sm:$0xff] %v4499_v22 }
 0x1ec   :  { %1345 = vmatpush1.bf16.msra.mxu0 %v4487_v31  ;;  %1386 = vmatpush1.bf16.msra.mxu1 %v3924_v51 }
 0x1ed   :  { %1346 = vmatprep.subr.bf16.mxu0 %v4491_v21  ;;  %1387 = vmatprep.subr.bf16.mxu1 %v3927_v52 }
 0x1f0   :  { %1347 = vmatpush1.bf16.msra.mxu0 %v4495_v25  ;;  %1388 = vmatpush1.bf16.msra.mxu1 %v6352_v2 }
 0x1f1   :  { %1348 = vmatprep.subr.bf16.mxu0 %v4499_v22  ;;  %1389 = vmatprep.subr.bf16.mxu1 %v6353_v3 }
 0x1f4   :  { %1349 = vmatpush1.bf16.msra.mxu0 %v3930_v53  ;;  %1390 = vmatpush1.bf16.msra.mxu1 %v6356_v6 }
 0x1f5   :  { %1350 = vmatprep.subr.bf16.mxu0 %v6351_v1  ;;  %1391 = vmatprep.subr.bf16.mxu1 %v6357_v7 }
 0x1f8   :  { %1351 = vmatpush1.bf16.msra.mxu0 %v6354_v4  ;;  %1392 = vmatpush1.bf16.msra.mxu1 %v6360_v10 }
 0x1f9   :  { %1352 = vmatprep.subr.bf16.mxu0 %v6355_v5  ;;  %1393 = vmatprep.subr.bf16.mxu1 %v6361_v11 }
 0x1fc   :  { %1353 = vmatpush1.bf16.msra.mxu0 %v6358_v8  ;;  %1394 = vmatpush1.bf16.msra.mxu1 %v6362_v12 }
 0x1fd   :  { %1430 = vmatprep.subr.bf16.mxu0 %v6359_v9  ;;  %1471 = vmatprep.subr.bf16.mxu1 %v6363_v13 }
 0x252   :  { %v1134_v51 = vpop.f32.mrb[8].mxu0  ;;  %v1175_v52 = vpop.f32.mrb[8].mxu1 }
 0x253   :  { %v1135_v53 = vadd.f32 %v1134_v51, %v4238_v19  ;;  %v1136_v1 = vpop.f32.mrb[9].mxu0  ;;  %v1177_v2 = vpop.f32.mrb[9].mxu1  ;;  %v1176_v12 = vadd.f32 %v1175_v52, %v4255_v36 }
 0x254   :  { %v1137_v3 = vadd.f32 %v1136_v1, %v4242_v20  ;;  %v1138_v4 = vpop.f32.mrb[10].mxu0  ;;  %v1179_v5 = vpop.f32.mrb[10].mxu1  ;;  %v1178_v9 = vadd.f32 %v1177_v2, %v4249_v29 }
 0x255   :  { %v2811_v6 = vmul.f32 -1.442695, %v1135_v53  ;;  %v1139_v7 = vpop.f32.mrb[11].mxu0  ;;  %v1180_v10 = vpop.f32.mrb[11].mxu1 }
 0x256   :  { %v2812_v8 = vmul.f32 -1.442695, %v1137_v3  ;;  %v2813_v11 = vmul.f32 -1.442695, %v1178_v9 }
 0x257   :  { %3087 = vpow2.f32 %v2811_v6 }
 0x258   :  { %3089 = vpow2.f32 %v2812_v8 }
 0x259   :  { %3091 = vpow2.f32 %v2813_v11  ;;  %v1321_v11 = vld [vmem:[#allocation2 + $0x8] sm:$0xf] }
 0x25a   :  { %3093 = vtanh.f32 %v1176_v12 }
 0x261   :  { %v3088_v13 = vpop.eup %3087 }
 0x262   :  { %v3090_v51 = vpop.eup %3089  ;;  %v1185_v19 = vadd.f32 1.0, %v3088_v13  ;;  %v6471_v13 = vld [vmem:[#allocation50_spill] sm:$0xff] }
 0x263   :  { %v1191_v22 = vadd.f32 1.0, %v3090_v51  ;;  %v3092_v1 = vpop.eup %3091  ;;  %v6472_v51 = vld [vmem:[#allocation45_spill] sm:$0xff] }
 0x264   :  { %3095 = vrcp.f32 %v1185_v19  ;;  %v3094_v53 = vpop.eup %3093  ;;  %v1198_v5 = vadd.f32 1.0, %v3092_v1  ;;  %v4523_v19 = vld [vmem:[#allocation7] ss:$16 sps:$4 sm:$0xff]   ;;  %v6474_v1 = vld [vmem:[#allocation54_spill] sm:$0xff] }
 0x265   :  { %3097 = vrcp.f32 %v1191_v22  ;;  %v6469_v22 = vld [vmem:[#allocation47_spill] sm:$0xff] }
 0x266   :  { %3099 = vrcp.f32 %v1198_v5  ;;  %v6476_v5 = vld [vmem:[#allocation49_spill] sm:$0xff] }
 0x26e   :  { %v3096_v4 = vpop.eup %3095 }
 0x26f   :  { %v3098_v3 = vpop.eup %3097  ;;  %v1202_v6 = vmul.f32 %v3096_v4, %v3094_v53  ;;  %v6475_v53 = vld [vmem:[#allocation17_spill] sm:$0xff] }
 0x270   :  { %v1201_v7 = vmul.f32 %v3098_v3, %v4258_v62  ;;  %v3100_v52 = vpop.eup %3099  ;;  %v4527_v62 = vld [vmem:[#allocation7 + $0x24] ss:$16 sps:$4 sm:$0xff]  }
 0x271   :  { %v6477_v3 = vld [vmem:[#allocation55_spill] sm:$0xff] }
 0x272   :  { %v4520_v2 = vadd.f32 %v1202_v6, %v1201_v7  ;;  %v6478_v7 = vld [vmem:[#allocation52_spill] sm:$0xff] }
 0x274   :  { %3101 = vtanh.f32 %v4520_v2 }
 0x27e   :  { %v3102_v10 = vpop.eup %3101 }
 0x27f   :  { %v1205_v8 = vmul.f32 %v3102_v10, %v3100_v52  ;;  %v6479_v52 = vld [vmem:[#allocation58_spill] sm:$0xff] }
 0x281   :  { %v1314_v9 = vpack.c.bf16 %v1205_v8, %v1205_v8 }
 0x283   :  { %1316 = vst [vmem:[#allocation8 + $0x4] sm:$0xf] %v1314_v9  ;;  %1354 = vmatprep.mubr.bf16.mxu0 %v1314_v9  ;;  %1395 = vmatprep.mubr.bf16.mxu1 %v1314_v9  ;;  %v6481_v9 = vld [vmem:[#allocation59_spill] sm:$0xff] }
 0x284   :  { %1355 = vmatmul.mubr.bf16.vlgmr.msra.gmra.mrb[16].mxu0 %v1321_v11  ;;  %1396 = vmatmul.mubr.bf16.vlgmr.msra.gmra.mrb[16].mxu1 %v1321_v11 }
 0x285   :  { %1431 = vmatpush1.bf16.msra.mxu0 %v4523_v19  ;;  %1472 = vmatpush1.bf16.msra.mxu1 %v3985_v63 }
 0x286   :  { %1432 = vmatprep.subr.bf16.mxu0 %v4527_v62  ;;  %1473 = vmatprep.subr.bf16.mxu1 %v6367_v27 }
 0x289   :  { %1433 = vmatpush1.bf16.msra.mxu0 %v6368_v28  ;;  %1474 = vmatpush1.bf16.msra.mxu1 %v6369_v30 }
 0x28a   :  { %1434 = vmatprep.subr.bf16.mxu0 %v6370_v32  ;;  %1475 = vmatprep.subr.bf16.mxu1 %v6371_v33 }
 0x28d   :  { %1435 = vmatpush1.bf16.msra.mxu0 %v6372_v35  ;;  %1476 = vmatpush1.bf16.msra.mxu1 %v4010_v55 }
 0x28e   :  { %1436 = vmatprep.subr.bf16.mxu0 %v6373_v37  ;;  %1477 = vmatprep.subr.bf16.mxu1 %v6374_v38 }
 0x291   :  { %1437 = vmatpush1.bf16.msra.mxu0 %v6375_v41  ;;  %1478 = vmatpush1.bf16.msra.mxu1 %v6376_v42 }
 0x292   :  { %v1242_v63 = vpop.f32.mrb[12].mxu0  ;;  %1438 = vmatprep.subr.bf16.mxu0 %v6377_v44  ;;  %v1283_v27 = vpop.f32.mrb[12].mxu1  ;;  %1479 = vmatprep.subr.bf16.mxu1 %v6378_v45  ;;  %v6468_v44 = vld [vmem:[#allocation41_spill] sm:$0xff]  ;;  %v6470_v45 = vld [vmem:[#allocation44_spill] sm:$0xff] }
 0x293   :  { %v1243_v28 = vadd.f32 %v1242_v63, %v4278_v39  ;;  %v1244_v30 = vpop.f32.mrb[13].mxu0  ;;  %v1285_v32 = vpop.f32.mrb[13].mxu1  ;;  %v1284_v4 = vadd.f32 %v1283_v27, %v6475_v53  ;;  %v6482_v63 = vld [vmem:[#allocation56_spill] sm:$0xff]  ;;  %v6483_v27 = vld [vmem:[#allocation62_spill] sm:$0xff] }
 0x294   :  { %v1245_v55 = vadd.f32 %v1244_v30, %v4282_v40  ;;  %v1246_v33 = vpop.f32.mrb[14].mxu0  ;;  %v1287_v35 = vpop.f32.mrb[14].mxu1  ;;  %v1286_v12 = vadd.f32 %v1285_v32, %v4293_v18  ;;  %v6485_v30 = vld [vmem:[#allocation63_spill] sm:$0xff]  ;;  %v6486_v32 = vld [vmem:[#allocation60_spill] sm:$0xff] }
 0x295   :  { %v2814_v37 = vmul.f32 -1.442695, %v1243_v28  ;;  %v1247_v38 = vpop.f32.mrb[15].mxu0  ;;  %1439 = vmatpush1.bf16.msra.mxu0 %v6379_v14  ;;  %v1288_v41 = vpop.f32.mrb[15].mxu1  ;;  %1480 = vmatpush1.bf16.msra.mxu1 %v6381_v17  ;;  %v6473_v14 = vld [vmem:[#allocation48_spill] sm:$0xff]  ;;  %v6484_v28 = vld [vmem:[#allocation57_spill] sm:$0xff] }
 0x296   :  { %v2815_v42 = vmul.f32 -1.442695, %v1245_v55  ;;  %1440 = vmatprep.subr.bf16.mxu0 %v6468_v44  ;;  %1481 = vmatprep.subr.bf16.mxu1 %v6469_v22  ;;  %v2816_v17 = vmul.f32 -1.442695, %v1286_v12  ;;  %v6487_v55 = vld [vmem:[#allocation66_spill] sm:$0xff]  ;;  %v6488_v33 = vld [vmem:[#allocation61_spill] sm:$0xff] }
 0x297   :  { %3103 = vpow2.f32 %v2814_v37  ;;  %v6489_v35 = vld [vmem:[#allocation67_spill] sm:$0xff]  ;;  %v6490_v41 = vld [vmem:[#allocation64_spill] sm:$0xff]  ;;  %v6491_v22 = vld [vmem:[#allocation65_spill] sm:$0xff] }
 0x298   :  { %3105 = vpow2.f32 %v2815_v42 }
 0x299   :  { %1441 = vmatpush1.bf16.msra.mxu0 %v6470_v45  ;;  %1482 = vmatpush1.bf16.msra.mxu1 %v6471_v13  ;;  %3107 = vpow2.f32 %v2816_v17  ;;  %v6492_v45 = vld [vmem:[#allocation71_spill] sm:$0xff] }
 0x29a   :  { %1442 = vmatprep.subr.bf16.mxu0 %v6472_v51  ;;  %1483 = vmatprep.subr.bf16.mxu1 %v6388_v23  ;;  %3109 = vtanh.f32 %v1284_v4  ;;  %v6480_v23 = vld [vmem:[#allocation53_spill] sm:$0xff]  ;;  %v6498_v17 = vld [vmem:[#allocation19_spill] sm:$0xff] }
 0x29b   :  { %v6506_v4 = vld [vmem:[#allocation29_spill] sm:$0xff] }
 0x29d   :  { %1443 = vmatpush1.bf16.msra.mxu0 %v6473_v14  ;;  %1484 = vmatpush1.bf16.msra.mxu1 %v6474_v1  ;;  %v6505_v1 = vld [vmem:[#allocation28_spill] sm:$0xff] }
 0x29e   :  { %1444 = vmatprep.subr.bf16.mxu0 %v6476_v5  ;;  %1485 = vmatprep.subr.bf16.mxu1 %v6477_v3  ;;  %v6507_v5 = vld [vmem:[#allocation26_spill] sm:$0xff]  ;;  %v6508_v3 = vld [vmem:[#allocation27_spill] sm:$0xff] }
 0x2a1   :  { %v3104_v6 = vpop.eup %3103  ;;  %1445 = vmatpush1.bf16.msra.mxu0 %v6478_v7  ;;  %1486 = vmatpush1.bf16.msra.mxu1 %v6479_v52  ;;  %v6510_v7 = vld [vmem:[#allocation30_spill] sm:$0xff]  ;;  %v6511_v52 = vld [vmem:[#allocation35_spill] sm:$0xff] }
 0x2a2   :  { %v3106_v10 = vpop.eup %3105  ;;  %v1293_v8 = vadd.f32 1.0, %v3104_v6  ;;  %1446 = vmatprep.subr.bf16.mxu0 %v6480_v23  ;;  %1487 = vmatprep.subr.bf16.mxu1 %v6481_v9  ;;  %v6509_v6 = vld [vmem:[#allocation32_spill] sm:$0xff]  ;;  %v6514_v23 = vld [vmem:[#allocation33_spill] sm:$0xff]  ;;  %v6515_v9 = vld [vmem:[#allocation34_spill] sm:$0xff] }
 0x2a3   :  { %v1299_v11 = vadd.f32 1.0, %v3106_v10  ;;  %v3108_v37 = vpop.eup %3107  ;;  %v6512_v10 = vld [vmem:[#allocation31_spill] sm:$0xff] }
 0x2a4   :  { %3111 = vrcp.f32 %v1293_v8  ;;  %v3110_v38 = vpop.eup %3109  ;;  %v1306_v44 = vadd.f32 1.0, %v3108_v37  ;;  %v6513_v8 = vld [vmem:[#allocation36_spill] sm:$0xff] }
 0x2a5   :  { %3113 = vrcp.f32 %v1299_v11  ;;  %1447 = vmatpush1.bf16.msra.mxu0 %v6482_v63  ;;  %1488 = vmatpush1.bf16.msra.mxu1 %v6483_v27  ;;  %v6516_v11 = vld [vmem:[#allocation39_spill] sm:$0xff]  ;;  %v6517_v63 = vld [vmem:[#allocation37_spill] sm:$0xff]  ;;  %v6518_v27 = vld [vmem:[#allocation42_spill] sm:$0xff] }
 0x2a6   :  { %1448 = vmatprep.subr.bf16.mxu0 %v6484_v28  ;;  %1489 = vmatprep.subr.bf16.mxu1 %v6485_v30  ;;  %3115 = vrcp.f32 %v1306_v44  ;;  %v6519_v28 = vld [vmem:[#allocation38_spill] sm:$0xff]  ;;  %v6520_v30 = vld [vmem:[#allocation43_spill] sm:$0xff]  ;;  %v6525_v37 = vld [vmem:[#allocation68_spill] sm:$0xff] }
 0x2a7   :  { %v6529_v44 = vld [vmem:[#allocation72_spill] sm:$0xff] }
 0x2a9   :  { %1449 = vmatpush1.bf16.msra.mxu0 %v6486_v32  ;;  %1490 = vmatpush1.bf16.msra.mxu1 %v6487_v55  ;;  %v6521_v32 = vld [vmem:[#allocation40_spill] sm:$0xff]  ;;  %v6522_v55 = vld [vmem:[#allocation46_spill] sm:$0xff] }
 0x2aa   :  { %1450 = vmatprep.subr.bf16.mxu0 %v6488_v33  ;;  %1491 = vmatprep.subr.bf16.mxu1 %v6489_v35  ;;  %v6523_v33 = vld [vmem:[#allocation51_spill] sm:$0xff]  ;;  %v6524_v35 = vld [vmem:[#allocation70_spill] sm:$0xff] }
 0x2ad   :  { %1451 = vmatpush1.bf16.msra.mxu0 %v6490_v41  ;;  %1492 = vmatpush1.bf16.msra.mxu1 %v6406_v24  ;;  %v6496_v24 = vld [vmem:[#allocation80_spill] sm:$0xff]  ;;  %v6527_v41 = vld [vmem:[#allocation69_spill] sm:$0xff] }
 0x2ae   :  { %v3112_v42 = vpop.eup %3111  ;;  %1452 = vmatprep.subr.bf16.mxu0 %v6491_v22  ;;  %1493 = vmatprep.subr.bf16.mxu1 %v6492_v45  ;;  %v6530_v22 = vld [vmem:[#allocation78_spill] sm:$0xff]  ;;  %v6531_v45 = vld [vmem:[#allocation73_spill] sm:$0xff] }
 0x2af   :  { %v3114_v12 = vpop.eup %3113  ;;  %v1310_v13 = vmul.f32 %v3112_v42, %v3110_v38  ;;  %v6526_v38 = vld [vmem:[#allocation74_spill] sm:$0xff]  ;;  %v6528_v42 = vld [vmem:[#allocation75_spill] sm:$0xff] }
 0x2b0   :  { %v1309_v51 = vmul.f32 %v3114_v12, %v4330_v16  ;;  %v6493_v16 = vld [vmem:[#allocation79_spill] sm:$0xff]  ;;  %v6532_v12 = vld [vmem:[#allocation81_spill] sm:$0xff] }
 0x2b1   :  { %1453 = vmatpush1.bf16.msra.mxu0 %v6409_v15  ;;  %1494 = vmatpush1.bf16.msra.mxu1 %v6410_v43  ;;  %v6494_v15 = vld [vmem:[#allocation76_spill] sm:$0xff]  ;;  %v6495_v43 = vld [vmem:[#allocation77_spill] sm:$0xff] }
 0x2b2   :  { %v4578_v14 = vadd.f32 %v1310_v13, %v1309_v51  ;;  %1454 = vmatprep.subr.bf16.mxu0 %v6411_v49  ;;  %1495 = vmatprep.subr.bf16.mxu1 %v6412_v34  ;;  %v3116_v49 = vpop.eup %3115  ;;  %v6533_v13 = vld [vmem:[#allocation82_spill] sm:$0xff]  ;;  %v6534_v51 = vld [vmem:[#allocation83_spill] sm:$0xff] }
 0x2b4   :  { %3117 = vtanh.f32 %v4578_v14 }
 0x2b5   :  { %1455 = vmatpush1.bf16.msra.mxu0 %v6413_v46  ;;  %1496 = vmatpush1.bf16.msra.mxu1 %v6414_v50  ;;  %v1429_v46 = vld [vmem:[#allocation2 + $0x14] sm:$0xf] }
 0x2b6   :  { %1456 = vmatprep.subr.bf16.mxu0 %v6415_v47  ;;  %1497 = vmatprep.subr.bf16.mxu1 %v6493_v16  ;;  %v6535_v16 = vld [vmem:[#allocation84_spill] sm:$0xff] }
 0x2b9   :  { %1457 = vmatpush1.bf16.msra.mxu0 %v6494_v15  ;;  %1498 = vmatpush1.bf16.msra.mxu1 %v4142_v59  ;;  %v6497_v59 = vld [vmem:[#allocation18_spill] sm:$0xff]  ;;  %v6536_v15 = vld [vmem:[#allocation85_spill] sm:$0xff] }
 0x2ba   :  { %1458 = vmatprep.subr.bf16.mxu0 %v6495_v43  ;;  %1499 = vmatprep.subr.bf16.mxu1 %v6496_v24  ;;  %v6537_v43 = vld [vmem:[#allocation86_spill] sm:$0xff]  ;;  %v6538_v24 = vld [vmem:[#allocation88_spill] sm:$0xff] }
 0x2bd   :  { %1459 = vmatpush1.bf16.msra.mxu0 %v4136_v58  ;;  %1500 = vmatpush1.bf16.msra.mxu1 %v4152_v0  ;;  %v6499_v0 = vld [vmem:[#allocation20_spill] sm:$0xff]  ;;  %v6502_v58 = vld [vmem:[#allocation23_spill] sm:$0xff] }
 0x2be   :  { %v3118_v34 = vpop.eup %3117  ;;  %1460 = vmatprep.subr.bf16.mxu0 %v4139_v57  ;;  %1501 = vmatprep.subr.bf16.mxu1 %v4155_v61  ;;  %v6500_v57 = vld [vmem:[#allocation21_spill] sm:$0xff] }
 0x2bf   :  { %v1313_v47 = vmul.f32 %v3118_v34, %v3116_v49  ;;  %v6504_v61 = vld [vmem:[#allocation25_spill] sm:$0xff]  ;;  %v4644_v34 = vld [vmem:[#allocation5 + $0x168] ss:$16 sps:$4 sm:$0xff]  }
 0x2c0   :  { %v6539_v49 = vld [vmem:[#allocation89_spill] sm:$0xff]  ;;  %6540 = vst [vmem:[#allocation41_spill] sm:$0xff] %v4644_v34 }
 0x2c1   :  { %1461 = vmatpush1.bf16.msra.mxu0 %v4148_v54  ;;  %v1317_v50 = vpack.c.bf16 %v1313_v47, %v1313_v47  ;;  %1502 = vmatpush1.bf16.msra.mxu1 %v4159_v56  ;;  %v6501_v54 = vld [vmem:[#allocation22_spill] sm:$0xff]  ;;  %v6503_v56 = vld [vmem:[#allocation24_spill] sm:$0xff] }
 0x2c2   :  { %1544 = vmatprep.subr.bf16.mxu0 %v6497_v59  ;;  %1585 = vmatprep.subr.bf16.mxu1 %v6498_v17  ;;  %v4648_v47 = vld [vmem:[#allocation5 + $0x18c] ss:$16 sps:$4 sm:$0xff]  }
 0x2c3   :  { %1319 = vst [vmem:[#allocation9 + $0x18] sm:$0xf] %v1317_v50  ;;  %1462 = vmatprep.mubr.bf16.mxu0 %v1317_v50  ;;  %1503 = vmatprep.mubr.bf16.mxu1 %v1317_v50  ;;  %6541 = vst [vmem:[#allocation47_spill] sm:$0xff] %v4648_v47  ;;  %v4652_v50 = vld [vmem:[#allocation5 + $0x188] ss:$16 sps:$4 sm:$0xff]  }
 0x2c4   :  { %1463 = vmatmul.mubr.bf16.vlgmr.msra.gmra.mrb[20].mxu0 %v1429_v46  ;;  %1504 = vmatmul.mubr.bf16.vlgmr.msra.gmra.mrb[20].mxu1 %v1429_v46  ;;  %6542 = vst [vmem:[#allocation44_spill] sm:$0xff] %v4652_v50  ;;  %v6543_v46 = vld [vmem:[#allocation94_spill] sm:$0xff] }
 0x2c5   :  { %1545 = vmatpush1.bf16.msra.mxu0 %v4355_v48  ;;  %1586 = vmatpush1.bf16.msra.mxu1 %v6499_v0 }
 0x2c6   :  { %1546 = vmatprep.subr.bf16.mxu0 %v6500_v57  ;;  %1587 = vmatprep.subr.bf16.mxu1 %v6501_v54 }
 0x2c9   :  { %1547 = vmatpush1.bf16.msra.mxu0 %v6502_v58  ;;  %1588 = vmatpush1.bf16.msra.mxu1 %v6503_v56 }
 0x2ca   :  { %1548 = vmatprep.subr.bf16.mxu0 %v6504_v61  ;;  %1589 = vmatprep.subr.bf16.mxu1 %v6505_v1 }
 0x2cd   :  { %1549 = vmatpush1.bf16.msra.mxu0 %v6506_v4  ;;  %1590 = vmatpush1.bf16.msra.mxu1 %v6507_v5 }
 0x2ce   :  { %1550 = vmatprep.subr.bf16.mxu0 %v6508_v3  ;;  %1591 = vmatprep.subr.bf16.mxu1 %v6509_v6 }
 0x2d1   :  { %1551 = vmatpush1.bf16.msra.mxu0 %v6510_v7  ;;  %1592 = vmatpush1.bf16.msra.mxu1 %v6511_v52 }
 0x2d2   :  { %1552 = vmatprep.subr.bf16.mxu0 %v6512_v10  ;;  %1593 = vmatprep.subr.bf16.mxu1 %v6513_v8 }
 0x2d5   :  { %1553 = vmatpush1.bf16.msra.mxu0 %v6514_v23  ;;  %1594 = vmatpush1.bf16.msra.mxu1 %v6515_v9 }
 0x2d6   :  { %1554 = vmatprep.subr.bf16.mxu0 %v6516_v11  ;;  %1595 = vmatprep.subr.bf16.mxu1 %v6517_v63 }
 0x2d9   :  { %1555 = vmatpush1.bf16.msra.mxu0 %v6518_v27  ;;  %1596 = vmatpush1.bf16.msra.mxu1 %v6519_v28 }
 0x2da   :  { %1556 = vmatprep.subr.bf16.mxu0 %v6520_v30  ;;  %1597 = vmatprep.subr.bf16.mxu1 %v6521_v32 }
 0x2dd   :  { %1557 = vmatpush1.bf16.msra.mxu0 %v6522_v55  ;;  %1598 = vmatpush1.bf16.msra.mxu1 %v6523_v33 }
 0x2de   :  { %1558 = vmatprep.subr.bf16.mxu0 %v6524_v35  ;;  %1599 = vmatprep.subr.bf16.mxu1 %v6525_v37 }
 0x2e1   :  { %1559 = vmatpush1.bf16.msra.mxu0 %v6526_v38  ;;  %1600 = vmatpush1.bf16.msra.mxu1 %v6527_v41 }
 0x2e2   :  { %1560 = vmatprep.subr.bf16.mxu0 %v6528_v42  ;;  %1601 = vmatprep.subr.bf16.mxu1 %v6529_v44 }
 0x2e5   :  { %1561 = vmatpush1.bf16.msra.mxu0 %v6530_v22  ;;  %1602 = vmatpush1.bf16.msra.mxu1 %v6531_v45 }
 0x2e6   :  { %1562 = vmatprep.subr.bf16.mxu0 %v6532_v12  ;;  %1603 = vmatprep.subr.bf16.mxu1 %v6533_v13 }
 0x2e9   :  { %1563 = vmatpush1.bf16.msra.mxu0 %v6534_v51  ;;  %1604 = vmatpush1.bf16.msra.mxu1 %v6535_v16 }
 0x2ea   :  { %1564 = vmatprep.subr.bf16.mxu0 %v6536_v15  ;;  %1605 = vmatprep.subr.bf16.mxu1 %v6537_v43 }
 0x2ed   :  { %1565 = vmatpush1.bf16.msra.mxu0 %v4475_v60  ;;  %1606 = vmatpush1.bf16.msra.mxu1 %v6538_v24 }
 0x2ee   :  { %1566 = vmatprep.subr.bf16.mxu0 %v6539_v49  ;;  %1607 = vmatprep.subr.bf16.mxu1 %v4484_v26  ;;  %v4656_v26 = vld [vmem:[#allocation5 + $0x1ac] ss:$16 sps:$4 sm:$0xff]  }
 0x2ef   :  { %6544 = vst [vmem:[#allocation50_spill] sm:$0xff] %v4656_v26 }
 0x2f1   :  { %1567 = vmatpush1.bf16.msra.mxu0 %v4487_v31  ;;  %1608 = vmatpush1.bf16.msra.mxu1 %v4644_v34  ;;  %v4659_v31 = vld [vmem:[#allocation5 + $0x1a0] ss:$16 sps:$4 sm:$0xff]  }
 0x2f2   :  { %1568 = vmatprep.subr.bf16.mxu0 %v4491_v21  ;;  %1609 = vmatprep.subr.bf16.mxu1 %v4648_v47  ;;  %6545 = vst [vmem:[#allocation45_spill] sm:$0xff] %v4659_v31  ;;  %v4662_v21 = vld [vmem:[#allocation5 + $0x1a8] ss:$16 sps:$4 sm:$0xff]   ;;  %v4665_v47 = vld [vmem:[#allocation5 + $0x1c4] ss:$16 sps:$4 sm:$0xff]  }
 0x2f3   :  { %6546 = vst [vmem:[#allocation48_spill] sm:$0xff] %v4662_v21  ;;  %6547 = vst [vmem:[#allocation54_spill] sm:$0xff] %v4665_v47  ;;  %v6557_v34 = vld [vmem:[#allocation15_spill] sm:$0xff] }
 0x2f5   :  { %1569 = vmatpush1.bf16.msra.mxu0 %v4495_v25  ;;  %1610 = vmatpush1.bf16.msra.mxu1 %v4652_v50  ;;  %v4668_v25 = vld [vmem:[#allocation5 + $0x1cc] ss:$16 sps:$4 sm:$0xff]  }
 0x2f6   :  { %1570 = vmatprep.subr.bf16.mxu0 %v6543_v46  ;;  %1611 = vmatprep.subr.bf16.mxu1 %v4656_v26  ;;  %6548 = vst [vmem:[#allocation49_spill] sm:$0xff] %v4668_v25  ;;  %v4671_v46 = vld [vmem:[#allocation5 + $0x1c0] ss:$16 sps:$4 sm:$0xff]   ;;  %v4674_v26 = vld [vmem:[#allocation5 + $0x1c8] ss:$16 sps:$4 sm:$0xff]  }
 0x2f7   :  { %6549 = vst [vmem:[#allocation55_spill] sm:$0xff] %v4671_v46  ;;  %6550 = vst [vmem:[#allocation52_spill] sm:$0xff] %v4674_v26 }
 0x2f9   :  { %1571 = vmatpush1.bf16.msra.mxu0 %v4659_v31  ;;  %1612 = vmatpush1.bf16.msra.mxu1 %v4662_v21  ;;  %v4677_v31 = vld [vmem:[#allocation5 + $0x1e4] ss:$16 sps:$4 sm:$0xff]   ;;  %v4680_v21 = vld [vmem:[#allocation5 + $0x1ec] ss:$16 sps:$4 sm:$0xff]  }
 0x2fa   :  { %1572 = vmatprep.subr.bf16.mxu0 %v4665_v47  ;;  %1613 = vmatprep.subr.bf16.mxu1 %v4668_v25  ;;  %6551 = vst [vmem:[#allocation58_spill] sm:$0xff] %v4677_v31  ;;  %6552 = vst [vmem:[#allocation53_spill] sm:$0xff] %v4680_v21  ;;  %v4683_v47 = vld [vmem:[#allocation5 + $0x1e0] ss:$16 sps:$4 sm:$0xff]   ;;  %v4686_v25 = vld [vmem:[#allocation5 + $0x1e8] ss:$16 sps:$4 sm:$0xff]  }
 0x2fb   :  { %6553 = vst [vmem:[#allocation59_spill] sm:$0xff] %v4683_v47  ;;  %6554 = vst [vmem:[#allocation56_spill] sm:$0xff] %v4686_v25 }
 0x2fd   :  { %1573 = vmatpush1.bf16.msra.mxu0 %v4671_v46  ;;  %1614 = vmatpush1.bf16.msra.mxu1 %v4674_v26  ;;  %v4689_v46 = vld [vmem:[#allocation7 + $0x4] ss:$16 sps:$4 sm:$0xff]   ;;  %v4692_v26 = vld [vmem:[#allocation7 + $0xc] ss:$16 sps:$4 sm:$0xff]  }
 0x2fe   :  { %1574 = vmatprep.subr.bf16.mxu0 %v4677_v31  ;;  %1615 = vmatprep.subr.bf16.mxu1 %v4680_v21  ;;  %6555 = vst [vmem:[#allocation62_spill] sm:$0xff] %v4689_v46  ;;  %6556 = vst [vmem:[#allocation57_spill] sm:$0xff] %v4692_v26 }
 0x301   :  { %1575 = vmatpush1.bf16.msra.mxu0 %v4683_v47  ;;  %1616 = vmatpush1.bf16.msra.mxu1 %v4686_v25 }
 0x302   :  { %1652 = vmatprep.subr.bf16.mxu0 %v4689_v46  ;;  %1693 = vmatprep.subr.bf16.mxu1 %v4692_v26 }
 0x357   :  { %v1356_v31 = vpop.f32.mrb[16].mxu0  ;;  %v1397_v50 = vpop.f32.mrb[16].mxu1 }
 0x358   :  { %v1357_v21 = vadd.f32 %v1356_v31, %v6557_v34  ;;  %v1358_v49 = vpop.f32.mrb[17].mxu0  ;;  %v1399_v24 = vpop.f32.mrb[17].mxu1  ;;  %v1398_v26 = vadd.f32 %v1397_v50, %v4255_v36  ;;  %v4714_v50 = vld [vmem:[#allocation7 + $0x28] ss:$16 sps:$4 sm:$0xff]  }
 0x359   :  { %v1359_v47 = vadd.f32 %v1358_v49, %v4242_v20  ;;  %v1360_v60 = vpop.f32.mrb[18].mxu0  ;;  %v1401_v43 = vpop.f32.mrb[18].mxu1  ;;  %v1400_v46 = vadd.f32 %v1399_v24, %v4249_v29  ;;  %6558 = vst [vmem:[#allocation63_spill] sm:$0xff] %v4714_v50 }
 0x35a   :  { %v2817_v15 = vmul.f32 -1.442695, %v1357_v21  ;;  %v1361_v25 = vpop.f32.mrb[19].mxu0  ;;  %v1402_v16 = vpop.f32.mrb[19].mxu1 }
 0x35b   :  { %v2818_v51 = vmul.f32 -1.442695, %v1359_v47  ;;  %v2819_v13 = vmul.f32 -1.442695, %v1400_v46  ;;  %v1543_v47 = vld [vmem:[#allocation2 + $0xc] sm:$0xf] }
 0x35c   :  { %3119 = vpow2.f32 %v2817_v15  ;;  %v4717_v46 = vld [vmem:[#allocation7 + $0x44] ss:$16 sps:$4 sm:$0xff]  }
 0x35d   :  { %3121 = vpow2.f32 %v2818_v51  ;;  %6559 = vst [vmem:[#allocation60_spill] sm:$0xff] %v4717_v46 }
 0x35e   :  { %3123 = vpow2.f32 %v2819_v13 }
 0x35f   :  { %3125 = vtanh.f32 %v1398_v26 }
 0x366   :  { %v3120_v12 = vpop.eup %3119 }
 0x367   :  { %v3122_v31 = vpop.eup %3121  ;;  %v1407_v34 = vadd.f32 1.0, %v3120_v12 }
 0x368   :  { %v1413_v45 = vadd.f32 1.0, %v3122_v31  ;;  %v3124_v60 = vpop.eup %3123  ;;  %v4720_v31 = vld [vmem:[#allocation7 + $0x4c] ss:$16 sps:$4 sm:$0xff]  }
 0x369   :  { %3127 = vrcp.f32 %v1407_v34  ;;  %v3126_v21 = vpop.eup %3125  ;;  %v1420_v16 = vadd.f32 1.0, %v3124_v60  ;;  %v4711_v34 = vld [vmem:[#allocation7 + $0x20] ss:$16 sps:$4 sm:$0xff]   ;;  %6560 = vst [vmem:[#allocation66_spill] sm:$0xff] %v4720_v31 }
 0x36a   :  { %3129 = vrcp.f32 %v1413_v45  ;;  %v4704_v45 = vld [vmem:[#allocation7 + $0x8] ss:$16 sps:$4 sm:$0xff]   ;;  %v4723_v60 = vld [vmem:[#allocation7 + $0x40] ss:$16 sps:$4 sm:$0xff]  }
 0x36b   :  { %3131 = vrcp.f32 %v1420_v16  ;;  %6561 = vst [vmem:[#allocation61_spill] sm:$0xff] %v4723_v60  ;;  %v4732_v16 = vld [vmem:[#allocation7 + $0x6c] ss:$16 sps:$4 sm:$0xff]  }
 0x36c   :  { %6564 = vst [vmem:[#allocation65_spill] sm:$0xff] %v4732_v16 }
 0x373   :  { %v3128_v25 = vpop.eup %3127 }
 0x374   :  { %v3130_v43 = vpop.eup %3129  ;;  %v1424_v15 = vmul.f32 %v3128_v25, %v3126_v21  ;;  %v4726_v21 = vld [vmem:[#allocation7 + $0x48] ss:$16 sps:$4 sm:$0xff]   ;;  %v4729_v25 = vld [vmem:[#allocation7 + $0x64] ss:$16 sps:$4 sm:$0xff]  }
 0x375   :  { %v1423_v51 = vmul.f32 %v3130_v43, %v4520_v2  ;;  %v3132_v13 = vpop.eup %3131  ;;  %v4708_v2 = vld [vmem:[#allocation7 + $0x2c] ss:$16 sps:$4 sm:$0xff]   ;;  %6562 = vst [vmem:[#allocation67_spill] sm:$0xff] %v4726_v21  ;;  %6563 = vst [vmem:[#allocation64_spill] sm:$0xff] %v4729_v25  ;;  %v4735_v43 = vld [vmem:[#allocation7 + $0x60] ss:$16 sps:$4 sm:$0xff]  }
 0x376   :  { %6565 = vst [vmem:[#allocation71_spill] sm:$0xff] %v4735_v43 }
 0x377   :  { %v4700_v24 = vadd.f32 %v1424_v15, %v1423_v51  ;;  %v4738_v15 = vld [vmem:[#allocation7 + $0x68] ss:$16 sps:$4 sm:$0xff]  }
 0x378   :  { %6566 = vst [vmem:[#allocation79_spill] sm:$0xff] %v4738_v15 }
 0x379   :  { %3133 = vtanh.f32 %v4700_v24 }
 0x383   :  { %v3134_v49 = vpop.eup %3133 }
 0x384   :  { %v1427_v12 = vmul.f32 %v3134_v49, %v3132_v13  ;;  %v4741_v13 = vld [vmem:[#allocation7 + $0x84] ss:$16 sps:$4 sm:$0xff]  }
 0x385   :  { %6567 = vst [vmem:[#allocation76_spill] sm:$0xff] %v4741_v13 }
 0x386   :  { %v1536_v26 = vpack.c.bf16 %v1427_v12, %v1427_v12  ;;  %v4744_v12 = vld [vmem:[#allocation7 + $0x8c] ss:$16 sps:$4 sm:$0xff]  }
 0x387   :  { %6568 = vst [vmem:[#allocation77_spill] sm:$0xff] %v4744_v12 }
 0x388   :  { %1538 = vst [vmem:[#allocation8 + $0x8] sm:$0xf] %v1536_v26  ;;  %1576 = vmatprep.mubr.bf16.mxu0 %v1536_v26  ;;  %1617 = vmatprep.mubr.bf16.mxu1 %v1536_v26 }
 0x389   :  { %1577 = vmatmul.mubr.bf16.vlgmr.msra.gmra.mrb[24].mxu0 %v1543_v47  ;;  %1618 = vmatmul.mubr.bf16.vlgmr.msra.gmra.mrb[24].mxu1 %v1543_v47 }
 0x38a   :  { %1653 = vmatpush1.bf16.msra.mxu0 %v4523_v19  ;;  %1694 = vmatpush1.bf16.msra.mxu1 %v4704_v45 }
 0x38b   :  { %1654 = vmatprep.subr.bf16.mxu0 %v4527_v62  ;;  %1695 = vmatprep.subr.bf16.mxu1 %v4708_v2 }
 0x38e   :  { %1655 = vmatpush1.bf16.msra.mxu0 %v4711_v34  ;;  %1696 = vmatpush1.bf16.msra.mxu1 %v4714_v50  ;;  %v4755_v50 = vld [vmem:[#allocation7 + $0xa4] ss:$16 sps:$4 sm:$0xff]  }
 0x38f   :  { %1656 = vmatprep.subr.bf16.mxu0 %v4717_v46  ;;  %1697 = vmatprep.subr.bf16.mxu1 %v4720_v31  ;;  %v4749_v31 = vld [vmem:[#allocation7 + $0x80] ss:$16 sps:$4 sm:$0xff]   ;;  %v4752_v46 = vld [vmem:[#allocation7 + $0x88] ss:$16 sps:$4 sm:$0xff]  }
 0x392   :  { %1657 = vmatpush1.bf16.msra.mxu0 %v4723_v60  ;;  %1698 = vmatpush1.bf16.msra.mxu1 %v4726_v21 }
 0x393   :  { %1658 = vmatprep.subr.bf16.mxu0 %v4729_v25  ;;  %1699 = vmatprep.subr.bf16.mxu1 %v4732_v16 }
 0x396   :  { %1659 = vmatpush1.bf16.msra.mxu0 %v4735_v43  ;;  %1700 = vmatpush1.bf16.msra.mxu1 %v4738_v15 }
 0x397   :  { %v1464_v51 = vpop.f32.mrb[20].mxu0  ;;  %1660 = vmatprep.subr.bf16.mxu0 %v4741_v13  ;;  %v1505_v49 = vpop.f32.mrb[20].mxu1  ;;  %1701 = vmatprep.subr.bf16.mxu1 %v4744_v12 }
 0x398   :  { %v1465_v26 = vadd.f32 %v1464_v51, %v4278_v39  ;;  %v1466_v47 = vpop.f32.mrb[21].mxu0  ;;  %v1507_v16 = vpop.f32.mrb[21].mxu1  ;;  %v4758_v51 = vld [vmem:[#allocation7 + $0xac] ss:$16 sps:$4 sm:$0xff]  }
 0x399   :  { %v1467_v43 = vadd.f32 %v1466_v47, %v4282_v40  ;;  %v1468_v25 = vpop.f32.mrb[22].mxu0  ;;  %v1509_v21 = vpop.f32.mrb[22].mxu1  ;;  %6569 = vst [vmem:[#allocation80_spill] sm:$0xff] %v4758_v51  ;;  %v4781_v47 = vld [vmem:[#allocation7 + $0xe4] ss:$16 sps:$4 sm:$0xff]  }
 0x39a   :  { %v2820_v60 = vmul.f32 -1.442695, %v1465_v26  ;;  %v1469_v15 = vpop.f32.mrb[23].mxu0  ;;  %1661 = vmatpush1.bf16.msra.mxu0 %v4749_v31  ;;  %v1510_v13 = vpop.f32.mrb[23].mxu1  ;;  %1702 = vmatpush1.bf16.msra.mxu1 %v4752_v46  ;;  %v4761_v21 = vld [vmem:[#allocation7 + $0xa0] ss:$16 sps:$4 sm:$0xff]   ;;  %v1508_v25 = vadd.f32 %v1507_v16, %v4293_v18  ;;  %v1506_v16 = vadd.f32 %v1505_v49, %v6475_v53 }
 0x39b   :  { %v2821_v12 = vmul.f32 -1.442695, %v1467_v43  ;;  %1662 = vmatprep.subr.bf16.mxu0 %v4755_v50  ;;  %1703 = vmatprep.subr.bf16.mxu1 %v4758_v51  ;;  %v4765_v15 = vld [vmem:[#allocation7 + $0xa8] ss:$16 sps:$4 sm:$0xff]   ;;  %v4768_v43 = vld [vmem:[#allocation7 + $0xc4] ss:$16 sps:$4 sm:$0xff]  }
 0x39c   :  { %3135 = vpow2.f32 %v2820_v60  ;;  %6570 = vst [vmem:[#allocation18_spill] sm:$0xff] %v4765_v15  ;;  %6571 = vst [vmem:[#allocation19_spill] sm:$0xff] %v4768_v43  ;;  %v4771_v13 = vld [vmem:[#allocation7 + $0xcc] ss:$16 sps:$4 sm:$0xff]   ;;  %v4774_v60 = vld [vmem:[#allocation7 + $0xc0] ss:$16 sps:$4 sm:$0xff]  }
 0x39d   :  { %3137 = vpow2.f32 %v2821_v12  ;;  %6572 = vst [vmem:[#allocation20_spill] sm:$0xff] %v4771_v13  ;;  %6573 = vst [vmem:[#allocation21_spill] sm:$0xff] %v4774_v60  ;;  %v2822_v12 = vmul.f32 -1.442695, %v1508_v25  ;;  %v4777_v26 = vld [vmem:[#allocation7 + $0xc8] ss:$16 sps:$4 sm:$0xff]  }
 0x39e   :  { %1663 = vmatpush1.bf16.msra.mxu0 %v4761_v21  ;;  %1704 = vmatpush1.bf16.msra.mxu1 %v4765_v15  ;;  %6574 = vst [vmem:[#allocation22_spill] sm:$0xff] %v4777_v26  ;;  %6575 = vst [vmem:[#allocation23_spill] sm:$0xff] %v4781_v47  ;;  %v4787_v15 = vld [vmem:[#allocation7 + $0xe0] ss:$16 sps:$4 sm:$0xff]   ;;  %v4790_v25 = vld [vmem:[#allocation7 + $0xe8] ss:$16 sps:$4 sm:$0xff]  }
 0x39f   :  { %1664 = vmatprep.subr.bf16.mxu0 %v4768_v43  ;;  %1705 = vmatprep.subr.bf16.mxu1 %v4771_v13  ;;  %v4784_v43 = vld [vmem:[#allocation7 + $0xec] ss:$16 sps:$4 sm:$0xff]   ;;  %3139 = vpow2.f32 %v2822_v12  ;;  %6577 = vst [vmem:[#allocation25_spill] sm:$0xff] %v4787_v15  ;;  %6578 = vst [vmem:[#allocation28_spill] sm:$0xff] %v4790_v25  ;;  %v4793_v53 = vld [vmem:[#allocation7 + $0x104] ss:$16 sps:$4 sm:$0xff]  }
 0x3a0   :  { %6576 = vst [vmem:[#allocation24_spill] sm:$0xff] %v4784_v43  ;;  %3141 = vtanh.f32 %v1506_v16  ;;  %6579 = vst [vmem:[#allocation29_spill] sm:$0xff] %v4793_v53  ;;  %v4808_v16 = vld [vmem:[#allocation7 + $0x12c] ss:$16 sps:$4 sm:$0xff]   ;;  %v4836_v18 = vld [vmem:[#allocation7 + $0x160] ss:$16 sps:$4 sm:$0xff]  }
 0x3a1   :  { %6584 = vst [vmem:[#allocation35_spill] sm:$0xff] %v4808_v16 }
 0x3a2   :  { %1665 = vmatpush1.bf16.msra.mxu0 %v4774_v60  ;;  %1706 = vmatpush1.bf16.msra.mxu1 %v4777_v26 }
 0x3a3   :  { %1666 = vmatprep.subr.bf16.mxu0 %v4781_v47  ;;  %1707 = vmatprep.subr.bf16.mxu1 %v4784_v43  ;;  %v4796_v47 = vld [vmem:[#allocation7 + $0x10c] ss:$16 sps:$4 sm:$0xff]   ;;  %v4799_v43 = vld [vmem:[#allocation7 + $0x100] ss:$16 sps:$4 sm:$0xff]  }
 0x3a4   :  { %6580 = vst [vmem:[#allocation26_spill] sm:$0xff] %v4796_v47  ;;  %6581 = vst [vmem:[#allocation27_spill] sm:$0xff] %v4799_v43 }
 0x3a6   :  { %v3136_v13 = vpop.eup %3135  ;;  %1667 = vmatpush1.bf16.msra.mxu0 %v4787_v15  ;;  %1708 = vmatpush1.bf16.msra.mxu1 %v4790_v25  ;;  %v4802_v15 = vld [vmem:[#allocation7 + $0x108] ss:$16 sps:$4 sm:$0xff]  }
 0x3a7   :  { %v3138_v26 = vpop.eup %3137  ;;  %v1515_v49 = vadd.f32 1.0, %v3136_v13  ;;  %1668 = vmatprep.subr.bf16.mxu0 %v4793_v53  ;;  %1709 = vmatprep.subr.bf16.mxu1 %v4796_v47  ;;  %6582 = vst [vmem:[#allocation32_spill] sm:$0xff] %v4802_v15  ;;  %v4805_v13 = vld [vmem:[#allocation7 + $0x124] ss:$16 sps:$4 sm:$0xff]   ;;  %v4811_v47 = vld [vmem:[#allocation7 + $0x120] ss:$16 sps:$4 sm:$0xff]  }
 0x3a8   :  { %v1521_v12 = vadd.f32 1.0, %v3138_v26  ;;  %6583 = vst [vmem:[#allocation30_spill] sm:$0xff] %v4805_v13  ;;  %6585 = vst [vmem:[#allocation31_spill] sm:$0xff] %v4811_v47  ;;  %v4814_v26 = vld [vmem:[#allocation7 + $0x128] ss:$16 sps:$4 sm:$0xff]  }
 0x3a9   :  { %3143 = vrcp.f32 %v1515_v49  ;;  %6586 = vst [vmem:[#allocation36_spill] sm:$0xff] %v4814_v26  ;;  %v4817_v49 = vld [vmem:[#allocation7 + $0x144] ss:$16 sps:$4 sm:$0xff]  }
 0x3aa   :  { %3145 = vrcp.f32 %v1521_v12  ;;  %1669 = vmatpush1.bf16.msra.mxu0 %v4799_v43  ;;  %1710 = vmatpush1.bf16.msra.mxu1 %v4802_v15  ;;  %6587 = vst [vmem:[#allocation33_spill] sm:$0xff] %v4817_v49  ;;  %v4820_v12 = vld [vmem:[#allocation7 + $0x14c] ss:$16 sps:$4 sm:$0xff]   ;;  %v4823_v43 = vld [vmem:[#allocation7 + $0x140] ss:$16 sps:$4 sm:$0xff]  }
 0x3ab   :  { %1670 = vmatprep.subr.bf16.mxu0 %v4805_v13  ;;  %1711 = vmatprep.subr.bf16.mxu1 %v4808_v16  ;;  %6588 = vst [vmem:[#allocation34_spill] sm:$0xff] %v4820_v12  ;;  %v3140_v13 = vpop.eup %3139  ;;  %6589 = vst [vmem:[#allocation39_spill] sm:$0xff] %v4823_v43  ;;  %v4826_v16 = vld [vmem:[#allocation7 + $0x148] ss:$16 sps:$4 sm:$0xff]   ;;  %v4829_v53 = vld [vmem:[#allocation7 + $0x164] ss:$16 sps:$4 sm:$0xff]  }
 0x3ac   :  { %v3142_v15 = vpop.eup %3141  ;;  %6590 = vst [vmem:[#allocation37_spill] sm:$0xff] %v4826_v16  ;;  %6591 = vst [vmem:[#allocation42_spill] sm:$0xff] %v4829_v53 }
 0x3ae   :  { %1671 = vmatpush1.bf16.msra.mxu0 %v4811_v47  ;;  %1712 = vmatpush1.bf16.msra.mxu1 %v4814_v26  ;;  %v1528_v26 = vadd.f32 1.0, %v3140_v13 }
 0x3af   :  { %1672 = vmatprep.subr.bf16.mxu0 %v4817_v49  ;;  %1713 = vmatprep.subr.bf16.mxu1 %v4820_v12  ;;  %v4832_v49 = vld [vmem:[#allocation7 + $0x16c] ss:$16 sps:$4 sm:$0xff]  }
 0x3b0   :  { %6592 = vst [vmem:[#allocation38_spill] sm:$0xff] %v4832_v49  ;;  %3147 = vrcp.f32 %v1528_v26  ;;  %v4866_v26 = vld [vmem:[#allocation7 + $0x1a8] ss:$16 sps:$4 sm:$0xff]  }
 0x3b1   :  { %6601 = vst [vmem:[#allocation75_spill] sm:$0xff] %v4866_v26 }
 0x3b2   :  { %1673 = vmatpush1.bf16.msra.mxu0 %v4823_v43  ;;  %1714 = vmatpush1.bf16.msra.mxu1 %v4826_v16  ;;  %v4839_v43 = vld [vmem:[#allocation7 + $0x168] ss:$16 sps:$4 sm:$0xff]  }
 0x3b3   :  { %v3144_v47 = vpop.eup %3143  ;;  %1674 = vmatprep.subr.bf16.mxu0 %v4829_v53  ;;  %1715 = vmatprep.subr.bf16.mxu1 %v4832_v49  ;;  %6593 = vst [vmem:[#allocation43_spill] sm:$0xff] %v4839_v43  ;;  %v4844_v53 = vld [vmem:[#allocation7 + $0x184] ss:$16 sps:$4 sm:$0xff]   ;;  %v4847_v49 = vld [vmem:[#allocation7 + $0x18c] ss:$16 sps:$4 sm:$0xff]  }
 0x3b4   :  { %v3146_v12 = vpop.eup %3145  ;;  %v1532_v25 = vmul.f32 %v3144_v47, %v3142_v15  ;;  %6594 = vst [vmem:[#allocation40_spill] sm:$0xff] %v4844_v53  ;;  %6595 = vst [vmem:[#allocation46_spill] sm:$0xff] %v4847_v49  ;;  %v4854_v15 = vld [vmem:[#allocation7 + $0x188] ss:$16 sps:$4 sm:$0xff]   ;;  %v4860_v47 = vld [vmem:[#allocation7 + $0x1ac] ss:$16 sps:$4 sm:$0xff]  }
 0x3b5   :  { %v1531_v60 = vmul.f32 %v3146_v12, %v4578_v14  ;;  %v4851_v14 = vld [vmem:[#allocation7 + $0x180] ss:$16 sps:$4 sm:$0xff]   ;;  %6597 = vst [vmem:[#allocation70_spill] sm:$0xff] %v4854_v15  ;;  %6599 = vst [vmem:[#allocation74_spill] sm:$0xff] %v4860_v47  ;;  %v4869_v12 = vld [vmem:[#allocation7 + $0x1c4] ss:$16 sps:$4 sm:$0xff]  }
 0x3b6   :  { %1675 = vmatpush1.bf16.msra.mxu0 %v4836_v18  ;;  %1716 = vmatpush1.bf16.msra.mxu1 %v4839_v43  ;;  %6596 = vst [vmem:[#allocation51_spill] sm:$0xff] %v4851_v14  ;;  %6602 = vst [vmem:[#allocation72_spill] sm:$0xff] %v4869_v12  ;;  %v4890_v43 = vld [vmem:[#allocation7 + $0x1e8] ss:$16 sps:$4 sm:$0xff]  }
 0x3b7   :  { %v4842_v13 = vadd.f32 %v1532_v25, %v1531_v60  ;;  %1676 = vmatprep.subr.bf16.mxu0 %v4844_v53  ;;  %1717 = vmatprep.subr.bf16.mxu1 %v4847_v49  ;;  %v4857_v60 = vld [vmem:[#allocation7 + $0x1a4] ss:$16 sps:$4 sm:$0xff]   ;;  %v4863_v25 = vld [vmem:[#allocation7 + $0x1a0] ss:$16 sps:$4 sm:$0xff]  }
 0x3b8   :  { %6598 = vst [vmem:[#allocation68_spill] sm:$0xff] %v4857_v60  ;;  %6600 = vst [vmem:[#allocation69_spill] sm:$0xff] %v4863_v25  ;;  %v4881_v49 = vld [vmem:[#allocation7 + $0x1e4] ss:$16 sps:$4 sm:$0xff]  }
 0x3b9   :  { %3149 = vtanh.f32 %v4842_v13 }
 0x3ba   :  { %1677 = vmatpush1.bf16.msra.mxu0 %v4851_v14  ;;  %1718 = vmatpush1.bf16.msra.mxu1 %v4854_v15  ;;  %v4872_v15 = vld [vmem:[#allocation7 + $0x1cc] ss:$16 sps:$4 sm:$0xff]   ;;  %v4875_v14 = vld [vmem:[#allocation7 + $0x1c0] ss:$16 sps:$4 sm:$0xff]  }
 0x3bb   :  { %1678 = vmatprep.subr.bf16.mxu0 %v4857_v60  ;;  %1719 = vmatprep.subr.bf16.mxu1 %v4860_v47  ;;  %6603 = vst [vmem:[#allocation78_spill] sm:$0xff] %v4872_v15  ;;  %v3148_v60 = vpop.eup %3147  ;;  %6604 = vst [vmem:[#allocation95_spill] sm:$0xff] %v4875_v14  ;;  %v4878_v47 = vld [vmem:[#allocation7 + $0x1c8] ss:$16 sps:$4 sm:$0xff]  }
 0x3be   :  { %1679 = vmatpush1.bf16.msra.mxu0 %v4863_v25  ;;  %1720 = vmatpush1.bf16.msra.mxu1 %v4866_v26  ;;  %v4884_v26 = vld [vmem:[#allocation7 + $0x1ec] ss:$16 sps:$4 sm:$0xff]  }
 0x3bf   :  { %1680 = vmatprep.subr.bf16.mxu0 %v4869_v12  ;;  %1721 = vmatprep.subr.bf16.mxu1 %v4872_v15  ;;  %v4887_v15 = vld [vmem:[#allocation7 + $0x1e0] ss:$16 sps:$4 sm:$0xff]  }
 0x3c2   :  { %1681 = vmatpush1.bf16.msra.mxu0 %v4875_v14  ;;  %1722 = vmatpush1.bf16.msra.mxu1 %v4878_v47  ;;  %v1651_v14 = vld [vmem:[#allocation2 + $0x10] sm:$0xf] }
 0x3c3   :  { %v3150_v25 = vpop.eup %3149  ;;  %1682 = vmatprep.subr.bf16.mxu0 %v4881_v49  ;;  %1723 = vmatprep.subr.bf16.mxu1 %v4884_v26 }
 0x3c4   :  { %v1535_v12 = vmul.f32 %v3150_v25, %v3148_v60 }
 0x3c6   :  { %1683 = vmatpush1.bf16.msra.mxu0 %v4887_v15  ;;  %v1539_v53 = vpack.c.bf16 %v1535_v12, %v1535_v12  ;;  %1724 = vmatpush1.bf16.msra.mxu1 %v4890_v43 }
 0x3c7   :  { %1765 = vmatprep.subr.bf16.mxu0 %v6497_v59  ;;  %1806 = vmatprep.subr.bf16.mxu1 %v6498_v17  ;;  %v6607_v59 = vld [vmem:[#allocation82_spill] sm:$0xff]  ;;  %v6608_v17 = vld [vmem:[#allocation83_spill] sm:$0xff] }
 0x3c8   :  { %1541 = vst [vmem:[#allocation9 + $0x14] sm:$0xf] %v1539_v53  ;;  %1684 = vmatprep.mubr.bf16.mxu0 %v1539_v53  ;;  %1725 = vmatprep.mubr.bf16.mxu1 %v1539_v53  ;;  %v6606_v53 = vld [vmem:[#allocation81_spill] sm:$0xff] }
 0x3c9   :  { %1685 = vmatmul.mubr.bf16.vlgmr.msra.gmra.mrb[28].mxu0 %v1651_v14  ;;  %1726 = vmatmul.mubr.bf16.vlgmr.msra.gmra.mrb[28].mxu1 %v1651_v14 }
 0x3ca   :  { %1766 = vmatpush1.bf16.msra.mxu0 %v4355_v48  ;;  %1807 = vmatpush1.bf16.msra.mxu1 %v6499_v0  ;;  %v6605_v48 = vld [vmem:[#allocation73_spill] sm:$0xff]  ;;  %v6609_v0 = vld [vmem:[#allocation84_spill] sm:$0xff] }
 0x3cb   :  { %1767 = vmatprep.subr.bf16.mxu0 %v6500_v57  ;;  %1808 = vmatprep.subr.bf16.mxu1 %v6501_v54  ;;  %v6610_v57 = vld [vmem:[#allocation85_spill] sm:$0xff]  ;;  %v6611_v54 = vld [vmem:[#allocation86_spill] sm:$0xff] }
 0x3ce   :  { %1768 = vmatpush1.bf16.msra.mxu0 %v6502_v58  ;;  %1809 = vmatpush1.bf16.msra.mxu1 %v6503_v56  ;;  %v6612_v58 = vld [vmem:[#allocation87_spill] sm:$0xff]  ;;  %v6613_v56 = vld [vmem:[#allocation88_spill] sm:$0xff] }
 0x3cf   :  { %1769 = vmatprep.subr.bf16.mxu0 %v6504_v61  ;;  %1810 = vmatprep.subr.bf16.mxu1 %v6505_v1  ;;  %v6614_v61 = vld [vmem:[#allocation89_spill] sm:$0xff]  ;;  %v6615_v1 = vld [vmem:[#allocation90_spill] sm:$0xff] }
 0x3d2   :  { %1770 = vmatpush1.bf16.msra.mxu0 %v6506_v4  ;;  %1811 = vmatpush1.bf16.msra.mxu1 %v6507_v5  ;;  %v6616_v4 = vld [vmem:[#allocation91_spill] sm:$0xff]  ;;  %v6617_v5 = vld [vmem:[#allocation41_spill] sm:$0xff] }
 0x3d3   :  { %1771 = vmatprep.subr.bf16.mxu0 %v6508_v3  ;;  %1812 = vmatprep.subr.bf16.mxu1 %v6509_v6  ;;  %v6618_v3 = vld [vmem:[#allocation92_spill] sm:$0xff]  ;;  %v6619_v6 = vld [vmem:[#allocation47_spill] sm:$0xff] }
 0x3d6   :  { %1772 = vmatpush1.bf16.msra.mxu0 %v6510_v7  ;;  %1813 = vmatpush1.bf16.msra.mxu1 %v6511_v52  ;;  %v6620_v7 = vld [vmem:[#allocation93_spill] sm:$0xff]  ;;  %v6621_v52 = vld [vmem:[#allocation44_spill] sm:$0xff] }
 0x3d7   :  { %1773 = vmatprep.subr.bf16.mxu0 %v6512_v10  ;;  %1814 = vmatprep.subr.bf16.mxu1 %v6513_v8  ;;  %v6622_v10 = vld [vmem:[#allocation94_spill] sm:$0xff] }
 0x3d8   :  { %v6623_v8 = vld [vmem:[#allocation50_spill] sm:$0xff] }
 0x3da   :  { %1774 = vmatpush1.bf16.msra.mxu0 %v6514_v23  ;;  %1815 = vmatpush1.bf16.msra.mxu1 %v6515_v9  ;;  %v6624_v23 = vld [vmem:[#allocation45_spill] sm:$0xff]  ;;  %v6625_v9 = vld [vmem:[#allocation48_spill] sm:$0xff] }
 0x3db   :  { %1775 = vmatprep.subr.bf16.mxu0 %v6516_v11  ;;  %1816 = vmatprep.subr.bf16.mxu1 %v6517_v63  ;;  %v6626_v11 = vld [vmem:[#allocation54_spill] sm:$0xff]  ;;  %v6627_v63 = vld [vmem:[#allocation49_spill] sm:$0xff] }
 0x3de   :  { %1776 = vmatpush1.bf16.msra.mxu0 %v6518_v27  ;;  %1817 = vmatpush1.bf16.msra.mxu1 %v6519_v28  ;;  %v6628_v27 = vld [vmem:[#allocation55_spill] sm:$0xff]  ;;  %v6629_v28 = vld [vmem:[#allocation52_spill] sm:$0xff] }
 0x3df   :  { %1777 = vmatprep.subr.bf16.mxu0 %v6520_v30  ;;  %1818 = vmatprep.subr.bf16.mxu1 %v6521_v32  ;;  %v6630_v30 = vld [vmem:[#allocation58_spill] sm:$0xff]  ;;  %v6631_v32 = vld [vmem:[#allocation53_spill] sm:$0xff] }
 0x3e2   :  { %1778 = vmatpush1.bf16.msra.mxu0 %v6522_v55  ;;  %1819 = vmatpush1.bf16.msra.mxu1 %v6523_v33  ;;  %v6632_v55 = vld [vmem:[#allocation59_spill] sm:$0xff]  ;;  %v6633_v33 = vld [vmem:[#allocation56_spill] sm:$0xff] }
 0x3e3   :  { %1779 = vmatprep.subr.bf16.mxu0 %v6524_v35  ;;  %1820 = vmatprep.subr.bf16.mxu1 %v6525_v37  ;;  %v6634_v35 = vld [vmem:[#allocation62_spill] sm:$0xff]  ;;  %v6635_v37 = vld [vmem:[#allocation57_spill] sm:$0xff] }
 0x3e6   :  { %1780 = vmatpush1.bf16.msra.mxu0 %v6526_v38  ;;  %1821 = vmatpush1.bf16.msra.mxu1 %v6527_v41 }
 0x3e7   :  { %1781 = vmatprep.subr.bf16.mxu0 %v6528_v42  ;;  %1822 = vmatprep.subr.bf16.mxu1 %v6529_v44  ;;  %v6636_v42 = vld [vmem:[#allocation15_spill] sm:$0xff] }
 0x3ea   :  { %1782 = vmatpush1.bf16.msra.mxu0 %v6530_v22  ;;  %1823 = vmatpush1.bf16.msra.mxu1 %v6605_v48 }
 0x3eb   :  { %1783 = vmatprep.subr.bf16.mxu0 %v6606_v53  ;;  %1824 = vmatprep.subr.bf16.mxu1 %v6607_v59 }
 0x3ee   :  { %1784 = vmatpush1.bf16.msra.mxu0 %v6608_v17  ;;  %1825 = vmatpush1.bf16.msra.mxu1 %v6609_v0 }
 0x3ef   :  { %1785 = vmatprep.subr.bf16.mxu0 %v6610_v57  ;;  %1826 = vmatprep.subr.bf16.mxu1 %v6611_v54 }
 0x3f2   :  { %1786 = vmatpush1.bf16.msra.mxu0 %v6612_v58  ;;  %1827 = vmatpush1.bf16.msra.mxu1 %v6613_v56 }
 0x3f3   :  { %1787 = vmatprep.subr.bf16.mxu0 %v6614_v61  ;;  %1828 = vmatprep.subr.bf16.mxu1 %v6615_v1 }
 0x3f6   :  { %1788 = vmatpush1.bf16.msra.mxu0 %v6616_v4  ;;  %1829 = vmatpush1.bf16.msra.mxu1 %v6617_v5 }
 0x3f7   :  { %1789 = vmatprep.subr.bf16.mxu0 %v6618_v3  ;;  %1830 = vmatprep.subr.bf16.mxu1 %v6619_v6 }
 0x3fa   :  { %1790 = vmatpush1.bf16.msra.mxu0 %v6620_v7  ;;  %1831 = vmatpush1.bf16.msra.mxu1 %v6621_v52 }
 0x3fb   :  { %1791 = vmatprep.subr.bf16.mxu0 %v6622_v10  ;;  %1832 = vmatprep.subr.bf16.mxu1 %v6623_v8 }
 0x3fe   :  { %1792 = vmatpush1.bf16.msra.mxu0 %v6624_v23  ;;  %1833 = vmatpush1.bf16.msra.mxu1 %v6625_v9 }
 0x3ff   :  { %1793 = vmatprep.subr.bf16.mxu0 %v6626_v11  ;;  %1834 = vmatprep.subr.bf16.mxu1 %v6627_v63 }
 0x402   :  { %1794 = vmatpush1.bf16.msra.mxu0 %v6628_v27  ;;  %1835 = vmatpush1.bf16.msra.mxu1 %v6629_v28 }
 0x403   :  { %1795 = vmatprep.subr.bf16.mxu0 %v6630_v30  ;;  %1836 = vmatprep.subr.bf16.mxu1 %v6631_v32 }
 0x406   :  { %1796 = vmatpush1.bf16.msra.mxu0 %v6632_v55  ;;  %1837 = vmatpush1.bf16.msra.mxu1 %v6633_v33 }
 0x407   :  { %1872 = vmatprep.subr.bf16.mxu0 %v6634_v35  ;;  %1913 = vmatprep.subr.bf16.mxu1 %v6635_v37 }
 0x45c   :  { %v1578_v38 = vpop.f32.mrb[24].mxu0  ;;  %v1619_v41 = vpop.f32.mrb[24].mxu1 }
 0x45d   :  { %v1579_v44 = vadd.f32 %v1578_v38, %v6636_v42  ;;  %v1580_v22 = vpop.f32.mrb[25].mxu0  ;;  %v1621_v14 = vpop.f32.mrb[25].mxu1  ;;  %v1620_v54 = vadd.f32 %v1619_v41, %v4255_v36 }
 0x45e   :  { %v1581_v60 = vadd.f32 %v1580_v22, %v4242_v20  ;;  %v1582_v25 = vpop.f32.mrb[26].mxu0  ;;  %v1623_v12 = vpop.f32.mrb[26].mxu1  ;;  %v1622_v0 = vadd.f32 %v1621_v14, %v4249_v29 }
 0x45f   :  { %v2823_v48 = vmul.f32 -1.442695, %v1579_v44  ;;  %v1583_v53 = vpop.f32.mrb[27].mxu0  ;;  %v1624_v59 = vpop.f32.mrb[27].mxu1 }
 0x460   :  { %v2824_v17 = vmul.f32 -1.442695, %v1581_v60  ;;  %v2825_v57 = vmul.f32 -1.442695, %v1622_v0  ;;  %v6638_v53 = vld [vmem:[#allocation60_spill] sm:$0xff]  ;;  %v6639_v59 = vld [vmem:[#allocation66_spill] sm:$0xff] }
 0x461   :  { %3151 = vpow2.f32 %v2823_v48  ;;  %v1764_v48 = vld [vmem:[#allocation2 + $0x10] sm:$0xf]  ;;  %v6641_v0 = vld [vmem:[#allocation67_spill] sm:$0xff] }
 0x462   :  { %3153 = vpow2.f32 %v2824_v17  ;;  %v6640_v17 = vld [vmem:[#allocation61_spill] sm:$0xff] }
 0x463   :  { %3155 = vpow2.f32 %v2825_v57  ;;  %v6642_v57 = vld [vmem:[#allocation64_spill] sm:$0xff] }
 0x464   :  { %3157 = vtanh.f32 %v1620_v54  ;;  %v6644_v54 = vld [vmem:[#allocation71_spill] sm:$0xff] }
 0x46b   :  { %v3152_v58 = vpop.eup %3151 }
 0x46c   :  { %v3154_v56 = vpop.eup %3153  ;;  %v1629_v61 = vadd.f32 1.0, %v3152_v58 }
 0x46d   :  { %v1635_v1 = vadd.f32 1.0, %v3154_v56  ;;  %v3156_v4 = vpop.eup %3155  ;;  %v6646_v56 = vld [vmem:[#allocation76_spill] sm:$0xff] }
 0x46e   :  { %3159 = vrcp.f32 %v1629_v61  ;;  %v3158_v3 = vpop.eup %3157  ;;  %v1642_v10 = vadd.f32 1.0, %v3156_v4 }
 0x46f   :  { %3161 = vrcp.f32 %v1635_v1  ;;  %v6647_v1 = vld [vmem:[#allocation77_spill] sm:$0xff] }
 0x470   :  { %3163 = vrcp.f32 %v1642_v10 }
 0x478   :  { %v3160_v7 = vpop.eup %3159 }
 0x479   :  { %v3162_v38 = vpop.eup %3161  ;;  %v1646_v44 = vmul.f32 %v3160_v7, %v3158_v3 }
 0x47a   :  { %v1645_v22 = vmul.f32 %v3162_v38, %v4700_v24  ;;  %v3164_v41 = vpop.eup %3163  ;;  %v6637_v24 = vld [vmem:[#allocation63_spill] sm:$0xff] }
 0x47c   :  { %v4964_v14 = vadd.f32 %v1646_v44, %v1645_v22 }
 0x47e   :  { %3165 = vtanh.f32 %v4964_v14 }
 0x488   :  { %v3166_v60 = vpop.eup %3165 }
 0x489   :  { %v1649_v25 = vmul.f32 %v3166_v60, %v3164_v41 }
 0x48b   :  { %v1758_v12 = vpack.c.bf16 %v1649_v25, %v1649_v25 }
 0x48d   :  { %1760 = vst [vmem:[#allocation8 + $0xc] sm:$0xf] %v1758_v12  ;;  %1797 = vmatprep.mubr.bf16.mxu0 %v1758_v12  ;;  %1838 = vmatprep.mubr.bf16.mxu1 %v1758_v12  ;;  %v6648_v12 = vld [vmem:[#allocation16_spill] sm:$0xff] }
 0x48e   :  { %1798 = vmatmul.mubr.bf16.vlgmr.msra.gmra.mrb[32].mxu0 %v1764_v48  ;;  %1839 = vmatmul.mubr.bf16.vlgmr.msra.gmra.mrb[32].mxu1 %v1764_v48 }
 0x48f   :  { %1873 = vmatpush1.bf16.msra.mxu0 %v4523_v19  ;;  %1914 = vmatpush1.bf16.msra.mxu1 %v4704_v45  ;;  %v6643_v19 = vld [vmem:[#allocation65_spill] sm:$0xff] }
 0x490   :  { %1874 = vmatprep.subr.bf16.mxu0 %v4527_v62  ;;  %1915 = vmatprep.subr.bf16.mxu1 %v4708_v2  ;;  %v6645_v62 = vld [vmem:[#allocation79_spill] sm:$0xff] }
 0x493   :  { %1875 = vmatpush1.bf16.msra.mxu0 %v4711_v34  ;;  %1916 = vmatpush1.bf16.msra.mxu1 %v6637_v24 }
 0x494   :  { %1876 = vmatprep.subr.bf16.mxu0 %v6638_v53  ;;  %1917 = vmatprep.subr.bf16.mxu1 %v6639_v59 }
 0x497   :  { %1877 = vmatpush1.bf16.msra.mxu0 %v6640_v17  ;;  %1918 = vmatpush1.bf16.msra.mxu1 %v6641_v0 }
 0x498   :  { %1878 = vmatprep.subr.bf16.mxu0 %v6642_v57  ;;  %1919 = vmatprep.subr.bf16.mxu1 %v6643_v19 }
 0x49b   :  { %1879 = vmatpush1.bf16.msra.mxu0 %v6644_v54  ;;  %1920 = vmatpush1.bf16.msra.mxu1 %v6645_v62 }
 0x49c   :  { %v1686_v58 = vpop.f32.mrb[28].mxu0  ;;  %1880 = vmatprep.subr.bf16.mxu0 %v6646_v56  ;;  %v1727_v61 = vpop.f32.mrb[28].mxu1  ;;  %1921 = vmatprep.subr.bf16.mxu1 %v6647_v1 }
 0x49d   :  { %v1687_v4 = vadd.f32 %v1686_v58, %v4278_v39  ;;  %v1688_v3 = vpop.f32.mrb[29].mxu0  ;;  %v1729_v7 = vpop.f32.mrb[29].mxu1  ;;  %v6649_v58 = vld [vmem:[#allocation18_spill] sm:$0xff] }
 0x49e   :  { %v1689_v10 = vadd.f32 %v1688_v3, %v4282_v40  ;;  %v1690_v38 = vpop.f32.mrb[30].mxu0  ;;  %v1731_v44 = vpop.f32.mrb[30].mxu1  ;;  %v1730_v48 = vadd.f32 %v1729_v7, %v6648_v12  ;;  %v6651_v3 = vld [vmem:[#allocation20_spill] sm:$0xff]  ;;  %v6657_v7 = vld [vmem:[#allocation25_spill] sm:$0xff] }
 0x49f   :  { %v2826_v22 = vmul.f32 -1.442695, %v1687_v4  ;;  %v1691_v41 = vpop.f32.mrb[31].mxu0  ;;  %1881 = vmatpush1.bf16.msra.mxu0 %v4749_v31  ;;  %v1732_v60 = vpop.f32.mrb[31].mxu1  ;;  %1922 = vmatpush1.bf16.msra.mxu1 %v4752_v46  ;;  %v6650_v4 = vld [vmem:[#allocation19_spill] sm:$0xff]  ;;  %v6652_v38 = vld [vmem:[#allocation21_spill] sm:$0xff] }
 0x4a0   :  { %v2827_v25 = vmul.f32 -1.442695, %v1689_v10  ;;  %1882 = vmatprep.subr.bf16.mxu0 %v4755_v50  ;;  %1923 = vmatprep.subr.bf16.mxu1 %v4758_v51  ;;  %v2828_v44 = vmul.f32 -1.442695, %v1730_v48  ;;  %v6653_v10 = vld [vmem:[#allocation22_spill] sm:$0xff]  ;;  %v6654_v41 = vld [vmem:[#allocation17_spill] sm:$0xff] }
 0x4a1   :  { %3167 = vpow2.f32 %v2826_v22  ;;  %v1728_v60 = vadd.f32 %v1727_v61, %v6654_v41  ;;  %v6655_v51 = vld [vmem:[#allocation23_spill] sm:$0xff]  ;;  %v6656_v22 = vld [vmem:[#allocation24_spill] sm:$0xff]  ;;  %v6660_v48 = vld [vmem:[#allocation26_spill] sm:$0xff] }
 0x4a2   :  { %3169 = vpow2.f32 %v2827_v25  ;;  %v6661_v61 = vld [vmem:[#allocation27_spill] sm:$0xff] }
 0x4a3   :  { %1883 = vmatpush1.bf16.msra.mxu0 %v4761_v21  ;;  %1924 = vmatpush1.bf16.msra.mxu1 %v6649_v58  ;;  %3171 = vpow2.f32 %v2828_v44  ;;  %v6658_v58 = vld [vmem:[#allocation28_spill] sm:$0xff]  ;;  %v6664_v44 = vld [vmem:[#allocation35_spill] sm:$0xff] }
 0x4a4   :  { %1884 = vmatprep.subr.bf16.mxu0 %v6650_v4  ;;  %1925 = vmatprep.subr.bf16.mxu1 %v6651_v3  ;;  %3173 = vtanh.f32 %v1728_v60  ;;  %v6659_v3 = vld [vmem:[#allocation29_spill] sm:$0xff] }
 0x4a5   :  { %v6667_v60 = vld [vmem:[#allocation33_spill] sm:$0xff] }
 0x4a7   :  { %1885 = vmatpush1.bf16.msra.mxu0 %v6652_v38  ;;  %1926 = vmatpush1.bf16.msra.mxu1 %v6653_v10 }
 0x4a8   :  { %1886 = vmatprep.subr.bf16.mxu0 %v6655_v51  ;;  %1927 = vmatprep.subr.bf16.mxu1 %v6656_v22  ;;  %v6662_v51 = vld [vmem:[#allocation32_spill] sm:$0xff]  ;;  %v6663_v22 = vld [vmem:[#allocation30_spill] sm:$0xff] }
 0x4ab   :  { %v3168_v25 = vpop.eup %3167  ;;  %1887 = vmatpush1.bf16.msra.mxu0 %v6657_v7  ;;  %1928 = vmatpush1.bf16.msra.mxu1 %v6658_v58  ;;  %v6665_v7 = vld [vmem:[#allocation31_spill] sm:$0xff]  ;;  %v6666_v58 = vld [vmem:[#allocation36_spill] sm:$0xff] }
 0x4ac   :  { %v3170_v4 = vpop.eup %3169  ;;  %v1737_v12 = vadd.f32 1.0, %v3168_v25  ;;  %1888 = vmatprep.subr.bf16.mxu0 %v6659_v3  ;;  %1929 = vmatprep.subr.bf16.mxu1 %v6660_v48  ;;  %v6668_v25 = vld [vmem:[#allocation34_spill] sm:$0xff] }
 0x4ad   :  { %v1743_v10 = vadd.f32 1.0, %v3170_v4  ;;  %v3172_v48 = vpop.eup %3171 }
 0x4ae   :  { %3175 = vrcp.f32 %v1737_v12  ;;  %v3174_v4 = vpop.eup %3173  ;;  %v6669_v12 = vld [vmem:[#allocation39_spill] sm:$0xff] }
 0x4af   :  { %3177 = vrcp.f32 %v1743_v10  ;;  %1889 = vmatpush1.bf16.msra.mxu0 %v6661_v61  ;;  %1930 = vmatpush1.bf16.msra.mxu1 %v6662_v51  ;;  %v1750_v51 = vadd.f32 1.0, %v3172_v48  ;;  %v6670_v61 = vld [vmem:[#allocation42_spill] sm:$0xff]  ;;  %v6675_v48 = vld [vmem:[#allocation51_spill] sm:$0xff] }
 0x4b0   :  { %1890 = vmatprep.subr.bf16.mxu0 %v6663_v22  ;;  %1931 = vmatprep.subr.bf16.mxu1 %v6664_v44  ;;  %v6671_v22 = vld [vmem:[#allocation38_spill] sm:$0xff] }
 0x4b1   :  { %3179 = vrcp.f32 %v1750_v51  ;;  %v6682_v51 = vld [vmem:[#allocation78_spill] sm:$0xff] }
 0x4b3   :  { %1891 = vmatpush1.bf16.msra.mxu0 %v6665_v7  ;;  %1932 = vmatpush1.bf16.msra.mxu1 %v6666_v58 }
 0x4b4   :  { %1892 = vmatprep.subr.bf16.mxu0 %v6667_v60  ;;  %1933 = vmatprep.subr.bf16.mxu1 %v6668_v25  ;;  %v6672_v60 = vld [vmem:[#allocation43_spill] sm:$0xff] }
 0x4b7   :  { %1893 = vmatpush1.bf16.msra.mxu0 %v6669_v12  ;;  %1934 = vmatpush1.bf16.msra.mxu1 %v4826_v16  ;;  %v6673_v12 = vld [vmem:[#allocation40_spill] sm:$0xff]  ;;  %v6674_v16 = vld [vmem:[#allocation46_spill] sm:$0xff] }
 0x4b8   :  { %v3176_v10 = vpop.eup %3175  ;;  %1894 = vmatprep.subr.bf16.mxu0 %v6670_v61  ;;  %1935 = vmatprep.subr.bf16.mxu1 %v6671_v22  ;;  %v6676_v22 = vld [vmem:[#allocation70_spill] sm:$0xff] }
 0x4b9   :  { %v3178_v44 = vpop.eup %3177  ;;  %v1754_v7 = vmul.f32 %v3176_v10, %v3174_v4  ;;  %v6677_v4 = vld [vmem:[#allocation68_spill] sm:$0xff]  ;;  %v6680_v10 = vld [vmem:[#allocation75_spill] sm:$0xff] }
 0x4ba   :  { %v1753_v58 = vmul.f32 %v3178_v44, %v4842_v13  ;;  %v6678_v13 = vld [vmem:[#allocation74_spill] sm:$0xff]  ;;  %v6679_v44 = vld [vmem:[#allocation69_spill] sm:$0xff] }
 0x4bb   :  { %1895 = vmatpush1.bf16.msra.mxu0 %v4836_v18  ;;  %1936 = vmatpush1.bf16.msra.mxu1 %v6672_v60 }
 0x4bc   :  { %v5018_v25 = vadd.f32 %v1754_v7, %v1753_v58  ;;  %1896 = vmatprep.subr.bf16.mxu0 %v6673_v12  ;;  %1937 = vmatprep.subr.bf16.mxu1 %v6674_v16  ;;  %v6681_v58 = vld [vmem:[#allocation72_spill] sm:$0xff]  ;;  %v3180_v7 = vpop.eup %3179  ;;  %v6683_v16 = vld [vmem:[#allocation95_spill] sm:$0xff] }
 0x4be   :  { %3181 = vtanh.f32 %v5018_v25 }
 0x4bf   :  { %1897 = vmatpush1.bf16.msra.mxu0 %v6675_v48  ;;  %1938 = vmatpush1.bf16.msra.mxu1 %v6676_v22 }
 0x4c0   :  { %1898 = vmatprep.subr.bf16.mxu0 %v6677_v4  ;;  %1939 = vmatprep.subr.bf16.mxu1 %v6678_v13  ;;  %v1871_v13 = vld [vmem:[#allocation2 + $0xc] sm:$0xf] }
 0x4c3   :  { %1899 = vmatpush1.bf16.msra.mxu0 %v6679_v44  ;;  %1940 = vmatpush1.bf16.msra.mxu1 %v6680_v10 }
 0x4c4   :  { %1900 = vmatprep.subr.bf16.mxu0 %v6681_v58  ;;  %1941 = vmatprep.subr.bf16.mxu1 %v6682_v51  ;;  %v5037_v58 = vld [vmem:[#allocation5 + $0x4] ss:$16 sps:$4 sm:$0xff]   ;;  %v5040_v51 = vld [vmem:[#allocation5 + $0xc] ss:$16 sps:$4 sm:$0xff]  }
 0x4c5   :  { %6684 = vst [vmem:[#allocation73_spill] sm:$0xff] %v5037_v58  ;;  %6685 = vst [vmem:[#allocation81_spill] sm:$0xff] %v5040_v51 }
 0x4c7   :  { %1901 = vmatpush1.bf16.msra.mxu0 %v6683_v16  ;;  %1942 = vmatpush1.bf16.msra.mxu1 %v4878_v47 }
 0x4c8   :  { %v3182_v48 = vpop.eup %3181  ;;  %1902 = vmatprep.subr.bf16.mxu0 %v4881_v49  ;;  %1943 = vmatprep.subr.bf16.mxu1 %v4884_v26 }
 0x4c9   :  { %v1757_v4 = vmul.f32 %v3182_v48, %v3180_v7  ;;  %v5043_v48 = vld [vmem:[#allocation5] ss:$16 sps:$4 sm:$0xff]   ;;  %v5049_v7 = vld [vmem:[#allocation5 + $0x24] ss:$16 sps:$4 sm:$0xff]  }
 0x4ca   :  { %6687 = vst [vmem:[#allocation83_spill] sm:$0xff] %v5049_v7 }
 0x4cb   :  { %1903 = vmatpush1.bf16.msra.mxu0 %v4887_v15  ;;  %v1761_v44 = vpack.c.bf16 %v1757_v4, %v1757_v4  ;;  %1944 = vmatpush1.bf16.msra.mxu1 %v4890_v43  ;;  %v5046_v4 = vld [vmem:[#allocation5 + $0x8] ss:$16 sps:$4 sm:$0xff]  }
 0x4cc   :  { %1985 = vmatprep.subr.bf16.mxu0 %v5037_v58  ;;  %2026 = vmatprep.subr.bf16.mxu1 %v5040_v51  ;;  %6686 = vst [vmem:[#allocation82_spill] sm:$0xff] %v5046_v4  ;;  %v5052_v58 = vld [vmem:[#allocation5 + $0x2c] ss:$16 sps:$4 sm:$0xff]   ;;  %v5055_v51 = vld [vmem:[#allocation5 + $0x20] ss:$16 sps:$4 sm:$0xff]  }
 0x4cd   :  { %1763 = vst [vmem:[#allocation9 + $0x10] sm:$0xf] %v1761_v44  ;;  %1904 = vmatprep.mubr.bf16.mxu0 %v1761_v44  ;;  %1945 = vmatprep.mubr.bf16.mxu1 %v1761_v44  ;;  %6688 = vst [vmem:[#allocation84_spill] sm:$0xff] %v5052_v58  ;;  %v5061_v44 = vld [vmem:[#allocation5 + $0x44] ss:$16 sps:$4 sm:$0xff]  }
 0x4ce   :  { %1905 = vmatmul.mubr.bf16.vlgmr.msra.gmra.mrb[36].mxu0 %v1871_v13  ;;  %1946 = vmatmul.mubr.bf16.vlgmr.msra.gmra.mrb[36].mxu1 %v1871_v13  ;;  %6689 = vst [vmem:[#allocation85_spill] sm:$0xff] %v5055_v51  ;;  %v5058_v13 = vld [vmem:[#allocation5 + $0x28] ss:$16 sps:$4 sm:$0xff]   ;;  %6691 = vst [vmem:[#allocation87_spill] sm:$0xff] %v5061_v44 }
 0x4cf   :  { %1986 = vmatpush1.bf16.msra.mxu0 %v5043_v48  ;;  %2027 = vmatpush1.bf16.msra.mxu1 %v5046_v4  ;;  %6690 = vst [vmem:[#allocation86_spill] sm:$0xff] %v5058_v13  ;;  %v5064_v4 = vld [vmem:[#allocation5 + $0x4c] ss:$16 sps:$4 sm:$0xff]  }
 0x4d0   :  { %1987 = vmatprep.subr.bf16.mxu0 %v5049_v7  ;;  %2028 = vmatprep.subr.bf16.mxu1 %v5052_v58  ;;  %6692 = vst [vmem:[#allocation88_spill] sm:$0xff] %v5064_v4  ;;  %v5067_v7 = vld [vmem:[#allocation5 + $0x40] ss:$16 sps:$4 sm:$0xff]   ;;  %v5070_v58 = vld [vmem:[#allocation5 + $0x48] ss:$16 sps:$4 sm:$0xff]  }
 0x4d1   :  { %6693 = vst [vmem:[#allocation89_spill] sm:$0xff] %v5067_v7  ;;  %6694 = vst [vmem:[#allocation90_spill] sm:$0xff] %v5070_v58 }
 0x4d3   :  { %1988 = vmatpush1.bf16.msra.mxu0 %v5055_v51  ;;  %2029 = vmatpush1.bf16.msra.mxu1 %v5058_v13  ;;  %v5073_v51 = vld [vmem:[#allocation5 + $0x64] ss:$16 sps:$4 sm:$0xff]   ;;  %v5076_v13 = vld [vmem:[#allocation5 + $0x6c] ss:$16 sps:$4 sm:$0xff]  }
 0x4d4   :  { %1989 = vmatprep.subr.bf16.mxu0 %v5061_v44  ;;  %2030 = vmatprep.subr.bf16.mxu1 %v5064_v4  ;;  %6695 = vst [vmem:[#allocation91_spill] sm:$0xff] %v5073_v51  ;;  %6696 = vst [vmem:[#allocation41_spill] sm:$0xff] %v5076_v13  ;;  %v5079_v44 = vld [vmem:[#allocation5 + $0x60] ss:$16 sps:$4 sm:$0xff]   ;;  %v5082_v4 = vld [vmem:[#allocation5 + $0x68] ss:$16 sps:$4 sm:$0xff]  }
 0x4d5   :  { %6697 = vst [vmem:[#allocation92_spill] sm:$0xff] %v5079_v44  ;;  %6698 = vst [vmem:[#allocation47_spill] sm:$0xff] %v5082_v4 }
 0x4d7   :  { %1990 = vmatpush1.bf16.msra.mxu0 %v5067_v7  ;;  %2031 = vmatpush1.bf16.msra.mxu1 %v5070_v58  ;;  %v5085_v7 = vld [vmem:[#allocation5 + $0x84] ss:$16 sps:$4 sm:$0xff]   ;;  %v5088_v58 = vld [vmem:[#allocation5 + $0x8c] ss:$16 sps:$4 sm:$0xff]  }
 0x4d8   :  { %1991 = vmatprep.subr.bf16.mxu0 %v5073_v51  ;;  %2032 = vmatprep.subr.bf16.mxu1 %v5076_v13  ;;  %6699 = vst [vmem:[#allocation93_spill] sm:$0xff] %v5085_v7  ;;  %6700 = vst [vmem:[#allocation44_spill] sm:$0xff] %v5088_v58  ;;  %v5091_v51 = vld [vmem:[#allocation5 + $0x80] ss:$16 sps:$4 sm:$0xff]   ;;  %v5094_v13 = vld [vmem:[#allocation5 + $0x88] ss:$16 sps:$4 sm:$0xff]  }
 0x4d9   :  { %6701 = vst [vmem:[#allocation94_spill] sm:$0xff] %v5091_v51  ;;  %6702 = vst [vmem:[#allocation50_spill] sm:$0xff] %v5094_v13 }
 0x4db   :  { %1992 = vmatpush1.bf16.msra.mxu0 %v5079_v44  ;;  %2033 = vmatpush1.bf16.msra.mxu1 %v5082_v4  ;;  %v5097_v44 = vld [vmem:[#allocation5 + $0xa4] ss:$16 sps:$4 sm:$0xff]   ;;  %v5100_v4 = vld [vmem:[#allocation5 + $0xac] ss:$16 sps:$4 sm:$0xff]  }
 0x4dc   :  { %1993 = vmatprep.subr.bf16.mxu0 %v5085_v7  ;;  %2034 = vmatprep.subr.bf16.mxu1 %v5088_v58  ;;  %6703 = vst [vmem:[#allocation45_spill] sm:$0xff] %v5097_v44  ;;  %6704 = vst [vmem:[#allocation48_spill] sm:$0xff] %v5100_v4  ;;  %v5103_v7 = vld [vmem:[#allocation5 + $0xa0] ss:$16 sps:$4 sm:$0xff]   ;;  %v5106_v58 = vld [vmem:[#allocation5 + $0xa8] ss:$16 sps:$4 sm:$0xff]  }
 0x4dd   :  { %6705 = vst [vmem:[#allocation54_spill] sm:$0xff] %v5103_v7  ;;  %6706 = vst [vmem:[#allocation49_spill] sm:$0xff] %v5106_v58 }
 0x4df   :  { %1994 = vmatpush1.bf16.msra.mxu0 %v5091_v51  ;;  %2035 = vmatpush1.bf16.msra.mxu1 %v5094_v13  ;;  %v5109_v51 = vld [vmem:[#allocation5 + $0xc4] ss:$16 sps:$4 sm:$0xff]   ;;  %v5112_v13 = vld [vmem:[#allocation5 + $0xcc] ss:$16 sps:$4 sm:$0xff]  }
 0x4e0   :  { %1995 = vmatprep.subr.bf16.mxu0 %v5097_v44  ;;  %2036 = vmatprep.subr.bf16.mxu1 %v5100_v4  ;;  %6707 = vst [vmem:[#allocation55_spill] sm:$0xff] %v5109_v51  ;;  %6708 = vst [vmem:[#allocation52_spill] sm:$0xff] %v5112_v13  ;;  %v5115_v44 = vld [vmem:[#allocation5 + $0xc0] ss:$16 sps:$4 sm:$0xff]   ;;  %v5118_v4 = vld [vmem:[#allocation5 + $0xc8] ss:$16 sps:$4 sm:$0xff]  }
 0x4e1   :  { %6709 = vst [vmem:[#allocation58_spill] sm:$0xff] %v5115_v44  ;;  %6710 = vst [vmem:[#allocation53_spill] sm:$0xff] %v5118_v4 }
 0x4e3   :  { %1996 = vmatpush1.bf16.msra.mxu0 %v5103_v7  ;;  %2037 = vmatpush1.bf16.msra.mxu1 %v5106_v58  ;;  %v5121_v7 = vld [vmem:[#allocation5 + $0xe4] ss:$16 sps:$4 sm:$0xff]   ;;  %v5124_v58 = vld [vmem:[#allocation5 + $0xec] ss:$16 sps:$4 sm:$0xff]  }
 0x4e4   :  { %1997 = vmatprep.subr.bf16.mxu0 %v5109_v51  ;;  %2038 = vmatprep.subr.bf16.mxu1 %v5112_v13  ;;  %6711 = vst [vmem:[#allocation59_spill] sm:$0xff] %v5121_v7  ;;  %6712 = vst [vmem:[#allocation56_spill] sm:$0xff] %v5124_v58  ;;  %v5127_v51 = vld [vmem:[#allocation5 + $0xe0] ss:$16 sps:$4 sm:$0xff]   ;;  %v5130_v13 = vld [vmem:[#allocation5 + $0xe8] ss:$16 sps:$4 sm:$0xff]  }
 0x4e5   :  { %6713 = vst [vmem:[#allocation62_spill] sm:$0xff] %v5127_v51  ;;  %6714 = vst [vmem:[#allocation57_spill] sm:$0xff] %v5130_v13 }
 0x4e7   :  { %1998 = vmatpush1.bf16.msra.mxu0 %v5115_v44  ;;  %2039 = vmatpush1.bf16.msra.mxu1 %v5118_v4  ;;  %v5133_v44 = vld [vmem:[#allocation5 + $0x104] ss:$16 sps:$4 sm:$0xff]   ;;  %v5136_v4 = vld [vmem:[#allocation5 + $0x10c] ss:$16 sps:$4 sm:$0xff]  }
 0x4e8   :  { %1999 = vmatprep.subr.bf16.mxu0 %v5121_v7  ;;  %2040 = vmatprep.subr.bf16.mxu1 %v5124_v58  ;;  %6715 = vst [vmem:[#allocation63_spill] sm:$0xff] %v5133_v44  ;;  %6716 = vst [vmem:[#allocation60_spill] sm:$0xff] %v5136_v4  ;;  %v5139_v7 = vld [vmem:[#allocation5 + $0x100] ss:$16 sps:$4 sm:$0xff]   ;;  %v5142_v58 = vld [vmem:[#allocation5 + $0x108] ss:$16 sps:$4 sm:$0xff]  }
 0x4e9   :  { %6717 = vst [vmem:[#allocation66_spill] sm:$0xff] %v5139_v7  ;;  %6718 = vst [vmem:[#allocation61_spill] sm:$0xff] %v5142_v58 }
 0x4eb   :  { %2000 = vmatpush1.bf16.msra.mxu0 %v5127_v51  ;;  %2041 = vmatpush1.bf16.msra.mxu1 %v5130_v13  ;;  %v5145_v51 = vld [vmem:[#allocation5 + $0x124] ss:$16 sps:$4 sm:$0xff]   ;;  %v5148_v13 = vld [vmem:[#allocation5 + $0x12c] ss:$16 sps:$4 sm:$0xff]  }
 0x4ec   :  { %2001 = vmatprep.subr.bf16.mxu0 %v5133_v44  ;;  %2042 = vmatprep.subr.bf16.mxu1 %v5136_v4  ;;  %6719 = vst [vmem:[#allocation67_spill] sm:$0xff] %v5145_v51  ;;  %6720 = vst [vmem:[#allocation64_spill] sm:$0xff] %v5148_v13  ;;  %v5151_v44 = vld [vmem:[#allocation5 + $0x120] ss:$16 sps:$4 sm:$0xff]   ;;  %v5154_v4 = vld [vmem:[#allocation5 + $0x128] ss:$16 sps:$4 sm:$0xff]  }
 0x4ed   :  { %6721 = vst [vmem:[#allocation65_spill] sm:$0xff] %v5151_v44  ;;  %6722 = vst [vmem:[#allocation71_spill] sm:$0xff] %v5154_v4 }
 0x4ef   :  { %2002 = vmatpush1.bf16.msra.mxu0 %v5139_v7  ;;  %2043 = vmatpush1.bf16.msra.mxu1 %v5142_v58  ;;  %v5157_v7 = vld [vmem:[#allocation5 + $0x144] ss:$16 sps:$4 sm:$0xff]   ;;  %v5160_v58 = vld [vmem:[#allocation5 + $0x14c] ss:$16 sps:$4 sm:$0xff]  }
 0x4f0   :  { %2003 = vmatprep.subr.bf16.mxu0 %v5145_v51  ;;  %2044 = vmatprep.subr.bf16.mxu1 %v5148_v13  ;;  %6723 = vst [vmem:[#allocation79_spill] sm:$0xff] %v5157_v7  ;;  %6724 = vst [vmem:[#allocation76_spill] sm:$0xff] %v5160_v58  ;;  %v5163_v51 = vld [vmem:[#allocation5 + $0x140] ss:$16 sps:$4 sm:$0xff]   ;;  %v5166_v13 = vld [vmem:[#allocation5 + $0x148] ss:$16 sps:$4 sm:$0xff]  }
 0x4f1   :  { %6725 = vst [vmem:[#allocation77_spill] sm:$0xff] %v5163_v51  ;;  %6726 = vst [vmem:[#allocation21_spill] sm:$0xff] %v5166_v13 }
 0x4f3   :  { %2004 = vmatpush1.bf16.msra.mxu0 %v5151_v44  ;;  %2045 = vmatpush1.bf16.msra.mxu1 %v5154_v4  ;;  %v5169_v44 = vld [vmem:[#allocation5 + $0x164] ss:$16 sps:$4 sm:$0xff]   ;;  %v5172_v4 = vld [vmem:[#allocation5 + $0x16c] ss:$16 sps:$4 sm:$0xff]  }
 0x4f4   :  { %2005 = vmatprep.subr.bf16.mxu0 %v5157_v7  ;;  %2046 = vmatprep.subr.bf16.mxu1 %v5160_v58  ;;  %6727 = vst [vmem:[#allocation29_spill] sm:$0xff] %v5169_v44  ;;  %6728 = vst [vmem:[#allocation42_spill] sm:$0xff] %v5172_v4  ;;  %v5175_v7 = vld [vmem:[#allocation5 + $0x160] ss:$16 sps:$4 sm:$0xff]   ;;  %v5179_v58 = vld [vmem:[#allocation5 + $0x184] ss:$16 sps:$4 sm:$0xff]  }
 0x4f5   :  { %6729 = vst [vmem:[#allocation43_spill] sm:$0xff] %v5175_v7  ;;  %6730 = vst [vmem:[#allocation40_spill] sm:$0xff] %v5179_v58 }
 0x4f7   :  { %2006 = vmatpush1.bf16.msra.mxu0 %v5163_v51  ;;  %2047 = vmatpush1.bf16.msra.mxu1 %v5166_v13  ;;  %v5183_v13 = vld [vmem:[#allocation5 + $0x180] ss:$16 sps:$4 sm:$0xff]  }
 0x4f8   :  { %2007 = vmatprep.subr.bf16.mxu0 %v5169_v44  ;;  %2048 = vmatprep.subr.bf16.mxu1 %v5172_v4  ;;  %6731 = vst [vmem:[#allocation70_spill] sm:$0xff] %v5183_v13  ;;  %v5187_v44 = vld [vmem:[#allocation5 + $0x1a4] ss:$16 sps:$4 sm:$0xff]  }
 0x4f9   :  { %6732 = vst [vmem:[#allocation75_spill] sm:$0xff] %v5187_v44 }
 0x4fb   :  { %2008 = vmatpush1.bf16.msra.mxu0 %v5175_v7  ;;  %2049 = vmatpush1.bf16.msra.mxu1 %v6617_v5 }
 0x4fc   :  { %2009 = vmatprep.subr.bf16.mxu0 %v5179_v58  ;;  %2050 = vmatprep.subr.bf16.mxu1 %v6619_v6 }
 0x4ff   :  { %2010 = vmatpush1.bf16.msra.mxu0 %v5183_v13  ;;  %2051 = vmatpush1.bf16.msra.mxu1 %v6621_v52 }
 0x500   :  { %2011 = vmatprep.subr.bf16.mxu0 %v5187_v44  ;;  %2052 = vmatprep.subr.bf16.mxu1 %v6623_v8 }
 0x503   :  { %2012 = vmatpush1.bf16.msra.mxu0 %v6624_v23  ;;  %2053 = vmatpush1.bf16.msra.mxu1 %v6625_v9 }
 0x504   :  { %2013 = vmatprep.subr.bf16.mxu0 %v6626_v11  ;;  %2054 = vmatprep.subr.bf16.mxu1 %v6627_v63 }
 0x507   :  { %2014 = vmatpush1.bf16.msra.mxu0 %v6628_v27  ;;  %2055 = vmatpush1.bf16.msra.mxu1 %v6629_v28 }
 0x508   :  { %2015 = vmatprep.subr.bf16.mxu0 %v6630_v30  ;;  %2056 = vmatprep.subr.bf16.mxu1 %v6631_v32 }
 0x50b   :  { %2016 = vmatpush1.bf16.msra.mxu0 %v6632_v55  ;;  %2057 = vmatpush1.bf16.msra.mxu1 %v6633_v33 }
 0x50c   :  { %2092 = vmatprep.subr.bf16.mxu0 %v6634_v35  ;;  %2133 = vmatprep.subr.bf16.mxu1 %v6635_v37 }
 0x561   :  { %v1799_v5 = vpop.f32.mrb[32].mxu0  ;;  %v1840_v6 = vpop.f32.mrb[32].mxu1 }
 0x562   :  { %v1800_v52 = vadd.f32 %v1799_v5, %v6636_v42  ;;  %v1801_v8 = vpop.f32.mrb[33].mxu0  ;;  %v1842_v23 = vpop.f32.mrb[33].mxu1  ;;  %v1841_v35 = vadd.f32 %v1840_v6, %v4255_v36 }
 0x563   :  { %v1802_v9 = vadd.f32 %v1801_v8, %v4242_v20  ;;  %v1803_v11 = vpop.f32.mrb[34].mxu0  ;;  %v1844_v63 = vpop.f32.mrb[34].mxu1  ;;  %v1843_v55 = vadd.f32 %v1842_v23, %v4249_v29 }
 0x564   :  { %v2829_v27 = vmul.f32 -1.442695, %v1800_v52  ;;  %v1804_v28 = vpop.f32.mrb[35].mxu0  ;;  %v1845_v30 = vpop.f32.mrb[35].mxu1 }
 0x565   :  { %v2830_v32 = vmul.f32 -1.442695, %v1802_v9  ;;  %v2831_v33 = vmul.f32 -1.442695, %v1843_v55 }
 0x566   :  { %3183 = vpow2.f32 %v2829_v27 }
 0x567   :  { %3185 = vpow2.f32 %v2830_v32 }
 0x568   :  { %3187 = vpow2.f32 %v2831_v33  ;;  %v1984_v33 = vld [vmem:[#allocation2 + $0x14] sm:$0xf] }
 0x569   :  { %3189 = vtanh.f32 %v1841_v35  ;;  %v6735_v35 = vld [vmem:[#allocation18_spill] sm:$0xff] }
 0x570   :  { %v3184_v37 = vpop.eup %3183 }
 0x571   :  { %v3186_v5 = vpop.eup %3185  ;;  %v1850_v42 = vadd.f32 1.0, %v3184_v37  ;;  %v6736_v37 = vld [vmem:[#allocation19_spill] sm:$0xff] }
 0x572   :  { %v1856_v44 = vadd.f32 1.0, %v3186_v5  ;;  %v3188_v8 = vpop.eup %3187  ;;  %v6737_v5 = vld [vmem:[#allocation20_spill] sm:$0xff] }
 0x573   :  { %3191 = vrcp.f32 %v1850_v42  ;;  %v3190_v52 = vpop.eup %3189  ;;  %v1863_v63 = vadd.f32 1.0, %v3188_v8  ;;  %v5211_v42 = vld [vmem:[#allocation7] ss:$16 sps:$4 sm:$0xff]  }
 0x574   :  { %3193 = vrcp.f32 %v1856_v44  ;;  %v6739_v8 = vld [vmem:[#allocation23_spill] sm:$0xff] }
 0x575   :  { %3195 = vrcp.f32 %v1863_v63  ;;  %v6742_v63 = vld [vmem:[#allocation28_spill] sm:$0xff] }
 0x57d   :  { %v3192_v11 = vpop.eup %3191 }
 0x57e   :  { %v3194_v9 = vpop.eup %3193  ;;  %v1867_v27 = vmul.f32 %v3192_v11, %v3190_v52  ;;  %v6740_v52 = vld [vmem:[#allocation24_spill] sm:$0xff]  ;;  %v6741_v11 = vld [vmem:[#allocation25_spill] sm:$0xff] }
 0x57f   :  { %v1866_v28 = vmul.f32 %v3194_v9, %v4964_v14  ;;  %v3196_v6 = vpop.eup %3195  ;;  %v5215_v14 = vld [vmem:[#allocation7 + $0x24] ss:$16 sps:$4 sm:$0xff]  }
 0x581   :  { %v5208_v23 = vadd.f32 %v1867_v27, %v1866_v28 }
 0x583   :  { %3197 = vtanh.f32 %v5208_v23 }
 0x58d   :  { %v3198_v30 = vpop.eup %3197 }
 0x58e   :  { %v1870_v32 = vmul.f32 %v3198_v30, %v3196_v6  ;;  %v6744_v6 = vld [vmem:[#allocation27_spill] sm:$0xff]  ;;  %v6745_v30 = vld [vmem:[#allocation32_spill] sm:$0xff] }
 0x590   :  { %v1978_v55 = vpack.c.bf16 %v1870_v32, %v1870_v32  ;;  %v6746_v32 = vld [vmem:[#allocation30_spill] sm:$0xff] }
 0x592   :  { %1980 = vst [vmem:[#allocation8 + $0x10] sm:$0xf] %v1978_v55  ;;  %2017 = vmatprep.mubr.bf16.mxu0 %v1978_v55  ;;  %2058 = vmatprep.mubr.bf16.mxu1 %v1978_v55  ;;  %v6747_v55 = vld [vmem:[#allocation35_spill] sm:$0xff] }
 0x593   :  { %2018 = vmatmul.mubr.bf16.vlgmr.msra.gmra.mrb[40].mxu0 %v1984_v33  ;;  %2059 = vmatmul.mubr.bf16.vlgmr.msra.gmra.mrb[40].mxu1 %v1984_v33  ;;  %v6748_v33 = vld [vmem:[#allocation31_spill] sm:$0xff] }
 0x594   :  { %2093 = vmatpush1.bf16.msra.mxu0 %v5211_v42  ;;  %2134 = vmatpush1.bf16.msra.mxu1 %v4704_v45 }
 0x595   :  { %2094 = vmatprep.subr.bf16.mxu0 %v5215_v14  ;;  %2135 = vmatprep.subr.bf16.mxu1 %v4708_v2 }
 0x598   :  { %2095 = vmatpush1.bf16.msra.mxu0 %v4711_v34  ;;  %2136 = vmatpush1.bf16.msra.mxu1 %v6637_v24 }
 0x599   :  { %2096 = vmatprep.subr.bf16.mxu0 %v6638_v53  ;;  %2137 = vmatprep.subr.bf16.mxu1 %v6639_v59 }
 0x59c   :  { %2097 = vmatpush1.bf16.msra.mxu0 %v6640_v17  ;;  %2138 = vmatpush1.bf16.msra.mxu1 %v6641_v0 }
 0x59d   :  { %2098 = vmatprep.subr.bf16.mxu0 %v6642_v57  ;;  %2139 = vmatprep.subr.bf16.mxu1 %v6643_v19 }
 0x5a0   :  { %2099 = vmatpush1.bf16.msra.mxu0 %v6644_v54  ;;  %2140 = vmatpush1.bf16.msra.mxu1 %v6645_v62 }
 0x5a1   :  { %v1906_v45 = vpop.f32.mrb[36].mxu0  ;;  %2100 = vmatprep.subr.bf16.mxu0 %v6646_v56  ;;  %v1947_v2 = vpop.f32.mrb[36].mxu1  ;;  %2141 = vmatprep.subr.bf16.mxu1 %v6647_v1  ;;  %v6733_v56 = vld [vmem:[#allocation80_spill] sm:$0xff] }
 0x5a2   :  { %v1907_v34 = vadd.f32 %v1906_v45, %v4278_v39  ;;  %v1908_v24 = vpop.f32.mrb[37].mxu0  ;;  %v1949_v53 = vpop.f32.mrb[37].mxu1  ;;  %v6734_v1 = vld [vmem:[#allocation16_spill] sm:$0xff] }
 0x5a3   :  { %v1909_v59 = vadd.f32 %v1908_v24, %v4282_v40  ;;  %v1910_v17 = vpop.f32.mrb[38].mxu0  ;;  %v1951_v0 = vpop.f32.mrb[38].mxu1  ;;  %v1950_v44 = vadd.f32 %v1949_v53, %v6734_v1  ;;  %v6749_v45 = vld [vmem:[#allocation36_spill] sm:$0xff]  ;;  %v6752_v53 = vld [vmem:[#allocation39_spill] sm:$0xff] }
 0x5a4   :  { %v2832_v57 = vmul.f32 -1.442695, %v1907_v34  ;;  %v1911_v19 = vpop.f32.mrb[39].mxu0  ;;  %2101 = vmatpush1.bf16.msra.mxu0 %v4749_v31  ;;  %v1952_v54 = vpop.f32.mrb[39].mxu1  ;;  %2142 = vmatpush1.bf16.msra.mxu1 %v4752_v46  ;;  %v6738_v31 = vld [vmem:[#allocation22_spill] sm:$0xff] }
 0x5a5   :  { %v2833_v62 = vmul.f32 -1.442695, %v1909_v59  ;;  %2102 = vmatprep.subr.bf16.mxu0 %v4755_v50  ;;  %2143 = vmatprep.subr.bf16.mxu1 %v6733_v56  ;;  %v2834_v46 = vmul.f32 -1.442695, %v1950_v44  ;;  %v1948_v50 = vadd.f32 %v1947_v2, %v6654_v41  ;;  %v6750_v2 = vld [vmem:[#allocation33_spill] sm:$0xff]  ;;  %v6755_v44 = vld [vmem:[#allocation46_spill] sm:$0xff] }
 0x5a6   :  { %3199 = vpow2.f32 %v2832_v57  ;;  %v6753_v59 = vld [vmem:[#allocation37_spill] sm:$0xff]  ;;  %v6754_v57 = vld [vmem:[#allocation38_spill] sm:$0xff] }
 0x5a7   :  { %3201 = vpow2.f32 %v2833_v62 }
 0x5a8   :  { %2103 = vmatpush1.bf16.msra.mxu0 %v4761_v21  ;;  %2144 = vmatpush1.bf16.msra.mxu1 %v6735_v35  ;;  %3203 = vpow2.f32 %v2834_v46  ;;  %v6757_v35 = vld [vmem:[#allocation68_spill] sm:$0xff] }
 0x5a9   :  { %2104 = vmatprep.subr.bf16.mxu0 %v6736_v37  ;;  %2145 = vmatprep.subr.bf16.mxu1 %v6737_v5  ;;  %3205 = vtanh.f32 %v1948_v50  ;;  %v6761_v37 = vld [vmem:[#allocation78_spill] sm:$0xff]  ;;  %v6763_v50 = vld [vmem:[#allocation81_spill] sm:$0xff] }
 0x5ac   :  { %2105 = vmatpush1.bf16.msra.mxu0 %v6652_v38  ;;  %2146 = vmatpush1.bf16.msra.mxu1 %v6738_v31  ;;  %v6743_v38 = vld [vmem:[#allocation26_spill] sm:$0xff]  ;;  %v2091_v31 = vld [vmem:[#allocation2 + $0x8] sm:$0xf] }
 0x5ad   :  { %2106 = vmatprep.subr.bf16.mxu0 %v6739_v8  ;;  %2147 = vmatprep.subr.bf16.mxu1 %v6740_v52  ;;  %v6770_v8 = vld [vmem:[#allocation88_spill] sm:$0xff]  ;;  %v6771_v52 = vld [vmem:[#allocation89_spill] sm:$0xff] }
 0x5b0   :  { %v3200_v21 = vpop.eup %3199  ;;  %2107 = vmatpush1.bf16.msra.mxu0 %v6741_v11  ;;  %2148 = vmatpush1.bf16.msra.mxu1 %v6742_v63  ;;  %v6773_v11 = vld [vmem:[#allocation91_spill] sm:$0xff]  ;;  %v6774_v63 = vld [vmem:[#allocation41_spill] sm:$0xff] }
 0x5b1   :  { %v3202_v9 = vpop.eup %3201  ;;  %v1957_v27 = vadd.f32 1.0, %v3200_v21  ;;  %2108 = vmatprep.subr.bf16.mxu0 %v6659_v3  ;;  %2149 = vmatprep.subr.bf16.mxu1 %v6743_v38  ;;  %v6751_v3 = vld [vmem:[#allocation34_spill] sm:$0xff]  ;;  %v6777_v38 = vld [vmem:[#allocation93_spill] sm:$0xff] }
 0x5b2   :  { %v1963_v28 = vadd.f32 1.0, %v3202_v9  ;;  %v3204_v34 = vpop.eup %3203  ;;  %v6772_v21 = vld [vmem:[#allocation90_spill] sm:$0xff]  ;;  %v6775_v9 = vld [vmem:[#allocation92_spill] sm:$0xff] }
 0x5b3   :  { %3207 = vrcp.f32 %v1957_v27  ;;  %v3206_v24 = vpop.eup %3205  ;;  %v1970_v0 = vadd.f32 1.0, %v3204_v34  ;;  %v6776_v27 = vld [vmem:[#allocation47_spill] sm:$0xff]  ;;  %v6787_v34 = vld [vmem:[#allocation58_spill] sm:$0xff] }
 0x5b4   :  { %3209 = vrcp.f32 %v1963_v28  ;;  %2109 = vmatpush1.bf16.msra.mxu0 %v6744_v6  ;;  %2150 = vmatpush1.bf16.msra.mxu1 %v6745_v30  ;;  %v6778_v28 = vld [vmem:[#allocation44_spill] sm:$0xff]  ;;  %v6779_v6 = vld [vmem:[#allocation94_spill] sm:$0xff] }
 0x5b5   :  { %2110 = vmatprep.subr.bf16.mxu0 %v6746_v32  ;;  %2151 = vmatprep.subr.bf16.mxu1 %v6747_v55  ;;  %3211 = vrcp.f32 %v1970_v0  ;;  %v6780_v30 = vld [vmem:[#allocation50_spill] sm:$0xff]  ;;  %v6781_v32 = vld [vmem:[#allocation45_spill] sm:$0xff]  ;;  %v6782_v55 = vld [vmem:[#allocation48_spill] sm:$0xff] }
 0x5b6   :  { %v6792_v0 = vld [vmem:[#allocation57_spill] sm:$0xff] }
 0x5b8   :  { %2111 = vmatpush1.bf16.msra.mxu0 %v6748_v33  ;;  %2152 = vmatpush1.bf16.msra.mxu1 %v6749_v45  ;;  %v6783_v33 = vld [vmem:[#allocation54_spill] sm:$0xff]  ;;  %v6784_v45 = vld [vmem:[#allocation49_spill] sm:$0xff] }
 0x5b9   :  { %2112 = vmatprep.subr.bf16.mxu0 %v6750_v2  ;;  %2153 = vmatprep.subr.bf16.mxu1 %v6751_v3  ;;  %v6785_v2 = vld [vmem:[#allocation55_spill] sm:$0xff]  ;;  %v6786_v3 = vld [vmem:[#allocation52_spill] sm:$0xff] }
 0x5bc   :  { %2113 = vmatpush1.bf16.msra.mxu0 %v6752_v53  ;;  %2154 = vmatpush1.bf16.msra.mxu1 %v6753_v59  ;;  %v6789_v53 = vld [vmem:[#allocation59_spill] sm:$0xff]  ;;  %v6790_v59 = vld [vmem:[#allocation56_spill] sm:$0xff] }
 0x5bd   :  { %v3208_v17 = vpop.eup %3207  ;;  %2114 = vmatprep.subr.bf16.mxu0 %v6670_v61  ;;  %2155 = vmatprep.subr.bf16.mxu1 %v6754_v57  ;;  %v6756_v61 = vld [vmem:[#allocation51_spill] sm:$0xff] }
 0x5be   :  { %v3210_v19 = vpop.eup %3209  ;;  %v1974_v54 = vmul.f32 %v3208_v17, %v3206_v24  ;;  %v6788_v24 = vld [vmem:[#allocation53_spill] sm:$0xff]  ;;  %v6791_v17 = vld [vmem:[#allocation62_spill] sm:$0xff]  ;;  %v6793_v57 = vld [vmem:[#allocation63_spill] sm:$0xff] }
 0x5bf   :  { %v1973_v62 = vmul.f32 %v3210_v19, %v5018_v25  ;;  %v6758_v25 = vld [vmem:[#allocation74_spill] sm:$0xff]  ;;  %v6794_v19 = vld [vmem:[#allocation60_spill] sm:$0xff] }
 0x5c0   :  { %2115 = vmatpush1.bf16.msra.mxu0 %v4836_v18  ;;  %2156 = vmatpush1.bf16.msra.mxu1 %v6672_v60  ;;  %v6759_v18 = vld [vmem:[#allocation69_spill] sm:$0xff]  ;;  %v6760_v60 = vld [vmem:[#allocation72_spill] sm:$0xff] }
 0x5c1   :  { %v5266_v56 = vadd.f32 %v1974_v54, %v1973_v62  ;;  %2116 = vmatprep.subr.bf16.mxu0 %v6673_v12  ;;  %2157 = vmatprep.subr.bf16.mxu1 %v6755_v44  ;;  %v3212_v12 = vpop.eup %3211  ;;  %v6795_v54 = vld [vmem:[#allocation66_spill] sm:$0xff]  ;;  %v6796_v62 = vld [vmem:[#allocation61_spill] sm:$0xff]  ;;  %v6797_v44 = vld [vmem:[#allocation67_spill] sm:$0xff] }
 0x5c3   :  { %3213 = vtanh.f32 %v5266_v56 }
 0x5c4   :  { %2117 = vmatpush1.bf16.msra.mxu0 %v6756_v61  ;;  %2158 = vmatpush1.bf16.msra.mxu1 %v6676_v22  ;;  %v6798_v61 = vld [vmem:[#allocation64_spill] sm:$0xff] }
 0x5c5   :  { %2118 = vmatprep.subr.bf16.mxu0 %v6757_v35  ;;  %2159 = vmatprep.subr.bf16.mxu1 %v6758_v25  ;;  %v6799_v35 = vld [vmem:[#allocation65_spill] sm:$0xff]  ;;  %v6800_v25 = vld [vmem:[#allocation71_spill] sm:$0xff] }
 0x5c8   :  { %2119 = vmatpush1.bf16.msra.mxu0 %v6759_v18  ;;  %2160 = vmatpush1.bf16.msra.mxu1 %v6680_v10  ;;  %v6762_v10 = vld [vmem:[#allocation73_spill] sm:$0xff]  ;;  %v6801_v18 = vld [vmem:[#allocation79_spill] sm:$0xff] }
 0x5c9   :  { %2120 = vmatprep.subr.bf16.mxu0 %v6760_v60  ;;  %2161 = vmatprep.subr.bf16.mxu1 %v6761_v37  ;;  %v6802_v60 = vld [vmem:[#allocation76_spill] sm:$0xff]  ;;  %v6803_v37 = vld [vmem:[#allocation21_spill] sm:$0xff] }
 0x5cc   :  { %2121 = vmatpush1.bf16.msra.mxu0 %v6683_v16  ;;  %2162 = vmatpush1.bf16.msra.mxu1 %v4878_v47  ;;  %v6764_v16 = vld [vmem:[#allocation82_spill] sm:$0xff]  ;;  %v6767_v47 = vld [vmem:[#allocation85_spill] sm:$0xff] }
 0x5cd   :  { %v3214_v5 = vpop.eup %3213  ;;  %2122 = vmatprep.subr.bf16.mxu0 %v4881_v49  ;;  %2163 = vmatprep.subr.bf16.mxu1 %v4884_v26  ;;  %v6765_v49 = vld [vmem:[#allocation83_spill] sm:$0xff] }
 0x5ce   :  { %v1977_v22 = vmul.f32 %v3214_v5, %v3212_v12  ;;  %v6769_v26 = vld [vmem:[#allocation87_spill] sm:$0xff]  ;;  %v6804_v12 = vld [vmem:[#allocation29_spill] sm:$0xff]  ;;  %v5332_v5 = vld [vmem:[#allocation5 + $0x168] ss:$16 sps:$4 sm:$0xff]  }
 0x5cf   :  { %6805 = vst [vmem:[#allocation95_spill] sm:$0xff] %v5332_v5 }
 0x5d0   :  { %2123 = vmatpush1.bf16.msra.mxu0 %v4887_v15  ;;  %v1981_v46 = vpack.c.bf16 %v1977_v22, %v1977_v22  ;;  %2164 = vmatpush1.bf16.msra.mxu1 %v4890_v43  ;;  %v6766_v15 = vld [vmem:[#allocation84_spill] sm:$0xff]  ;;  %v6768_v43 = vld [vmem:[#allocation86_spill] sm:$0xff] }
 0x5d1   :  { %2205 = vmatprep.subr.bf16.mxu0 %v6762_v10  ;;  %2246 = vmatprep.subr.bf16.mxu1 %v6763_v50  ;;  %v5336_v22 = vld [vmem:[#allocation5 + $0x18c] ss:$16 sps:$4 sm:$0xff]  }
 0x5d2   :  { %1983 = vst [vmem:[#allocation9 + $0xc] sm:$0xf] %v1981_v46  ;;  %2124 = vmatprep.mubr.bf16.mxu0 %v1981_v46  ;;  %2165 = vmatprep.mubr.bf16.mxu1 %v1981_v46  ;;  %6806 = vst [vmem:[#allocation80_spill] sm:$0xff] %v5336_v22  ;;  %v5340_v46 = vld [vmem:[#allocation5 + $0x188] ss:$16 sps:$4 sm:$0xff]  }
 0x5d3   :  { %2125 = vmatmul.mubr.bf16.vlgmr.msra.gmra.mrb[44].mxu0 %v2091_v31  ;;  %2166 = vmatmul.mubr.bf16.vlgmr.msra.gmra.mrb[44].mxu1 %v2091_v31  ;;  %6807 = vst [vmem:[#allocation18_spill] sm:$0xff] %v5340_v46  ;;  %v6808_v31 = vld [vmem:[#allocation75_spill] sm:$0xff] }
 0x5d4   :  { %2206 = vmatpush1.bf16.msra.mxu0 %v5043_v48  ;;  %2247 = vmatpush1.bf16.msra.mxu1 %v6764_v16 }
 0x5d5   :  { %2207 = vmatprep.subr.bf16.mxu0 %v6765_v49  ;;  %2248 = vmatprep.subr.bf16.mxu1 %v6766_v15 }
 0x5d8   :  { %2208 = vmatpush1.bf16.msra.mxu0 %v6767_v47  ;;  %2249 = vmatpush1.bf16.msra.mxu1 %v6768_v43 }
 0x5d9   :  { %2209 = vmatprep.subr.bf16.mxu0 %v6769_v26  ;;  %2250 = vmatprep.subr.bf16.mxu1 %v6770_v8 }
 0x5dc   :  { %2210 = vmatpush1.bf16.msra.mxu0 %v6771_v52  ;;  %2251 = vmatpush1.bf16.msra.mxu1 %v6772_v21 }
 0x5dd   :  { %2211 = vmatprep.subr.bf16.mxu0 %v6773_v11  ;;  %2252 = vmatprep.subr.bf16.mxu1 %v6774_v63 }
 0x5e0   :  { %2212 = vmatpush1.bf16.msra.mxu0 %v6775_v9  ;;  %2253 = vmatpush1.bf16.msra.mxu1 %v6776_v27 }
 0x5e1   :  { %2213 = vmatprep.subr.bf16.mxu0 %v6777_v38  ;;  %2254 = vmatprep.subr.bf16.mxu1 %v6778_v28 }
 0x5e4   :  { %2214 = vmatpush1.bf16.msra.mxu0 %v6779_v6  ;;  %2255 = vmatpush1.bf16.msra.mxu1 %v6780_v30 }
 0x5e5   :  { %2215 = vmatprep.subr.bf16.mxu0 %v6781_v32  ;;  %2256 = vmatprep.subr.bf16.mxu1 %v6782_v55 }
 0x5e8   :  { %2216 = vmatpush1.bf16.msra.mxu0 %v6783_v33  ;;  %2257 = vmatpush1.bf16.msra.mxu1 %v6784_v45 }
 0x5e9   :  { %2217 = vmatprep.subr.bf16.mxu0 %v6785_v2  ;;  %2258 = vmatprep.subr.bf16.mxu1 %v6786_v3 }
 0x5ec   :  { %2218 = vmatpush1.bf16.msra.mxu0 %v6787_v34  ;;  %2259 = vmatpush1.bf16.msra.mxu1 %v6788_v24 }
 0x5ed   :  { %2219 = vmatprep.subr.bf16.mxu0 %v6789_v53  ;;  %2260 = vmatprep.subr.bf16.mxu1 %v6790_v59 }
 0x5f0   :  { %2220 = vmatpush1.bf16.msra.mxu0 %v6791_v17  ;;  %2261 = vmatpush1.bf16.msra.mxu1 %v6792_v0 }
 0x5f1   :  { %2221 = vmatprep.subr.bf16.mxu0 %v6793_v57  ;;  %2262 = vmatprep.subr.bf16.mxu1 %v6794_v19 }
 0x5f4   :  { %2222 = vmatpush1.bf16.msra.mxu0 %v6795_v54  ;;  %2263 = vmatpush1.bf16.msra.mxu1 %v6796_v62 }
 0x5f5   :  { %2223 = vmatprep.subr.bf16.mxu0 %v6797_v44  ;;  %2264 = vmatprep.subr.bf16.mxu1 %v6798_v61 }
 0x5f8   :  { %2224 = vmatpush1.bf16.msra.mxu0 %v6799_v35  ;;  %2265 = vmatpush1.bf16.msra.mxu1 %v6800_v25 }
 0x5f9   :  { %2225 = vmatprep.subr.bf16.mxu0 %v6801_v18  ;;  %2266 = vmatprep.subr.bf16.mxu1 %v6802_v60 }
 0x5fc   :  { %2226 = vmatpush1.bf16.msra.mxu0 %v5163_v51  ;;  %2267 = vmatpush1.bf16.msra.mxu1 %v6803_v37 }
 0x5fd   :  { %2227 = vmatprep.subr.bf16.mxu0 %v6804_v12  ;;  %2268 = vmatprep.subr.bf16.mxu1 %v5172_v4  ;;  %v5344_v4 = vld [vmem:[#allocation5 + $0x1ac] ss:$16 sps:$4 sm:$0xff]  }
 0x5fe   :  { %6809 = vst [vmem:[#allocation19_spill] sm:$0xff] %v5344_v4 }
 0x600   :  { %2228 = vmatpush1.bf16.msra.mxu0 %v5175_v7  ;;  %2269 = vmatpush1.bf16.msra.mxu1 %v5332_v5  ;;  %v5347_v7 = vld [vmem:[#allocation5 + $0x1a0] ss:$16 sps:$4 sm:$0xff]  }
 0x601   :  { %2229 = vmatprep.subr.bf16.mxu0 %v5179_v58  ;;  %2270 = vmatprep.subr.bf16.mxu1 %v5336_v22  ;;  %6810 = vst [vmem:[#allocation20_spill] sm:$0xff] %v5347_v7  ;;  %v5350_v58 = vld [vmem:[#allocation5 + $0x1a8] ss:$16 sps:$4 sm:$0xff]   ;;  %v5353_v22 = vld [vmem:[#allocation5 + $0x1c4] ss:$16 sps:$4 sm:$0xff]  }
 0x602   :  { %6811 = vst [vmem:[#allocation22_spill] sm:$0xff] %v5350_v58  ;;  %6812 = vst [vmem:[#allocation23_spill] sm:$0xff] %v5353_v22  ;;  %v6822_v5 = vld [vmem:[#allocation15_spill] sm:$0xff] }
 0x604   :  { %2230 = vmatpush1.bf16.msra.mxu0 %v5183_v13  ;;  %2271 = vmatpush1.bf16.msra.mxu1 %v5340_v46  ;;  %v5356_v13 = vld [vmem:[#allocation5 + $0x1cc] ss:$16 sps:$4 sm:$0xff]  }
 0x605   :  { %2231 = vmatprep.subr.bf16.mxu0 %v6808_v31  ;;  %2272 = vmatprep.subr.bf16.mxu1 %v5344_v4  ;;  %6813 = vst [vmem:[#allocation24_spill] sm:$0xff] %v5356_v13  ;;  %v5359_v31 = vld [vmem:[#allocation5 + $0x1c0] ss:$16 sps:$4 sm:$0xff]   ;;  %v5362_v4 = vld [vmem:[#allocation5 + $0x1c8] ss:$16 sps:$4 sm:$0xff]  }
 0x606   :  { %6814 = vst [vmem:[#allocation25_spill] sm:$0xff] %v5359_v31  ;;  %6815 = vst [vmem:[#allocation28_spill] sm:$0xff] %v5362_v4 }
 0x608   :  { %2232 = vmatpush1.bf16.msra.mxu0 %v5347_v7  ;;  %2273 = vmatpush1.bf16.msra.mxu1 %v5350_v58  ;;  %v5365_v7 = vld [vmem:[#allocation5 + $0x1e4] ss:$16 sps:$4 sm:$0xff]   ;;  %v5368_v58 = vld [vmem:[#allocation5 + $0x1ec] ss:$16 sps:$4 sm:$0xff]  }
 0x609   :  { %2233 = vmatprep.subr.bf16.mxu0 %v5353_v22  ;;  %2274 = vmatprep.subr.bf16.mxu1 %v5356_v13  ;;  %6816 = vst [vmem:[#allocation26_spill] sm:$0xff] %v5365_v7  ;;  %6817 = vst [vmem:[#allocation27_spill] sm:$0xff] %v5368_v58  ;;  %v5371_v22 = vld [vmem:[#allocation5 + $0x1e0] ss:$16 sps:$4 sm:$0xff]   ;;  %v5374_v13 = vld [vmem:[#allocation5 + $0x1e8] ss:$16 sps:$4 sm:$0xff]  }
 0x60a   :  { %6818 = vst [vmem:[#allocation32_spill] sm:$0xff] %v5371_v22  ;;  %6819 = vst [vmem:[#allocation30_spill] sm:$0xff] %v5374_v13 }
 0x60c   :  { %2234 = vmatpush1.bf16.msra.mxu0 %v5359_v31  ;;  %2275 = vmatpush1.bf16.msra.mxu1 %v5362_v4  ;;  %v5377_v31 = vld [vmem:[#allocation7 + $0x4] ss:$16 sps:$4 sm:$0xff]   ;;  %v5380_v4 = vld [vmem:[#allocation7 + $0xc] ss:$16 sps:$4 sm:$0xff]  }
 0x60d   :  { %2235 = vmatprep.subr.bf16.mxu0 %v5365_v7  ;;  %2276 = vmatprep.subr.bf16.mxu1 %v5368_v58  ;;  %6820 = vst [vmem:[#allocation35_spill] sm:$0xff] %v5377_v31  ;;  %6821 = vst [vmem:[#allocation31_spill] sm:$0xff] %v5380_v4 }
 0x610   :  { %2236 = vmatpush1.bf16.msra.mxu0 %v5371_v22  ;;  %2277 = vmatpush1.bf16.msra.mxu1 %v5374_v13 }
 0x611   :  { %2312 = vmatprep.subr.bf16.mxu0 %v5377_v31  ;;  %2353 = vmatprep.subr.bf16.mxu1 %v5380_v4 }
 0x666   :  { %v2019_v7 = vpop.f32.mrb[40].mxu0  ;;  %v2060_v46 = vpop.f32.mrb[40].mxu1 }
 0x667   :  { %v2020_v58 = vadd.f32 %v2019_v7, %v6822_v5  ;;  %v2021_v12 = vpop.f32.mrb[41].mxu0  ;;  %v2062_v37 = vpop.f32.mrb[41].mxu1  ;;  %v2061_v4 = vadd.f32 %v2060_v46, %v4255_v36  ;;  %v5402_v46 = vld [vmem:[#allocation7 + $0x28] ss:$16 sps:$4 sm:$0xff]  }
 0x668   :  { %v2022_v22 = vadd.f32 %v2021_v12, %v4242_v20  ;;  %v2023_v51 = vpop.f32.mrb[42].mxu0  ;;  %v2064_v60 = vpop.f32.mrb[42].mxu1  ;;  %v2063_v31 = vadd.f32 %v2062_v37, %v4249_v29  ;;  %6823 = vst [vmem:[#allocation36_spill] sm:$0xff] %v5402_v46 }
 0x669   :  { %v2835_v18 = vmul.f32 -1.442695, %v2020_v58  ;;  %v2024_v13 = vpop.f32.mrb[43].mxu0  ;;  %v2065_v25 = vpop.f32.mrb[43].mxu1 }
 0x66a   :  { %v2836_v35 = vmul.f32 -1.442695, %v2022_v22  ;;  %v2837_v61 = vmul.f32 -1.442695, %v2063_v31  ;;  %v2204_v22 = vld [vmem:[#allocation2 + $0x18] sm:$0xf] }
 0x66b   :  { %3215 = vpow2.f32 %v2835_v18  ;;  %v5405_v31 = vld [vmem:[#allocation7 + $0x44] ss:$16 sps:$4 sm:$0xff]  }
 0x66c   :  { %3217 = vpow2.f32 %v2836_v35  ;;  %6824 = vst [vmem:[#allocation33_spill] sm:$0xff] %v5405_v31 }
 0x66d   :  { %3219 = vpow2.f32 %v2837_v61 }
 0x66e   :  { %3221 = vtanh.f32 %v2061_v4 }
 0x675   :  { %v3216_v44 = vpop.eup %3215 }
 0x676   :  { %v3218_v7 = vpop.eup %3217  ;;  %v2070_v5 = vadd.f32 1.0, %v3216_v44 }
 0x677   :  { %v2076_v62 = vadd.f32 1.0, %v3218_v7  ;;  %v3220_v51 = vpop.eup %3219  ;;  %v5408_v7 = vld [vmem:[#allocation7 + $0x4c] ss:$16 sps:$4 sm:$0xff]  }
 0x678   :  { %3223 = vrcp.f32 %v2070_v5  ;;  %v3222_v58 = vpop.eup %3221  ;;  %v2083_v25 = vadd.f32 1.0, %v3220_v51  ;;  %v5399_v5 = vld [vmem:[#allocation7 + $0x20] ss:$16 sps:$4 sm:$0xff]   ;;  %6825 = vst [vmem:[#allocation34_spill] sm:$0xff] %v5408_v7 }
 0x679   :  { %3225 = vrcp.f32 %v2076_v62  ;;  %v5392_v62 = vld [vmem:[#allocation7 + $0x8] ss:$16 sps:$4 sm:$0xff]   ;;  %v5411_v51 = vld [vmem:[#allocation7 + $0x40] ss:$16 sps:$4 sm:$0xff]  }
 0x67a   :  { %3227 = vrcp.f32 %v2083_v25  ;;  %6826 = vst [vmem:[#allocation39_spill] sm:$0xff] %v5411_v51  ;;  %v5420_v25 = vld [vmem:[#allocation7 + $0x6c] ss:$16 sps:$4 sm:$0xff]  }
 0x67b   :  { %6829 = vst [vmem:[#allocation46_spill] sm:$0xff] %v5420_v25 }
 0x682   :  { %v3224_v13 = vpop.eup %3223 }
 0x683   :  { %v3226_v60 = vpop.eup %3225  ;;  %v2087_v18 = vmul.f32 %v3224_v13, %v3222_v58  ;;  %v5414_v58 = vld [vmem:[#allocation7 + $0x48] ss:$16 sps:$4 sm:$0xff]   ;;  %v5417_v13 = vld [vmem:[#allocation7 + $0x64] ss:$16 sps:$4 sm:$0xff]  }
 0x684   :  { %v2086_v35 = vmul.f32 %v3226_v60, %v5208_v23  ;;  %v3228_v61 = vpop.eup %3227  ;;  %v5396_v23 = vld [vmem:[#allocation7 + $0x2c] ss:$16 sps:$4 sm:$0xff]   ;;  %6827 = vst [vmem:[#allocation37_spill] sm:$0xff] %v5414_v58  ;;  %6828 = vst [vmem:[#allocation38_spill] sm:$0xff] %v5417_v13  ;;  %v5423_v60 = vld [vmem:[#allocation7 + $0x60] ss:$16 sps:$4 sm:$0xff]  }
 0x685   :  { %6830 = vst [vmem:[#allocation51_spill] sm:$0xff] %v5423_v60 }
 0x686   :  { %v5388_v37 = vadd.f32 %v2087_v18, %v2086_v35  ;;  %v5426_v18 = vld [vmem:[#allocation7 + $0x68] ss:$16 sps:$4 sm:$0xff]  }
 0x687   :  { %6831 = vst [vmem:[#allocation68_spill] sm:$0xff] %v5426_v18 }
 0x688   :  { %3229 = vtanh.f32 %v5388_v37 }
 0x692   :  { %v3230_v12 = vpop.eup %3229 }
 0x693   :  { %v2090_v44 = vmul.f32 %v3230_v12, %v3228_v61  ;;  %v5429_v61 = vld [vmem:[#allocation7 + $0x84] ss:$16 sps:$4 sm:$0xff]  }
 0x694   :  { %6832 = vst [vmem:[#allocation74_spill] sm:$0xff] %v5429_v61 }
 0x695   :  { %v2198_v4 = vpack.c.bf16 %v2090_v44, %v2090_v44  ;;  %v5432_v44 = vld [vmem:[#allocation7 + $0x8c] ss:$16 sps:$4 sm:$0xff]  }
 0x696   :  { %6833 = vst [vmem:[#allocation69_spill] sm:$0xff] %v5432_v44 }
 0x697   :  { %2200 = vst [vmem:[#allocation8 + $0x14] sm:$0xf] %v2198_v4  ;;  %2237 = vmatprep.mubr.bf16.mxu0 %v2198_v4  ;;  %2278 = vmatprep.mubr.bf16.mxu1 %v2198_v4 }
 0x698   :  { %2238 = vmatmul.mubr.bf16.vlgmr.msra.gmra.mrb[48].mxu0 %v2204_v22  ;;  %2279 = vmatmul.mubr.bf16.vlgmr.msra.gmra.mrb[48].mxu1 %v2204_v22 }
 0x699   :  { %2313 = vmatpush1.bf16.msra.mxu0 %v5211_v42  ;;  %2354 = vmatpush1.bf16.msra.mxu1 %v5392_v62 }
 0x69a   :  { %2314 = vmatprep.subr.bf16.mxu0 %v5215_v14  ;;  %2355 = vmatprep.subr.bf16.mxu1 %v5396_v23 }
 0x69d   :  { %2315 = vmatpush1.bf16.msra.mxu0 %v5399_v5  ;;  %2356 = vmatpush1.bf16.msra.mxu1 %v5402_v46  ;;  %v5443_v46 = vld [vmem:[#allocation7 + $0xa4] ss:$16 sps:$4 sm:$0xff]  }
 0x69e   :  { %2316 = vmatprep.subr.bf16.mxu0 %v5405_v31  ;;  %2357 = vmatprep.subr.bf16.mxu1 %v5408_v7  ;;  %v5437_v7 = vld [vmem:[#allocation7 + $0x80] ss:$16 sps:$4 sm:$0xff]   ;;  %v5440_v31 = vld [vmem:[#allocation7 + $0x88] ss:$16 sps:$4 sm:$0xff]  }
 0x6a1   :  { %2317 = vmatpush1.bf16.msra.mxu0 %v5411_v51  ;;  %2358 = vmatpush1.bf16.msra.mxu1 %v5414_v58 }
 0x6a2   :  { %2318 = vmatprep.subr.bf16.mxu0 %v5417_v13  ;;  %2359 = vmatprep.subr.bf16.mxu1 %v5420_v25 }
 0x6a5   :  { %2319 = vmatpush1.bf16.msra.mxu0 %v5423_v60  ;;  %2360 = vmatpush1.bf16.msra.mxu1 %v5426_v18 }
 0x6a6   :  { %v2126_v35 = vpop.f32.mrb[44].mxu0  ;;  %2320 = vmatprep.subr.bf16.mxu0 %v5429_v61  ;;  %v2167_v12 = vpop.f32.mrb[44].mxu1  ;;  %2361 = vmatprep.subr.bf16.mxu1 %v5432_v44 }
 0x6a7   :  { %v2127_v4 = vadd.f32 %v2126_v35, %v4278_v39  ;;  %v2128_v22 = vpop.f32.mrb[45].mxu0  ;;  %v2169_v25 = vpop.f32.mrb[45].mxu1  ;;  %v5446_v35 = vld [vmem:[#allocation7 + $0xac] ss:$16 sps:$4 sm:$0xff]  }
 0x6a8   :  { %v2129_v60 = vadd.f32 %v2128_v22, %v4282_v40  ;;  %v2130_v13 = vpop.f32.mrb[46].mxu0  ;;  %v2171_v58 = vpop.f32.mrb[46].mxu1  ;;  %v5469_v22 = vld [vmem:[#allocation7 + $0xe4] ss:$16 sps:$4 sm:$0xff]  }
 0x6a9   :  { %v2838_v51 = vmul.f32 -1.442695, %v2127_v4  ;;  %v2131_v18 = vpop.f32.mrb[47].mxu0  ;;  %2321 = vmatpush1.bf16.msra.mxu0 %v5437_v7  ;;  %v2172_v61 = vpop.f32.mrb[47].mxu1  ;;  %2362 = vmatpush1.bf16.msra.mxu1 %v5440_v31  ;;  %v5449_v58 = vld [vmem:[#allocation7 + $0xa0] ss:$16 sps:$4 sm:$0xff]   ;;  %v2170_v13 = vadd.f32 %v2169_v25, %v6734_v1  ;;  %v2168_v25 = vadd.f32 %v2167_v12, %v6654_v41 }
 0x6aa   :  { %v2839_v44 = vmul.f32 -1.442695, %v2129_v60  ;;  %2322 = vmatprep.subr.bf16.mxu0 %v5443_v46  ;;  %2363 = vmatprep.subr.bf16.mxu1 %v5446_v35  ;;  %v5453_v18 = vld [vmem:[#allocation7 + $0xa8] ss:$16 sps:$4 sm:$0xff]   ;;  %v5456_v60 = vld [vmem:[#allocation7 + $0xc4] ss:$16 sps:$4 sm:$0xff]  }
 0x6ab   :  { %3231 = vpow2.f32 %v2838_v51  ;;  %6834 = vst [vmem:[#allocation72_spill] sm:$0xff] %v5453_v18  ;;  %6835 = vst [vmem:[#allocation78_spill] sm:$0xff] %v5456_v60  ;;  %v5459_v61 = vld [vmem:[#allocation7 + $0xcc] ss:$16 sps:$4 sm:$0xff]   ;;  %v5462_v51 = vld [vmem:[#allocation7 + $0xc0] ss:$16 sps:$4 sm:$0xff]  }
 0x6ac   :  { %3233 = vpow2.f32 %v2839_v44  ;;  %6836 = vst [vmem:[#allocation73_spill] sm:$0xff] %v5459_v61  ;;  %6837 = vst [vmem:[#allocation81_spill] sm:$0xff] %v5462_v51  ;;  %v2840_v44 = vmul.f32 -1.442695, %v2170_v13  ;;  %v5465_v4 = vld [vmem:[#allocation7 + $0xc8] ss:$16 sps:$4 sm:$0xff]  }
 0x6ad   :  { %2323 = vmatpush1.bf16.msra.mxu0 %v5449_v58  ;;  %2364 = vmatpush1.bf16.msra.mxu1 %v5453_v18  ;;  %6838 = vst [vmem:[#allocation82_spill] sm:$0xff] %v5465_v4  ;;  %6839 = vst [vmem:[#allocation83_spill] sm:$0xff] %v5469_v22  ;;  %v5475_v18 = vld [vmem:[#allocation7 + $0xe0] ss:$16 sps:$4 sm:$0xff]   ;;  %v5478_v13 = vld [vmem:[#allocation7 + $0xe8] ss:$16 sps:$4 sm:$0xff]  }
 0x6ae   :  { %2324 = vmatprep.subr.bf16.mxu0 %v5456_v60  ;;  %2365 = vmatprep.subr.bf16.mxu1 %v5459_v61  ;;  %v5472_v60 = vld [vmem:[#allocation7 + $0xec] ss:$16 sps:$4 sm:$0xff]   ;;  %3235 = vpow2.f32 %v2840_v44  ;;  %6841 = vst [vmem:[#allocation85_spill] sm:$0xff] %v5475_v18  ;;  %6842 = vst [vmem:[#allocation86_spill] sm:$0xff] %v5478_v13  ;;  %v5481_v41 = vld [vmem:[#allocation7 + $0x104] ss:$16 sps:$4 sm:$0xff]  }
 0x6af   :  { %6840 = vst [vmem:[#allocation84_spill] sm:$0xff] %v5472_v60  ;;  %3237 = vtanh.f32 %v2168_v25  ;;  %6843 = vst [vmem:[#allocation87_spill] sm:$0xff] %v5481_v41  ;;  %v5496_v25 = vld [vmem:[#allocation7 + $0x12c] ss:$16 sps:$4 sm:$0xff]   ;;  %v5524_v1 = vld [vmem:[#allocation7 + $0x160] ss:$16 sps:$4 sm:$0xff]  }
 0x6b0   :  { %6848 = vst [vmem:[#allocation41_spill] sm:$0xff] %v5496_v25 }
 0x6b1   :  { %2325 = vmatpush1.bf16.msra.mxu0 %v5462_v51  ;;  %2366 = vmatpush1.bf16.msra.mxu1 %v5465_v4 }
 0x6b2   :  { %2326 = vmatprep.subr.bf16.mxu0 %v5469_v22  ;;  %2367 = vmatprep.subr.bf16.mxu1 %v5472_v60  ;;  %v5484_v22 = vld [vmem:[#allocation7 + $0x10c] ss:$16 sps:$4 sm:$0xff]   ;;  %v5487_v60 = vld [vmem:[#allocation7 + $0x100] ss:$16 sps:$4 sm:$0xff]  }
 0x6b3   :  { %6844 = vst [vmem:[#allocation88_spill] sm:$0xff] %v5484_v22  ;;  %6845 = vst [vmem:[#allocation89_spill] sm:$0xff] %v5487_v60 }
 0x6b5   :  { %v3232_v61 = vpop.eup %3231  ;;  %2327 = vmatpush1.bf16.msra.mxu0 %v5475_v18  ;;  %2368 = vmatpush1.bf16.msra.mxu1 %v5478_v13  ;;  %v5490_v18 = vld [vmem:[#allocation7 + $0x108] ss:$16 sps:$4 sm:$0xff]  }
 0x6b6   :  { %v3234_v4 = vpop.eup %3233  ;;  %v2177_v12 = vadd.f32 1.0, %v3232_v61  ;;  %2328 = vmatprep.subr.bf16.mxu0 %v5481_v41  ;;  %2369 = vmatprep.subr.bf16.mxu1 %v5484_v22  ;;  %6846 = vst [vmem:[#allocation90_spill] sm:$0xff] %v5490_v18  ;;  %v5493_v61 = vld [vmem:[#allocation7 + $0x124] ss:$16 sps:$4 sm:$0xff]   ;;  %v5499_v22 = vld [vmem:[#allocation7 + $0x120] ss:$16 sps:$4 sm:$0xff]  }
 0x6b7   :  { %v2183_v44 = vadd.f32 1.0, %v3234_v4  ;;  %6847 = vst [vmem:[#allocation91_spill] sm:$0xff] %v5493_v61  ;;  %6849 = vst [vmem:[#allocation92_spill] sm:$0xff] %v5499_v22  ;;  %v5502_v4 = vld [vmem:[#allocation7 + $0x128] ss:$16 sps:$4 sm:$0xff]  }
 0x6b8   :  { %3239 = vrcp.f32 %v2177_v12  ;;  %6850 = vst [vmem:[#allocation47_spill] sm:$0xff] %v5502_v4  ;;  %v5505_v12 = vld [vmem:[#allocation7 + $0x144] ss:$16 sps:$4 sm:$0xff]  }
 0x6b9   :  { %3241 = vrcp.f32 %v2183_v44  ;;  %2329 = vmatpush1.bf16.msra.mxu0 %v5487_v60  ;;  %2370 = vmatpush1.bf16.msra.mxu1 %v5490_v18  ;;  %6851 = vst [vmem:[#allocation93_spill] sm:$0xff] %v5505_v12  ;;  %v5508_v44 = vld [vmem:[#allocation7 + $0x14c] ss:$16 sps:$4 sm:$0xff]   ;;  %v5511_v60 = vld [vmem:[#allocation7 + $0x140] ss:$16 sps:$4 sm:$0xff]  }
 0x6ba   :  { %2330 = vmatprep.subr.bf16.mxu0 %v5493_v61  ;;  %2371 = vmatprep.subr.bf16.mxu1 %v5496_v25  ;;  %6852 = vst [vmem:[#allocation44_spill] sm:$0xff] %v5508_v44  ;;  %v3236_v61 = vpop.eup %3235  ;;  %6853 = vst [vmem:[#allocation94_spill] sm:$0xff] %v5511_v60  ;;  %v5514_v25 = vld [vmem:[#allocation7 + $0x148] ss:$16 sps:$4 sm:$0xff]   ;;  %v5517_v41 = vld [vmem:[#allocation7 + $0x164] ss:$16 sps:$4 sm:$0xff]  }
 0x6bb   :  { %v3238_v18 = vpop.eup %3237  ;;  %6854 = vst [vmem:[#allocation50_spill] sm:$0xff] %v5517_v41 }
 0x6bd   :  { %2331 = vmatpush1.bf16.msra.mxu0 %v5499_v22  ;;  %2372 = vmatpush1.bf16.msra.mxu1 %v5502_v4  ;;  %v2190_v4 = vadd.f32 1.0, %v3236_v61 }
 0x6be   :  { %2332 = vmatprep.subr.bf16.mxu0 %v5505_v12  ;;  %2373 = vmatprep.subr.bf16.mxu1 %v5508_v44  ;;  %v5520_v12 = vld [vmem:[#allocation7 + $0x16c] ss:$16 sps:$4 sm:$0xff]  }
 0x6bf   :  { %6855 = vst [vmem:[#allocation45_spill] sm:$0xff] %v5520_v12  ;;  %3243 = vrcp.f32 %v2190_v4  ;;  %v5554_v4 = vld [vmem:[#allocation7 + $0x1a8] ss:$16 sps:$4 sm:$0xff]  }
 0x6c0   :  { %6864 = vst [vmem:[#allocation56_spill] sm:$0xff] %v5554_v4 }
 0x6c1   :  { %2333 = vmatpush1.bf16.msra.mxu0 %v5511_v60  ;;  %2374 = vmatpush1.bf16.msra.mxu1 %v5514_v25  ;;  %v5527_v60 = vld [vmem:[#allocation7 + $0x168] ss:$16 sps:$4 sm:$0xff]  }
 0x6c2   :  { %v3240_v22 = vpop.eup %3239  ;;  %2334 = vmatprep.subr.bf16.mxu0 %v5517_v41  ;;  %2375 = vmatprep.subr.bf16.mxu1 %v5520_v12  ;;  %6856 = vst [vmem:[#allocation48_spill] sm:$0xff] %v5527_v60  ;;  %v5532_v41 = vld [vmem:[#allocation7 + $0x184] ss:$16 sps:$4 sm:$0xff]   ;;  %v5535_v12 = vld [vmem:[#allocation7 + $0x18c] ss:$16 sps:$4 sm:$0xff]  }
 0x6c3   :  { %v3242_v44 = vpop.eup %3241  ;;  %v2194_v13 = vmul.f32 %v3240_v22, %v3238_v18  ;;  %6857 = vst [vmem:[#allocation54_spill] sm:$0xff] %v5532_v41  ;;  %6858 = vst [vmem:[#allocation49_spill] sm:$0xff] %v5535_v12  ;;  %v5542_v18 = vld [vmem:[#allocation7 + $0x188] ss:$16 sps:$4 sm:$0xff]   ;;  %v5548_v22 = vld [vmem:[#allocation7 + $0x1ac] ss:$16 sps:$4 sm:$0xff]  }
 0x6c4   :  { %v2193_v51 = vmul.f32 %v3242_v44, %v5266_v56  ;;  %v5539_v56 = vld [vmem:[#allocation7 + $0x180] ss:$16 sps:$4 sm:$0xff]   ;;  %6860 = vst [vmem:[#allocation52_spill] sm:$0xff] %v5542_v18  ;;  %6862 = vst [vmem:[#allocation53_spill] sm:$0xff] %v5548_v22  ;;  %v5557_v44 = vld [vmem:[#allocation7 + $0x1c4] ss:$16 sps:$4 sm:$0xff]  }
 0x6c5   :  { %2335 = vmatpush1.bf16.msra.mxu0 %v5524_v1  ;;  %2376 = vmatpush1.bf16.msra.mxu1 %v5527_v60  ;;  %6859 = vst [vmem:[#allocation55_spill] sm:$0xff] %v5539_v56  ;;  %6865 = vst [vmem:[#allocation62_spill] sm:$0xff] %v5557_v44  ;;  %v5578_v60 = vld [vmem:[#allocation7 + $0x1e8] ss:$16 sps:$4 sm:$0xff]  }
 0x6c6   :  { %v5530_v61 = vadd.f32 %v2194_v13, %v2193_v51  ;;  %2336 = vmatprep.subr.bf16.mxu0 %v5532_v41  ;;  %2377 = vmatprep.subr.bf16.mxu1 %v5535_v12  ;;  %v5545_v51 = vld [vmem:[#allocation7 + $0x1a4] ss:$16 sps:$4 sm:$0xff]   ;;  %v5551_v13 = vld [vmem:[#allocation7 + $0x1a0] ss:$16 sps:$4 sm:$0xff]  }
 0x6c7   :  { %6861 = vst [vmem:[#allocation58_spill] sm:$0xff] %v5545_v51  ;;  %6863 = vst [vmem:[#allocation59_spill] sm:$0xff] %v5551_v13  ;;  %v5569_v12 = vld [vmem:[#allocation7 + $0x1e4] ss:$16 sps:$4 sm:$0xff]  }
 0x6c8   :  { %3245 = vtanh.f32 %v5530_v61 }
 0x6c9   :  { %2337 = vmatpush1.bf16.msra.mxu0 %v5539_v56  ;;  %2378 = vmatpush1.bf16.msra.mxu1 %v5542_v18  ;;  %v5560_v18 = vld [vmem:[#allocation7 + $0x1cc] ss:$16 sps:$4 sm:$0xff]   ;;  %v5563_v56 = vld [vmem:[#allocation7 + $0x1c0] ss:$16 sps:$4 sm:$0xff]  }
 0x6ca   :  { %2338 = vmatprep.subr.bf16.mxu0 %v5545_v51  ;;  %2379 = vmatprep.subr.bf16.mxu1 %v5548_v22  ;;  %6866 = vst [vmem:[#allocation57_spill] sm:$0xff] %v5560_v18  ;;  %v3244_v51 = vpop.eup %3243  ;;  %6867 = vst [vmem:[#allocation63_spill] sm:$0xff] %v5563_v56  ;;  %v5566_v22 = vld [vmem:[#allocation7 + $0x1c8] ss:$16 sps:$4 sm:$0xff]  }
 0x6cd   :  { %2339 = vmatpush1.bf16.msra.mxu0 %v5551_v13  ;;  %2380 = vmatpush1.bf16.msra.mxu1 %v5554_v4  ;;  %v5572_v4 = vld [vmem:[#allocation7 + $0x1ec] ss:$16 sps:$4 sm:$0xff]  }
 0x6ce   :  { %2340 = vmatprep.subr.bf16.mxu0 %v5557_v44  ;;  %2381 = vmatprep.subr.bf16.mxu1 %v5560_v18  ;;  %v5575_v18 = vld [vmem:[#allocation7 + $0x1e0] ss:$16 sps:$4 sm:$0xff]  }
 0x6d1   :  { %2341 = vmatpush1.bf16.msra.mxu0 %v5563_v56  ;;  %2382 = vmatpush1.bf16.msra.mxu1 %v5566_v22  ;;  %v2311_v56 = vld [vmem:[#allocation2 + $0x4] sm:$0xf] }
 0x6d2   :  { %v3246_v13 = vpop.eup %3245  ;;  %2342 = vmatprep.subr.bf16.mxu0 %v5569_v12  ;;  %2383 = vmatprep.subr.bf16.mxu1 %v5572_v4 }
 0x6d3   :  { %v2197_v44 = vmul.f32 %v3246_v13, %v3244_v51 }
 0x6d5   :  { %2343 = vmatpush1.bf16.msra.mxu0 %v5575_v18  ;;  %v2201_v41 = vpack.c.bf16 %v2197_v44, %v2197_v44  ;;  %2384 = vmatpush1.bf16.msra.mxu1 %v5578_v60 }
 0x6d6   :  { %2425 = vmatprep.subr.bf16.mxu0 %v6762_v10  ;;  %2466 = vmatprep.subr.bf16.mxu1 %v6763_v50  ;;  %v6870_v10 = vld [vmem:[#allocation64_spill] sm:$0xff]  ;;  %v6871_v50 = vld [vmem:[#allocation65_spill] sm:$0xff] }
 0x6d7   :  { %2203 = vst [vmem:[#allocation9 + $0x8] sm:$0xf] %v2201_v41  ;;  %2344 = vmatprep.mubr.bf16.mxu0 %v2201_v41  ;;  %2385 = vmatprep.mubr.bf16.mxu1 %v2201_v41  ;;  %v6868_v41 = vld [vmem:[#allocation61_spill] sm:$0xff] }
 0x6d8   :  { %2345 = vmatmul.mubr.bf16.vlgmr.msra.gmra.mrb[52].mxu0 %v2311_v56  ;;  %2386 = vmatmul.mubr.bf16.vlgmr.msra.gmra.mrb[52].mxu1 %v2311_v56 }
 0x6d9   :  { %2426 = vmatpush1.bf16.msra.mxu0 %v5043_v48  ;;  %2467 = vmatpush1.bf16.msra.mxu1 %v6764_v16  ;;  %v6869_v48 = vld [vmem:[#allocation67_spill] sm:$0xff] }
 0x6da   :  { %2427 = vmatprep.subr.bf16.mxu0 %v6765_v49  ;;  %2468 = vmatprep.subr.bf16.mxu1 %v6766_v15  ;;  %v6872_v16 = vld [vmem:[#allocation71_spill] sm:$0xff]  ;;  %v6874_v15 = vld [vmem:[#allocation76_spill] sm:$0xff] }
 0x6db   :  { %v6873_v49 = vld [vmem:[#allocation79_spill] sm:$0xff] }
 0x6dd   :  { %2428 = vmatpush1.bf16.msra.mxu0 %v6767_v47  ;;  %2469 = vmatpush1.bf16.msra.mxu1 %v6768_v43  ;;  %v6875_v47 = vld [vmem:[#allocation77_spill] sm:$0xff] }
 0x6de   :  { %2429 = vmatprep.subr.bf16.mxu0 %v6769_v26  ;;  %2470 = vmatprep.subr.bf16.mxu1 %v6770_v8  ;;  %v6876_v43 = vld [vmem:[#allocation21_spill] sm:$0xff]  ;;  %v6878_v8 = vld [vmem:[#allocation42_spill] sm:$0xff] }
 0x6df   :  { %v6877_v26 = vld [vmem:[#allocation29_spill] sm:$0xff] }
 0x6e1   :  { %2430 = vmatpush1.bf16.msra.mxu0 %v6771_v52  ;;  %2471 = vmatpush1.bf16.msra.mxu1 %v6772_v21  ;;  %v6879_v52 = vld [vmem:[#allocation43_spill] sm:$0xff] }
 0x6e2   :  { %2431 = vmatprep.subr.bf16.mxu0 %v6773_v11  ;;  %2472 = vmatprep.subr.bf16.mxu1 %v6774_v63  ;;  %v6880_v21 = vld [vmem:[#allocation95_spill] sm:$0xff]  ;;  %v6881_v11 = vld [vmem:[#allocation40_spill] sm:$0xff] }
 0x6e3   :  { %v6882_v63 = vld [vmem:[#allocation80_spill] sm:$0xff] }
 0x6e5   :  { %2432 = vmatpush1.bf16.msra.mxu0 %v6775_v9  ;;  %2473 = vmatpush1.bf16.msra.mxu1 %v6776_v27  ;;  %v6883_v9 = vld [vmem:[#allocation70_spill] sm:$0xff] }
 0x6e6   :  { %2433 = vmatprep.subr.bf16.mxu0 %v6777_v38  ;;  %2474 = vmatprep.subr.bf16.mxu1 %v6778_v28  ;;  %v6884_v27 = vld [vmem:[#allocation18_spill] sm:$0xff]  ;;  %v6885_v38 = vld [vmem:[#allocation75_spill] sm:$0xff] }
 0x6e7   :  { %v6886_v28 = vld [vmem:[#allocation19_spill] sm:$0xff] }
 0x6e9   :  { %2434 = vmatpush1.bf16.msra.mxu0 %v6779_v6  ;;  %2475 = vmatpush1.bf16.msra.mxu1 %v6780_v30  ;;  %v6887_v6 = vld [vmem:[#allocation20_spill] sm:$0xff]  ;;  %v6888_v30 = vld [vmem:[#allocation22_spill] sm:$0xff] }
 0x6ea   :  { %2435 = vmatprep.subr.bf16.mxu0 %v6781_v32  ;;  %2476 = vmatprep.subr.bf16.mxu1 %v6782_v55  ;;  %v6889_v32 = vld [vmem:[#allocation23_spill] sm:$0xff]  ;;  %v6890_v55 = vld [vmem:[#allocation24_spill] sm:$0xff] }
 0x6ed   :  { %2436 = vmatpush1.bf16.msra.mxu0 %v6783_v33  ;;  %2477 = vmatpush1.bf16.msra.mxu1 %v6784_v45  ;;  %v6891_v33 = vld [vmem:[#allocation25_spill] sm:$0xff]  ;;  %v6892_v45 = vld [vmem:[#allocation28_spill] sm:$0xff] }
 0x6ee   :  { %2437 = vmatprep.subr.bf16.mxu0 %v6785_v2  ;;  %2478 = vmatprep.subr.bf16.mxu1 %v6786_v3  ;;  %v6893_v2 = vld [vmem:[#allocation26_spill] sm:$0xff]  ;;  %v6894_v3 = vld [vmem:[#allocation27_spill] sm:$0xff] }
 0x6f1   :  { %2438 = vmatpush1.bf16.msra.mxu0 %v6787_v34  ;;  %2479 = vmatpush1.bf16.msra.mxu1 %v6788_v24  ;;  %v6895_v34 = vld [vmem:[#allocation32_spill] sm:$0xff]  ;;  %v6896_v24 = vld [vmem:[#allocation30_spill] sm:$0xff] }
 0x6f2   :  { %2439 = vmatprep.subr.bf16.mxu0 %v6789_v53  ;;  %2480 = vmatprep.subr.bf16.mxu1 %v6790_v59  ;;  %v6897_v53 = vld [vmem:[#allocation35_spill] sm:$0xff] }
 0x6f3   :  { %v6898_v59 = vld [vmem:[#allocation31_spill] sm:$0xff] }
 0x6f5   :  { %2440 = vmatpush1.bf16.msra.mxu0 %v6791_v17  ;;  %2481 = vmatpush1.bf16.msra.mxu1 %v6792_v0 }
 0x6f6   :  { %2441 = vmatprep.subr.bf16.mxu0 %v6793_v57  ;;  %2482 = vmatprep.subr.bf16.mxu1 %v6794_v19  ;;  %v6899_v57 = vld [vmem:[#allocation15_spill] sm:$0xff] }
 0x6f9   :  { %2442 = vmatpush1.bf16.msra.mxu0 %v6795_v54  ;;  %2483 = vmatpush1.bf16.msra.mxu1 %v6868_v41 }
 0x6fa   :  { %2443 = vmatprep.subr.bf16.mxu0 %v6869_v48  ;;  %2484 = vmatprep.subr.bf16.mxu1 %v6870_v10 }
 0x6fd   :  { %2444 = vmatpush1.bf16.msra.mxu0 %v6871_v50  ;;  %2485 = vmatpush1.bf16.msra.mxu1 %v6872_v16 }
 0x6fe   :  { %2445 = vmatprep.subr.bf16.mxu0 %v6873_v49  ;;  %2486 = vmatprep.subr.bf16.mxu1 %v6874_v15 }
 0x701   :  { %2446 = vmatpush1.bf16.msra.mxu0 %v6875_v47  ;;  %2487 = vmatpush1.bf16.msra.mxu1 %v6876_v43 }
 0x702   :  { %2447 = vmatprep.subr.bf16.mxu0 %v6877_v26  ;;  %2488 = vmatprep.subr.bf16.mxu1 %v6878_v8 }
 0x705   :  { %2448 = vmatpush1.bf16.msra.mxu0 %v6879_v52  ;;  %2489 = vmatpush1.bf16.msra.mxu1 %v6880_v21 }
 0x706   :  { %2449 = vmatprep.subr.bf16.mxu0 %v6881_v11  ;;  %2490 = vmatprep.subr.bf16.mxu1 %v6882_v63 }
 0x709   :  { %2450 = vmatpush1.bf16.msra.mxu0 %v6883_v9  ;;  %2491 = vmatpush1.bf16.msra.mxu1 %v6884_v27 }
 0x70a   :  { %2451 = vmatprep.subr.bf16.mxu0 %v6885_v38  ;;  %2492 = vmatprep.subr.bf16.mxu1 %v6886_v28 }
 0x70d   :  { %2452 = vmatpush1.bf16.msra.mxu0 %v6887_v6  ;;  %2493 = vmatpush1.bf16.msra.mxu1 %v6888_v30 }
 0x70e   :  { %2453 = vmatprep.subr.bf16.mxu0 %v6889_v32  ;;  %2494 = vmatprep.subr.bf16.mxu1 %v6890_v55 }
 0x711   :  { %2454 = vmatpush1.bf16.msra.mxu0 %v6891_v33  ;;  %2495 = vmatpush1.bf16.msra.mxu1 %v6892_v45  ;;  %v2424_v33 = vld [vmem:[#allocation2 + $0x1c] sm:$0xf]  ;;  %v6901_v45 = vld [vmem:[#allocation33_spill] sm:$0xff] }
 0x712   :  { %2455 = vmatprep.subr.bf16.mxu0 %v6893_v2  ;;  %2496 = vmatprep.subr.bf16.mxu1 %v6894_v3  ;;  %v6902_v2 = vld [vmem:[#allocation34_spill] sm:$0xff]  ;;  %v6903_v3 = vld [vmem:[#allocation39_spill] sm:$0xff] }
 0x715   :  { %2456 = vmatpush1.bf16.msra.mxu0 %v6895_v34  ;;  %2497 = vmatpush1.bf16.msra.mxu1 %v6896_v24  ;;  %v6904_v34 = vld [vmem:[#allocation37_spill] sm:$0xff]  ;;  %v6905_v24 = vld [vmem:[#allocation38_spill] sm:$0xff] }
 0x716   :  { %2532 = vmatprep.subr.bf16.mxu0 %v6897_v53  ;;  %2573 = vmatprep.subr.bf16.mxu1 %v6898_v59  ;;  %v6910_v59 = vld [vmem:[#allocation69_spill] sm:$0xff] }
 0x76b   :  { %v2239_v17 = vpop.f32.mrb[48].mxu0  ;;  %v2280_v0 = vpop.f32.mrb[48].mxu1 }
 0x76c   :  { %v2240_v19 = vadd.f32 %v2239_v17, %v6899_v57  ;;  %v2241_v54 = vpop.f32.mrb[49].mxu0  ;;  %v2282_v56 = vpop.f32.mrb[49].mxu1  ;;  %v2281_v15 = vadd.f32 %v2280_v0, %v4255_v36 }
 0x76d   :  { %v2242_v51 = vadd.f32 %v2241_v54, %v4242_v20  ;;  %v2243_v13 = vpop.f32.mrb[50].mxu0  ;;  %v2284_v44 = vpop.f32.mrb[50].mxu1  ;;  %v2283_v16 = vadd.f32 %v2282_v56, %v4249_v29 }
 0x76e   :  { %v2841_v41 = vmul.f32 -1.442695, %v2240_v19  ;;  %v2244_v48 = vpop.f32.mrb[51].mxu0  ;;  %v2285_v10 = vpop.f32.mrb[51].mxu1 }
 0x76f   :  { %v2842_v50 = vmul.f32 -1.442695, %v2242_v51  ;;  %v2843_v49 = vmul.f32 -1.442695, %v2283_v16  ;;  %v6911_v10 = vld [vmem:[#allocation16_spill] sm:$0xff] }
 0x770   :  { %3247 = vpow2.f32 %v2841_v41  ;;  %v6912_v16 = vld [vmem:[#allocation72_spill] sm:$0xff] }
 0x771   :  { %3249 = vpow2.f32 %v2842_v50 }
 0x772   :  { %3251 = vpow2.f32 %v2843_v49  ;;  %v6913_v49 = vld [vmem:[#allocation78_spill] sm:$0xff] }
 0x773   :  { %3253 = vtanh.f32 %v2281_v15  ;;  %v6914_v15 = vld [vmem:[#allocation73_spill] sm:$0xff] }
 0x77a   :  { %v3248_v47 = vpop.eup %3247 }
 0x77b   :  { %v3250_v43 = vpop.eup %3249  ;;  %v2290_v26 = vadd.f32 1.0, %v3248_v47  ;;  %v6916_v47 = vld [vmem:[#allocation82_spill] sm:$0xff] }
 0x77c   :  { %v2296_v8 = vadd.f32 1.0, %v3250_v43  ;;  %v3252_v52 = vpop.eup %3251 }
 0x77d   :  { %3255 = vrcp.f32 %v2290_v26  ;;  %v3254_v21 = vpop.eup %3253  ;;  %v2303_v63 = vadd.f32 1.0, %v3252_v52  ;;  %v6919_v26 = vld [vmem:[#allocation84_spill] sm:$0xff]  ;;  %v6921_v52 = vld [vmem:[#allocation86_spill] sm:$0xff] }
 0x77e   :  { %3257 = vrcp.f32 %v2296_v8  ;;  %v6920_v8 = vld [vmem:[#allocation85_spill] sm:$0xff] }
 0x77f   :  { %3259 = vrcp.f32 %v2303_v63  ;;  %v6922_v63 = vld [vmem:[#allocation87_spill] sm:$0xff] }
 0x787   :  { %v3256_v11 = vpop.eup %3255 }
 0x788   :  { %v3258_v9 = vpop.eup %3257  ;;  %v2307_v27 = vmul.f32 %v3256_v11, %v3254_v21 }
 0x789   :  { %v2306_v38 = vmul.f32 %v3258_v9, %v5388_v37  ;;  %v3260_v6 = vpop.eup %3259  ;;  %v6900_v37 = vld [vmem:[#allocation36_spill] sm:$0xff] }
 0x78a   :  { %v6923_v9 = vld [vmem:[#allocation88_spill] sm:$0xff] }
 0x78b   :  { %v5652_v28 = vadd.f32 %v2307_v27, %v2306_v38  ;;  %v6924_v38 = vld [vmem:[#allocation89_spill] sm:$0xff] }
 0x78d   :  { %3261 = vtanh.f32 %v5652_v28 }
 0x797   :  { %v3262_v30 = vpop.eup %3261 }
 0x798   :  { %v2310_v32 = vmul.f32 %v3262_v30, %v3260_v6  ;;  %v6925_v6 = vld [vmem:[#allocation90_spill] sm:$0xff]  ;;  %v6926_v30 = vld [vmem:[#allocation91_spill] sm:$0xff] }
 0x79a   :  { %v2418_v55 = vpack.c.bf16 %v2310_v32, %v2310_v32  ;;  %v6927_v32 = vld [vmem:[#allocation41_spill] sm:$0xff] }
 0x79c   :  { %2420 = vst [vmem:[#allocation8 + $0x18] sm:$0xf] %v2418_v55  ;;  %2457 = vmatprep.mubr.bf16.mxu0 %v2418_v55  ;;  %2498 = vmatprep.mubr.bf16.mxu1 %v2418_v55  ;;  %v6928_v55 = vld [vmem:[#allocation92_spill] sm:$0xff] }
 0x79d   :  { %2458 = vmatmul.mubr.bf16.vlgmr.msra.gmra.mrb[56].mxu0 %v2424_v33  ;;  %2499 = vmatmul.mubr.bf16.vlgmr.msra.gmra.mrb[56].mxu1 %v2424_v33  ;;  %v6929_v33 = vld [vmem:[#allocation47_spill] sm:$0xff] }
 0x79e   :  { %2533 = vmatpush1.bf16.msra.mxu0 %v5211_v42  ;;  %2574 = vmatpush1.bf16.msra.mxu1 %v5392_v62  ;;  %v6906_v42 = vld [vmem:[#allocation46_spill] sm:$0xff]  ;;  %v6907_v62 = vld [vmem:[#allocation51_spill] sm:$0xff] }
 0x79f   :  { %2534 = vmatprep.subr.bf16.mxu0 %v5215_v14  ;;  %2575 = vmatprep.subr.bf16.mxu1 %v5396_v23  ;;  %v6908_v14 = vld [vmem:[#allocation68_spill] sm:$0xff] }
 0x7a2   :  { %2535 = vmatpush1.bf16.msra.mxu0 %v5399_v5  ;;  %2576 = vmatpush1.bf16.msra.mxu1 %v6900_v37  ;;  %v6909_v5 = vld [vmem:[#allocation74_spill] sm:$0xff]  ;;  %v6930_v37 = vld [vmem:[#allocation93_spill] sm:$0xff] }
 0x7a3   :  { %2536 = vmatprep.subr.bf16.mxu0 %v6901_v45  ;;  %2577 = vmatprep.subr.bf16.mxu1 %v6902_v2  ;;  %v6931_v45 = vld [vmem:[#allocation44_spill] sm:$0xff] }
 0x7a6   :  { %2537 = vmatpush1.bf16.msra.mxu0 %v6903_v3  ;;  %2578 = vmatpush1.bf16.msra.mxu1 %v6904_v34  ;;  %v6932_v34 = vld [vmem:[#allocation94_spill] sm:$0xff] }
 0x7a7   :  { %2538 = vmatprep.subr.bf16.mxu0 %v6905_v24  ;;  %2579 = vmatprep.subr.bf16.mxu1 %v6906_v42 }
 0x7aa   :  { %2539 = vmatpush1.bf16.msra.mxu0 %v6907_v62  ;;  %2580 = vmatpush1.bf16.msra.mxu1 %v6908_v14  ;;  %v6933_v62 = vld [vmem:[#allocation50_spill] sm:$0xff]  ;;  %v6934_v14 = vld [vmem:[#allocation45_spill] sm:$0xff] }
 0x7ab   :  { %v2346_v23 = vpop.f32.mrb[52].mxu0  ;;  %2540 = vmatprep.subr.bf16.mxu0 %v6909_v5  ;;  %v2387_v53 = vpop.f32.mrb[52].mxu1  ;;  %2581 = vmatprep.subr.bf16.mxu1 %v6910_v59  ;;  %v6935_v59 = vld [vmem:[#allocation48_spill] sm:$0xff] }
 0x7ac   :  { %v2347_v17 = vadd.f32 %v2346_v23, %v4278_v39  ;;  %v2348_v0 = vpop.f32.mrb[53].mxu0  ;;  %v2389_v19 = vpop.f32.mrb[53].mxu1 }
 0x7ad   :  { %v2349_v54 = vadd.f32 %v2348_v0, %v4282_v40  ;;  %v2350_v56 = vpop.f32.mrb[54].mxu0  ;;  %v2391_v51 = vpop.f32.mrb[54].mxu1  ;;  %v2390_v50 = vadd.f32 %v2389_v19, %v6911_v10  ;;  %v6936_v0 = vld [vmem:[#allocation54_spill] sm:$0xff]  ;;  %v6938_v19 = vld [vmem:[#allocation55_spill] sm:$0xff] }
 0x7ae   :  { %v2844_v13 = vmul.f32 -1.442695, %v2347_v17  ;;  %v2351_v44 = vpop.f32.mrb[55].mxu0  ;;  %2541 = vmatpush1.bf16.msra.mxu0 %v5437_v7  ;;  %v2392_v41 = vpop.f32.mrb[55].mxu1  ;;  %2582 = vmatpush1.bf16.msra.mxu1 %v5440_v31  ;;  %v6915_v7 = vld [vmem:[#allocation81_spill] sm:$0xff]  ;;  %v6940_v56 = vld [vmem:[#allocation58_spill] sm:$0xff] }
 0x7af   :  { %v2845_v48 = vmul.f32 -1.442695, %v2349_v54  ;;  %2542 = vmatprep.subr.bf16.mxu0 %v5443_v46  ;;  %2583 = vmatprep.subr.bf16.mxu1 %v5446_v35  ;;  %v2846_v31 = vmul.f32 -1.442695, %v2390_v50  ;;  %v6917_v46 = vld [vmem:[#allocation17_spill] sm:$0xff]  ;;  %v6918_v35 = vld [vmem:[#allocation83_spill] sm:$0xff] }
 0x7b0   :  { %3263 = vpow2.f32 %v2844_v13  ;;  %v2388_v43 = vadd.f32 %v2387_v53, %v6917_v46  ;;  %v6939_v54 = vld [vmem:[#allocation52_spill] sm:$0xff]  ;;  %v6944_v13 = vld [vmem:[#allocation62_spill] sm:$0xff]  ;;  %v6945_v44 = vld [vmem:[#allocation57_spill] sm:$0xff] }
 0x7b1   :  { %3265 = vpow2.f32 %v2845_v48  ;;  %v6943_v51 = vld [vmem:[#allocation56_spill] sm:$0xff]  ;;  %v6946_v48 = vld [vmem:[#allocation63_spill] sm:$0xff] }
 0x7b2   :  { %2543 = vmatpush1.bf16.msra.mxu0 %v5449_v58  ;;  %2584 = vmatpush1.bf16.msra.mxu1 %v6912_v16  ;;  %3267 = vpow2.f32 %v2846_v31 }
 0x7b3   :  { %2544 = vmatprep.subr.bf16.mxu0 %v6913_v49  ;;  %2585 = vmatprep.subr.bf16.mxu1 %v6914_v15  ;;  %3269 = vtanh.f32 %v2388_v43  ;;  %v2531_v15 = vld [vmem:[#allocation2] sm:$0xf] }
 0x7b6   :  { %2545 = vmatpush1.bf16.msra.mxu0 %v6915_v7  ;;  %2586 = vmatpush1.bf16.msra.mxu1 %v6916_v47 }
 0x7b7   :  { %2546 = vmatprep.subr.bf16.mxu0 %v6918_v35  ;;  %2587 = vmatprep.subr.bf16.mxu1 %v6919_v26 }
 0x7ba   :  { %v3264_v58 = vpop.eup %3263  ;;  %2547 = vmatpush1.bf16.msra.mxu0 %v6920_v8  ;;  %2588 = vmatpush1.bf16.msra.mxu1 %v6921_v52 }
 0x7bb   :  { %v3266_v21 = vpop.eup %3265  ;;  %v2397_v11 = vadd.f32 1.0, %v3264_v58  ;;  %2548 = vmatprep.subr.bf16.mxu0 %v6922_v63  ;;  %2589 = vmatprep.subr.bf16.mxu1 %v6923_v9 }
 0x7bc   :  { %v2403_v27 = vadd.f32 1.0, %v3266_v21  ;;  %v3268_v2 = vpop.eup %3267 }
 0x7bd   :  { %3271 = vrcp.f32 %v2397_v11  ;;  %v3270_v3 = vpop.eup %3269  ;;  %v2410_v42 = vadd.f32 1.0, %v3268_v2 }
 0x7be   :  { %3273 = vrcp.f32 %v2403_v27  ;;  %2549 = vmatpush1.bf16.msra.mxu0 %v6924_v38  ;;  %2590 = vmatpush1.bf16.msra.mxu1 %v6925_v6 }
 0x7bf   :  { %2550 = vmatprep.subr.bf16.mxu0 %v6926_v30  ;;  %2591 = vmatprep.subr.bf16.mxu1 %v6927_v32  ;;  %3275 = vrcp.f32 %v2410_v42 }
 0x7c2   :  { %2551 = vmatpush1.bf16.msra.mxu0 %v6928_v55  ;;  %2592 = vmatpush1.bf16.msra.mxu1 %v6929_v33 }
 0x7c3   :  { %2552 = vmatprep.subr.bf16.mxu0 %v6930_v37  ;;  %2593 = vmatprep.subr.bf16.mxu1 %v6931_v45 }
 0x7c6   :  { %2553 = vmatpush1.bf16.msra.mxu0 %v6932_v34  ;;  %2594 = vmatpush1.bf16.msra.mxu1 %v5514_v25  ;;  %v6937_v25 = vld [vmem:[#allocation49_spill] sm:$0xff] }
 0x7c7   :  { %v3272_v24 = vpop.eup %3271  ;;  %2554 = vmatprep.subr.bf16.mxu0 %v6933_v62  ;;  %2595 = vmatprep.subr.bf16.mxu1 %v6934_v14 }
 0x7c8   :  { %v3274_v23 = vpop.eup %3273  ;;  %v2414_v5 = vmul.f32 %v3272_v24, %v3270_v3 }
 0x7c9   :  { %v2413_v53 = vmul.f32 %v3274_v23, %v5530_v61  ;;  %v6941_v61 = vld [vmem:[#allocation53_spill] sm:$0xff]  ;;  %v3276_v41 = vpop.eup %3275 }
 0x7ca   :  { %2555 = vmatpush1.bf16.msra.mxu0 %v5524_v1  ;;  %2596 = vmatpush1.bf16.msra.mxu1 %v6935_v59  ;;  %v6942_v1 = vld [vmem:[#allocation59_spill] sm:$0xff] }
 0x7cb   :  { %v5706_v17 = vadd.f32 %v2414_v5, %v2413_v53  ;;  %2556 = vmatprep.subr.bf16.mxu0 %v6936_v0  ;;  %2597 = vmatprep.subr.bf16.mxu1 %v6937_v25 }
 0x7cd   :  { %3277 = vtanh.f32 %v5706_v17 }
 0x7ce   :  { %2557 = vmatpush1.bf16.msra.mxu0 %v6938_v19  ;;  %2598 = vmatpush1.bf16.msra.mxu1 %v6939_v54 }
 0x7cf   :  { %2558 = vmatprep.subr.bf16.mxu0 %v6940_v56  ;;  %2599 = vmatprep.subr.bf16.mxu1 %v6941_v61 }
 0x7d2   :  { %2559 = vmatpush1.bf16.msra.mxu0 %v6942_v1  ;;  %2600 = vmatpush1.bf16.msra.mxu1 %v6943_v51 }
 0x7d3   :  { %2560 = vmatprep.subr.bf16.mxu0 %v6944_v13  ;;  %2601 = vmatprep.subr.bf16.mxu1 %v6945_v44 }
 0x7d6   :  { %2561 = vmatpush1.bf16.msra.mxu0 %v6946_v48  ;;  %2602 = vmatpush1.bf16.msra.mxu1 %v5566_v22 }
 0x7d7   :  { %v3278_v50 = vpop.eup %3277  ;;  %2562 = vmatprep.subr.bf16.mxu0 %v5569_v12  ;;  %2603 = vmatprep.subr.bf16.mxu1 %v5572_v4 }
 0x7d8   :  { %v2417_v16 = vmul.f32 %v3278_v50, %v3276_v41 }
 0x7da   :  { %2563 = vmatpush1.bf16.msra.mxu0 %v5575_v18  ;;  %v2421_v49 = vpack.c.bf16 %v2417_v16, %v2417_v16  ;;  %2604 = vmatpush1.bf16.msra.mxu1 %v5578_v60 }
 0x7dc   :  { %2423 = vst [vmem:[#allocation9 + $0x4] sm:$0xf] %v2421_v49  ;;  %2564 = vmatprep.mubr.bf16.mxu0 %v2421_v49  ;;  %2605 = vmatprep.mubr.bf16.mxu1 %v2421_v49 }
 0x7dd   :  { %2565 = vmatmul.mubr.bf16.vlgmr.msra.gmra.mrb[60].mxu0 %v2531_v15  ;;  %2606 = vmatmul.mubr.bf16.vlgmr.msra.gmra.mrb[60].mxu1 %v2531_v15 }
 0x870   :  { %v2459_v7 = vpop.f32.mrb[56].mxu0  ;;  %v2500_v31 = vpop.f32.mrb[56].mxu1 }
 0x871   :  { %v2460_v22 = vadd.f32 %v2459_v7, %v6899_v57  ;;  %v2461_v47 = vpop.f32.mrb[57].mxu0  ;;  %v2502_v12 = vpop.f32.mrb[57].mxu1  ;;  %v2501_v21 = vadd.f32 %v2500_v31, %v4255_v36 }
 0x872   :  { %v2462_v4 = vadd.f32 %v2461_v47, %v4242_v20  ;;  %v2463_v43 = vpop.f32.mrb[58].mxu0  ;;  %v2504_v35 = vpop.f32.mrb[58].mxu1  ;;  %v2503_v60 = vadd.f32 %v2502_v12, %v4249_v29 }
 0x873   :  { %v2847_v18 = vmul.f32 -1.442695, %v2460_v22  ;;  %v2464_v26 = vpop.f32.mrb[59].mxu0  ;;  %v2505_v58 = vpop.f32.mrb[59].mxu1 }
 0x874   :  { %v2848_v8 = vmul.f32 -1.442695, %v2462_v4  ;;  %v2849_v52 = vmul.f32 -1.442695, %v2503_v60 }
 0x875   :  { %3279 = vpow2.f32 %v2847_v18 }
 0x876   :  { %3281 = vpow2.f32 %v2848_v8 }
 0x877   :  { %3283 = vpow2.f32 %v2849_v52 }
 0x878   :  { %3285 = vtanh.f32 %v2501_v21 }
 0x87f   :  { %v3280_v11 = vpop.eup %3279 }
 0x880   :  { %v3282_v57 = vpop.eup %3281  ;;  %v2510_v63 = vadd.f32 1.0, %v3280_v11 }
 0x881   :  { %v2516_v9 = vadd.f32 1.0, %v3282_v57  ;;  %v3284_v20 = vpop.eup %3283 }
 0x882   :  { %3287 = vrcp.f32 %v2510_v63  ;;  %v3286_v27 = vpop.eup %3285  ;;  %v2523_v6 = vadd.f32 1.0, %v3284_v20 }
 0x883   :  { %3289 = vrcp.f32 %v2516_v9 }
 0x884   :  { %3291 = vrcp.f32 %v2523_v6 }
 0x88c   :  { %v3288_v38 = vpop.eup %3287 }
 0x88d   :  { %v3290_v30 = vpop.eup %3289  ;;  %v2527_v32 = vmul.f32 %v3288_v38, %v3286_v27 }
 0x88e   :  { %v2526_v55 = vmul.f32 %v3290_v30, %v5652_v28  ;;  %v3292_v36 = vpop.eup %3291 }
 0x890   :  { %v2528_v29 = vadd.f32 %v2527_v32, %v2526_v55 }
 0x892   :  { %3293 = vtanh.f32 %v2528_v29 }
 0x89c   :  { %v3294_v33 = vpop.eup %3293 }
 0x89d   :  { %v2530_v37 = vmul.f32 %v3294_v33, %v3292_v36 }
 0x89f   :  { %v2638_v45 = vpack.c.bf16 %v2530_v37, %v2530_v37 }
 0x8a1   :  { %2640 = vst [vmem:[#allocation8 + $0x1c] sm:$0xf] %v2638_v45 }
 0x8a2   :  { %3644 = shalt.err (!%p3641_p0)
}
 0x8a3   :  { %s3645_s17 = scalar_lea.hbm %s5770_s5, 512 }
 0x8a4   :  { %p3646_p1 = scmp.ne.s32.totalorder %s5770_s5, %s3645_s17  ;;  %p3649_p2 = scmp.lt.u32.totalorder %s3645_s17, %s5770_s5 }
 0x8a6   :  { %p3651_p3 = pnand %p3649_p2, %p3646_p1 }
 0x8a8   :  { %3654 = shalt.err (!%p3651_p3)
}
 0x8a9   :  { %2654 = dma.vmem_to_hbm [thread:$0]  %s2649_s13, 512, %s5770_s5, [#allocation4], %s3689_s1, %s3689_s1, %s3690_s21  }
 0x8aa   :  { %s3694_s5 = smov [#allocation9]  }
 0x8ab   :  { %s2660_s25 = sshll.u32 %s3694_s5, 4  ;;  %s2661_s25 = int_to_ptr.vmem [resolvable:$true] %s2660_s25 }
 0x8ac   :  { %s3655_s26 = scalar_lea.vmem %s2661_s25, 512  ;;  %p3660_p5 = scmp.lt.s32.totalorder %s2661_s25, %s2661_s25 }
 0x8ad   :  { %p3656_p4 = scmp.ne.s32.totalorder %s2661_s25, %s3655_s26  ;;  %p3661_p6 = scmp.lt.s32.totalorder %s3655_s26, %s3655_s26 }
 0x8af   :  { %p3662_p7 = por %p3661_p6, %p3660_p5 }
 0x8b0   :  { %v2566_v28 = vpop.f32.mrb[60].mxu0  ;;  %v2607_v2 = vpop.f32.mrb[60].mxu1 }
 0x8b1   :  { %v2567_v3 = vadd.f32 %v2566_v28, %v4278_v39  ;;  %v2568_v34 = vpop.f32.mrb[61].mxu0  ;;  %v2609_v24 = vpop.f32.mrb[61].mxu1  ;;  %v2608_v19 = vadd.f32 %v2607_v2, %v6917_v46  ;;  %p3663_p8 = pnand %p3662_p7, %p3656_p4 }
 0x8b2   :  { %v2569_v42 = vadd.f32 %v2568_v34, %v4282_v40  ;;  %v2570_v62 = vpop.f32.mrb[62].mxu0  ;;  %v2611_v14 = vpop.f32.mrb[62].mxu1  ;;  %v2610_v0 = vadd.f32 %v2609_v24, %v6911_v10 }
 0x8b3   :  { %v2850_v23 = vmul.f32 -1.442695, %v2567_v3  ;;  %v2571_v5 = vpop.f32.mrb[63].mxu0  ;;  %v2612_v53 = vpop.f32.mrb[63].mxu1 }
 0x8b4   :  { %v2851_v59 = vmul.f32 -1.442695, %v2569_v42  ;;  %v2852_v25 = vmul.f32 -1.442695, %v2610_v0 }
 0x8b5   :  { %3295 = vpow2.f32 %v2850_v23 }
 0x8b6   :  { %3297 = vpow2.f32 %v2851_v59 }
 0x8b7   :  { %3299 = vpow2.f32 %v2852_v25 }
 0x8b8   :  { %3301 = vtanh.f32 %v2608_v19 }
 0x8bf   :  { %v3296_v54 = vpop.eup %3295 }
 0x8c0   :  { %v3298_v39 = vpop.eup %3297  ;;  %v2617_v56 = vadd.f32 1.0, %v3296_v54 }
 0x8c1   :  { %v2623_v61 = vadd.f32 1.0, %v3298_v39  ;;  %v3300_v40 = vpop.eup %3299 }
 0x8c2   :  { %3303 = vrcp.f32 %v2617_v56  ;;  %v3302_v1 = vpop.eup %3301  ;;  %v2630_v13 = vadd.f32 1.0, %v3300_v40 }
 0x8c3   :  { %3305 = vrcp.f32 %v2623_v61 }
 0x8c4   :  { %3307 = vrcp.f32 %v2630_v13 }
 0x8cc   :  { %v3304_v51 = vpop.eup %3303 }
 0x8cd   :  { %v3306_v44 = vpop.eup %3305  ;;  %v2634_v41 = vmul.f32 %v3304_v51, %v3302_v1 }
 0x8ce   :  { %v2633_v48 = vmul.f32 %v3306_v44, %v5706_v17  ;;  %v3308_v46 = vpop.eup %3307 }
 0x8d0   :  { %v2635_v10 = vadd.f32 %v2634_v41, %v2633_v48 }
 0x8d2   :  { %3309 = vtanh.f32 %v2635_v10 }
 0x8dc   :  { %v3310_v50 = vpop.eup %3309 }
 0x8dd   :  { %v2637_v16 = vmul.f32 %v3310_v50, %v3308_v46 }
 0x8df   :  { %v2641_v49 = vpack.c.bf16 %v2637_v16, %v2637_v16 }
 0x8e1   :  { %2642 = vst [vmem:[#allocation9] sm:$0xf] %v2641_v49 }
 0x8e2   :  { %3666 = shalt.err (!%p3663_p8)
}
 0x8e3   :  { %s3667_s29 = scalar_lea.hbm %s5771_s6, 512 }
 0x8e4   :  { %p3668_p9 = scmp.ne.s32.totalorder %s5771_s6, %s3667_s29  ;;  %p3671_p10 = scmp.lt.u32.totalorder %s3667_s29, %s5771_s6 }
 0x8e6   :  { %p3673_p11 = pnand %p3671_p10, %p3668_p9 }
 0x8e8   :  { %3676 = shalt.err (!%p3673_p11)
}
 0x8e9   :  { %2666 = dma.vmem_to_hbm [thread:$0]  %s2661_s25, 512, %s5771_s6, [#allocation10], %s3689_s1, %s3689_s1, %s3690_s21  }
 0x8ea   :  { %3681 = dma.done.wait [#allocation4], 512  }
 0x8eb   :  { %3682 = vsyncadd [#allocation4], 4294966784 }
 0x8ec   :  { %3683 = dma.done.wait [#allocation10], 512  }
 0x8ed   :  { %3684 = vsyncadd [#allocation10], 4294966784 }
 0x8ee   :  { %2673 = vsyncpa [#allocation3], 1 }
 0x8ef   :  { %2674 = vsyncpa [#allocation6], 1 }
 0x8f0   :  { %2675 = vsyncpa [#allocation4], 1 }
 0x8f1   :  { %2676 = vsyncpa [#allocation10], 1 }

</bundles_post_ra>
